<compile_context>
chip_gen: v7x
topology: tpu7x:2x2x1
jax: 0.10.0
libtpu: 0.0.40
codegen_flags: <defaults>
</compile_context>

<pallas_src>
import jax
import jax.numpy as jnp
from jax import lax
from jax.experimental import pallas as pl
from jax.experimental.pallas import tpu as pltpu


# ----------------------------------------------------------------------------
# Fused kernel: conv1+BN+ReLU+pool, conv2+BN+ReLU+pool, fc1+ReLU+fc2.
# One grid step processes TB samples.
# ----------------------------------------------------------------------------
def _mycnn_kernel(x_ref, m1_ref, c1b_ref, p1_ref, q1_ref, s2_ref, m2_ref,
                  c2b_ref, p2_ref, q2_ref, r_ref, w1_ref, b1_ref,
                  w2_ref, b2_ref, o_ref):
    f32 = jnp.float32
    bf16 = jnp.bfloat16
    tb = x_ref.shape[0]

    # ---- stage 1: Conv2d(1,6,5) (BN scale folded) + bias + ReLU ------------
    # 5 row-shifted matmuls against per-ki Toeplitz matrices; slices come
    # straight from the VMEM ref (sublane-offset vld, no value shuffles).
    acc1 = None
    for ki in range(5):
        xs = x_ref[:, pl.ds(ki, 24), :].reshape(tb * 24, 28)        # bf16
        d = jnp.dot(xs, m1_ref[ki], preferred_element_type=f32)     # (tb*24,144)
        acc1 = d if acc1 is None else acc1 + d
    y1 = jnp.maximum(acc1 + c1b_ref[...], 0.0).astype(bf16)         # lane=ow*6+c

    # ---- 2x2 max-pool #1 (exact 0/1 bf16 selection matmuls) ----------------
    pv1 = jnp.dot(p1_ref[...], y1, preferred_element_type=f32)      # (2*tb*12,144)
    v1 = jnp.maximum(pv1[:tb * 12], pv1[tb * 12:]).astype(bf16)     # (tb*12,144)
    h1 = jnp.maximum(jnp.dot(v1, q1_ref[0], preferred_element_type=f32),
                     jnp.dot(v1, q1_ref[1], preferred_element_type=f32)
                     ).astype(bf16)                                  # (tb*12,72)

    # ---- stage 2: Conv2d(6,16,5) (BN scale folded) + bias + ReLU -----------
    # Per-sample row shifts done with one stacked 0/1 selection matmul.
    sel = jnp.dot(s2_ref[...], h1, preferred_element_type=f32).astype(bf16)
    acc2 = None                                                      # (5*tb*8,72)
    for ki in range(5):
        rows = sel[ki * tb * 8:(ki + 1) * tb * 8]                    # (tb*8,72)
        d = jnp.dot(rows, m2_ref[ki], preferred_element_type=f32)    # (tb*8,128)
        acc2 = d if acc2 is None else acc2 + d
    y2 = jnp.maximum(acc2 + c2b_ref[...], 0.0).astype(bf16)          # lane=ow*16+c

    # ---- 2x2 max-pool #2 ----------------------------------------------------
    pv2 = jnp.dot(p2_ref[...], y2, preferred_element_type=f32)       # (2*tb*4,128)
    v2 = jnp.maximum(pv2[:tb * 4], pv2[tb * 4:]).astype(bf16)        # (tb*4,128)
    feat = jnp.maximum(jnp.dot(v2, q2_ref[0], preferred_element_type=f32),
                       jnp.dot(v2, q2_ref[1], preferred_element_type=f32)
                       ).astype(bf16)                                # (tb*4,64)

    # ---- classifier: Linear(256,84) + ReLU + Linear(84,10->pad 128) --------
    # Gather per-sample feature rows (one 0/1 selection matmul), then sum over
    # the 4 spatial rows of per-row (64,84) weight slabs.
    rows = jnp.dot(r_ref[...], feat, preferred_element_type=f32)     # (4*tb,64)
    hid = None
    for h in range(4):
        rh = rows[h * tb:(h + 1) * tb].astype(bf16)                  # (tb,64)
        d = jnp.dot(rh, w1_ref[h], preferred_element_type=f32)       # (tb,84)
        hid = d if hid is None else hid + d
    hid = jnp.maximum(hid + b1_ref[...], 0.0).astype(bf16)
    o_ref[...] = jnp.dot(hid, w2_ref[...], preferred_element_type=f32) + b2_ref[...]


def mycnn_pallas(x_bhw, m1, c1b, p1, q1, s2, m2, c2b, p2, q2, rsel,
                 w1, b1fc, w2, b2fc, *, tb):
    b_pad = x_bhw.shape[0]
    grid = b_pad // tb
    return pl.pallas_call(
        _mycnn_kernel,
        out_shape=jax.ShapeDtypeStruct((b_pad, 128), jnp.float32),
        grid=(grid,),
        in_specs=[
            pl.BlockSpec((tb, 28, 28), lambda i: (i, 0, 0)),          # image (bf16)
            pl.BlockSpec((5, 28, 144), lambda i: (0, 0, 0)),          # conv1 Toeplitz*BN
            pl.BlockSpec((1, 144), lambda i: (0, 0)),                 # conv1 folded bias
            pl.BlockSpec((2 * tb * 12, tb * 24), lambda i: (0, 0)),   # pool1 row sel
            pl.BlockSpec((2, 144, 72), lambda i: (0, 0, 0)),          # pool1 lane sel
            pl.BlockSpec((5 * tb * 8, tb * 12), lambda i: (0, 0)),    # conv2 row-shift sel
            pl.BlockSpec((5, 72, 128), lambda i: (0, 0, 0)),          # conv2 Toeplitz*BN
            pl.BlockSpec((1, 128), lambda i: (0, 0)),                 # conv2 folded bias
            pl.BlockSpec((2 * tb * 4, tb * 8), lambda i: (0, 0)),     # pool2 row sel
            pl.BlockSpec((2, 128, 64), lambda i: (0, 0, 0)),          # pool2 lane sel
            pl.BlockSpec((4 * tb, tb * 4), lambda i: (0, 0)),         # fc1 row-gather sel
            pl.BlockSpec((4, 64, 84), lambda i: (0, 0, 0)),           # fc1 weights (per h)
            pl.BlockSpec((1, 84), lambda i: (0, 0)),                  # fc1 bias
            pl.BlockSpec((84, 128), lambda i: (0, 0)),                # fc2 weights (padded)
            pl.BlockSpec((1, 128), lambda i: (0, 0)),                 # fc2 bias (padded)
        ],
        out_specs=pl.BlockSpec((tb, 128), lambda i: (i, 0)),
        compiler_params=pltpu.CompilerParams(
            dimension_semantics=("parallel",)),
    )(x_bhw, m1, c1b, p1, q1, s2, m2, c2b, p2, q2, rsel, w1, b1fc, w2, b2fc)


# ----------------------------------------------------------------------------
# Wrapper-side weight / selector preparation (tiny, runs once per call).
# ----------------------------------------------------------------------------
def _bn_fold(conv_bias, gamma, beta, mean, var, eps=1e-5):
    scale = gamma / jnp.sqrt(var + eps)
    bias = (conv_bias - mean) * scale + beta
    return scale, bias


def _conv1_toeplitz(w1, scale):
    """(6,1,5,5) * scale[cout] -> (5, 28, 24*6) bf16 so that
    conv1 = sum_ki x[:, ki:ki+24, :] @ M[ki]; output lane = ow*6 + cout."""
    w1s = w1 * scale[:, None, None, None]
    w1t = jnp.transpose(w1s[:, 0, :, :], (1, 2, 0))           # (ki, kj, cout)
    j = jnp.arange(28)[:, None]
    ow = jnp.arange(24)[None, :]
    d = j - ow
    valid = (d >= 0) & (d < 5)
    m = w1t[:, jnp.clip(d, 0, 4), :]                          # (5, 28, 24, 6)
    m = jnp.where(valid[None, :, :, None], m, 0.0)
    return m.reshape(5, 28, 144).astype(jnp.bfloat16)


def _conv2_toeplitz(w2, scale):
    """(16,6,5,5) * scale[cout] -> (5, 12*6, 8*16) bf16; input lane pw*6+cin,
    output lane ow*16+cout."""
    w2s = w2 * scale[:, None, None, None]
    w2t = jnp.transpose(w2s, (2, 3, 1, 0))                    # (ki, kj, cin, cout)
    pw = jnp.arange(12)[:, None]
    ow = jnp.arange(8)[None, :]
    d = pw - ow
    valid = (d >= 0) & (d < 5)
    m = w2t[:, jnp.clip(d, 0, 4), :, :]                       # (5, 12, 8, 6, 16)
    m = jnp.where(valid[None, :, :, None, None], m, 0.0)
    m = jnp.transpose(m, (0, 1, 3, 2, 4))                     # (ki, pw, cin, ow, cout)
    return m.reshape(5, 72, 128).astype(jnp.bfloat16)


def _pool_row_selectors(tb, n_out):
    """Stacked even/odd 0/1 row selectors: (2*tb*n_out, 2*tb*n_out) bf16.
    Pooled row r = b*n_out+ph picks input rows 2r and 2r+1 (works batch-stacked
    because the stacked input has exactly 2*n_out rows per sample)."""
    r = jnp.arange(tb * n_out)
    i = jnp.arange(2 * tb * n_out)
    pe = (i[None, :] == 2 * r[:, None]).astype(jnp.bfloat16)
    po = (i[None, :] == 2 * r[:, None] + 1).astype(jnp.bfloat16)
    return jnp.concatenate([pe, po], axis=0)


def _pool_lane_selectors(n_out, c):
    """Even/odd 0/1 lane selectors (2, 2*n_out*c, n_out*c) bf16 picking even/odd
    pixel groups of width c (lane layout pw*c + cin)."""
    r = jnp.arange(n_out)
    i = jnp.arange(2 * n_out)
    qe = (i[:, None] == 2 * r[None, :]).astype(jnp.float32)
    qo = (i[:, None] == 2 * r[None, :] + 1).astype(jnp.float32)
    eye_c = jnp.eye(c, dtype=jnp.float32)
    return jnp.stack([jnp.kron(qe, eye_c),
                      jnp.kron(qo, eye_c)]).astype(jnp.bfloat16)


def _conv2_shift_selectors(tb):
    """(5*tb*8, tb*12) bf16: row ki*tb*8 + b*8 + oh selects h1 row b*12 + oh + ki."""
    blocks = []
    src_cols = jnp.arange(tb * 12)[None, :]
    out_idx = jnp.arange(tb * 8)
    b = out_idx // 8
    oh = out_idx % 8
    for ki in range(5):
        src = b * 12 + oh + ki
        blocks.append((src_cols == src[:, None]).astype(jnp.bfloat16))
    return jnp.concatenate(blocks, axis=0)


def _fc_row_selectors(tb):
    """(4*tb, tb*4) bf16: row h*tb + b selects feature row b*4 + h."""
    blocks = []
    src_cols = jnp.arange(tb * 4)[None, :]
    b = jnp.arange(tb)
    for h in range(4):
        src = b * 4 + h
        blocks.append((src_cols == src[:, None]).astype(jnp.bfloat16))
    return jnp.concatenate(blocks, axis=0)


def init_params(key):
    ks = jax.random.split(key, 16)
    p = {}
    # conv1: Conv2d(1, 6, 5) + BatchNorm2d(6)
    p["w1"] = 0.10 * jax.random.normal(ks[0], (6, 1, 5, 5), jnp.float32)
    p["b1"] = 0.10 * jax.random.normal(ks[1], (6,), jnp.float32)
    p["bn1_gamma"] = 1.0 + 0.05 * jax.random.normal(ks[2], (6,), jnp.float32)
    p["bn1_beta"] = 0.05 * jax.random.normal(ks[3], (6,), jnp.float32)
    p["bn1_mean"] = jnp.zeros((6,), jnp.float32)
    p["bn1_var"] = jnp.ones((6,), jnp.float32)
    # conv2: Conv2d(6, 16, 5) + BatchNorm2d(16)
    p["w2"] = 0.05 * jax.random.normal(ks[4], (16, 6, 5, 5), jnp.float32)
    p["b2"] = 0.05 * jax.random.normal(ks[5], (16,), jnp.float32)
    p["bn2_gamma"] = 1.0 + 0.05 * jax.random.normal(ks[6], (16,), jnp.float32)
    p["bn2_beta"] = 0.05 * jax.random.normal(ks[7], (16,), jnp.float32)
    p["bn2_mean"] = jnp.zeros((16,), jnp.float32)
    p["bn2_var"] = jnp.ones((16,), jnp.float32)
    # classifier: Linear(256, 84) -> ReLU -> Linear(84, 10)
    p["fc1_w"] = 0.05 * jax.random.normal(ks[8], (84, 256), jnp.float32)
    p["fc1_b"] = 0.05 * jax.random.normal(ks[9], (84,), jnp.float32)
    p["fc2_w"] = 0.05 * jax.random.normal(ks[10], (10, 84), jnp.float32)
    p["fc2_b"] = 0.05 * jax.random.normal(ks[11], (10,), jnp.float32)
    return p


def mycnn_forward(params, x_nchw, *, tb=8):
    """MyCNN(use_act=True, use_pool=True, use_fc=True) forward pass.
    BatchNorm in eval/inference mode (running stats); conv3 unused in forward."""
    B = x_nchw.shape[0]
    assert x_nchw.shape[1:] == (1, 28, 28), "expects (B, 1, 28, 28) input"

    # Image -> bf16, batch padded to a whole number of TB-sample tiles.
    # (On v7x, prefer B a multiple of 2*tb so both TensorCores stay busy.)
    x = x_nchw[:, 0, :, :].astype(jnp.bfloat16)                  # (B, 28, 28)
    b_pad = pl.cdiv(B, tb) * tb
    if b_pad != B:
        x = jnp.pad(x, ((0, b_pad - B), (0, 0), (0, 0)))

    # Conv weights with BN scale folded; BN-folded bias tiled to lane layout.
    s1, bias1 = _bn_fold(params["b1"], params["bn1_gamma"], params["bn1_beta"],
                         params["bn1_mean"], params["bn1_var"])
    s2, bias2 = _bn_fold(params["b2"], params["bn2_gamma"], params["bn2_beta"],
                         params["bn2_mean"], params["bn2_var"])
    m1 = _conv1_toeplitz(params["w1"], s1)                       # (5, 28, 144)
    m2 = _conv2_toeplitz(params["w2"], s2)                       # (5, 72, 128)
    c1b = jnp.tile(bias1, 24).reshape(1, 144).astype(jnp.float32)
    c2b = jnp.tile(bias2, 8).reshape(1, 128).astype(jnp.float32)

    # Pool / row-shift / fc-gather selectors (exact 0/1, bf16).
    p1 = _pool_row_selectors(tb, 12)                             # (2*tb*12, tb*24)
    q1 = _pool_lane_selectors(12, 6)                             # (2, 144, 72)
    s2sel = _conv2_shift_selectors(tb)                           # (5*tb*8, tb*12)
    p2 = _pool_row_selectors(tb, 4)                              # (2*tb*4, tb*8)
    q2 = _pool_lane_selectors(4, 16)                             # (2, 128, 64)
    rsel = _fc_row_selectors(tb)                                 # (4*tb, tb*4)

    # fc1 weights rearranged to per-row (h) slabs with (w,c) lane order
    # matching the feature layout (row = h, lane = w*16 + c).
    w1p = params["fc1_w"].reshape(84, 16, 4, 4).transpose(2, 3, 1, 0)
    w1p = w1p.reshape(4, 64, 84).astype(jnp.bfloat16)
    b1fc = params["fc1_b"].reshape(1, 84).astype(jnp.float32)
    # fc2 zero-padded to 128 output lanes for an unmasked lane-dense store.
    w2p = jnp.zeros((84, 128), jnp.float32).at[:, :10].set(params["fc2_w"].T)
    w2p = w2p.astype(jnp.bfloat16)
    b2fc = jnp.zeros((1, 128), jnp.float32).at[:, :10].set(params["fc2_b"][None, :])

    out = mycnn_pallas(x, m1, c1b, p1, q1, s2sel, m2, c2b, p2, q2, rsel,
                       w1p, b1fc, w2p, b2fc, tb=tb)              # (b_pad, 128)
    return out[:B, :10]


# ----------------------------------------------------------------------------
# Pure-JAX reference (for a loose numerical sanity check only).
# ----------------------------------------------------------------------------
def _reference_forward(params, x_nchw):
    eps = 1e-5
    x = x_nchw.astype(jnp.float32)

    def block(x, w, b, g, beta, mean, var):
        y = lax.conv_general_dilated(
            x, w, window_strides=(1, 1), padding="VALID",
            dimension_numbers=("NCHW", "OIHW", "NCHW"))
        y = y + b[None, :, None, None]
        y = (y - mean[None, :, None, None]) * (
            g[None, :, None, None] / jnp.sqrt(var[None, :, None, None] + eps)
        ) + beta[None, :, None, None]
        y = jnp.maximum(y, 0.0)
        return lax.reduce_window(y, -jnp.inf, lax.max,
                                 (1, 1, 2, 2), (1, 1, 2, 2), "VALID")

    y = block(x, params["w1"], params["b1"], params["bn1_gamma"],
              params["bn1_beta"], params["bn1_mean"], params["bn1_var"])
    y = block(y, params["w2"], params["b2"], params["bn2_gamma"],
              params["bn2_beta"], params["bn2_mean"], params["bn2_var"])
    y = y.reshape(y.shape[0], -1)
    y = jnp.maximum(y @ params["fc1_w"].T + params["fc1_b"], 0.0)
    return y @ params["fc2_w"].T + params["fc2_b"]


if __name__ == "__main__":
    key = jax.random.PRNGKey(0)
    k_params, k_x = jax.random.split(key)
    params = init_params(k_params)
    # Input must be (B, 1, 28, 28) so the flattened feature is 16*4*4 = 256,
    # matching Linear(256, 84) in the PyTorch module.
    x = jax.random.normal(k_x, (2, 1, 28, 28), jnp.float32)

    out = jax.jit(mycnn_forward)(params, x)
    out = jax.block_until_ready(out)
    assert out.shape == (2, 10) and out.dtype == jnp.float32

    # Loose sanity check vs pure-JAX reference (bf16 MXU operands in the kernel).
    ref = jax.jit(_reference_forward)(params, x)
    err = float(jnp.max(jnp.abs(out - ref)))
    assert err < 6e-2, f"mismatch vs reference: max abs err = {err}"

    print("KERNEL_OK")
</pallas_src>

<mosaic_0001>
module attributes {stable_mosaic.version = 11 : i64} {
  func.func @_mycnn_kernel(%arg0: i32, %arg1: memref<8x28x28xbf16, #tpu.memory_space<vmem>>, %arg2: memref<5x28x144xbf16, #tpu.memory_space<vmem>>, %arg3: memref<1x144xf32, #tpu.memory_space<vmem>>, %arg4: memref<192x192xbf16, #tpu.memory_space<vmem>>, %arg5: memref<2x144x72xbf16, #tpu.memory_space<vmem>>, %arg6: memref<320x96xbf16, #tpu.memory_space<vmem>>, %arg7: memref<5x72x128xbf16, #tpu.memory_space<vmem>>, %arg8: memref<1x128xf32, #tpu.memory_space<vmem>>, %arg9: memref<64x64xbf16, #tpu.memory_space<vmem>>, %arg10: memref<2x128x64xbf16, #tpu.memory_space<vmem>>, %arg11: memref<32x32xbf16, #tpu.memory_space<vmem>>, %arg12: memref<4x64x84xbf16, #tpu.memory_space<vmem>>, %arg13: memref<1x84xf32, #tpu.memory_space<vmem>>, %arg14: memref<84x128xbf16, #tpu.memory_space<vmem>>, %arg15: memref<1x128xf32, #tpu.memory_space<vmem>>, %arg16: memref<8x128xf32, #tpu.memory_space<vmem>>) attributes {dimension_semantics = [#tpu.dimension_semantics<parallel>], iteration_bounds = array<i64: 1>, scalar_prefetch = 0 : i64, scratch_operands = 0 : i64, tpu.core_type = #tpu.core_type<tc>, window_params = [{transform_indices = @transform_0, window_bounds = array<i64: 8, 28, 28>}, {pipeline_mode = #tpu.pipeline_mode<synchronous>, transform_indices = @transform_1, window_bounds = array<i64: 5, 28, 144>}, {pipeline_mode = #tpu.pipeline_mode<synchronous>, transform_indices = @transform_2, window_bounds = array<i64: 1, 144>}, {pipeline_mode = #tpu.pipeline_mode<synchronous>, transform_indices = @transform_3, window_bounds = array<i64: 192, 192>}, {pipeline_mode = #tpu.pipeline_mode<synchronous>, transform_indices = @transform_4, window_bounds = array<i64: 2, 144, 72>}, {pipeline_mode = #tpu.pipeline_mode<synchronous>, transform_indices = @transform_5, window_bounds = array<i64: 320, 96>}, {pipeline_mode = #tpu.pipeline_mode<synchronous>, transform_indices = @transform_6, window_bounds = array<i64: 5, 72, 128>}, {pipeline_mode = #tpu.pipeline_mode<synchronous>, transform_indices = @transform_7, window_bounds = array<i64: 1, 128>}, {pipeline_mode = #tpu.pipeline_mode<synchronous>, transform_indices = @transform_8, window_bounds = array<i64: 64, 64>}, {pipeline_mode = #tpu.pipeline_mode<synchronous>, transform_indices = @transform_9, window_bounds = array<i64: 2, 128, 64>}, {pipeline_mode = #tpu.pipeline_mode<synchronous>, transform_indices = @transform_10, window_bounds = array<i64: 32, 32>}, {pipeline_mode = #tpu.pipeline_mode<synchronous>, transform_indices = @transform_11, window_bounds = array<i64: 4, 64, 84>}, {pipeline_mode = #tpu.pipeline_mode<synchronous>, transform_indices = @transform_12, window_bounds = array<i64: 1, 84>}, {pipeline_mode = #tpu.pipeline_mode<synchronous>, transform_indices = @transform_13, window_bounds = array<i64: 84, 128>}, {pipeline_mode = #tpu.pipeline_mode<synchronous>, transform_indices = @transform_14, window_bounds = array<i64: 1, 128>}, {transform_indices = @transform_15, window_bounds = array<i64: 8, 128>}]} {
    %c0 = arith.constant 0 : index
    %c0_0 = arith.constant 0 : index
    %c0_1 = arith.constant 0 : index
    %0 = vector.load %arg1[%c0, %c0_0, %c0_1] : memref<8x28x28xbf16, #tpu.memory_space<vmem>>, vector<8x24x28xbf16>
    %1 = vector.shape_cast %0 : vector<8x24x28xbf16> to vector<192x28xbf16>
    %c0_2 = arith.constant 0 : index
    %c0_3 = arith.constant 0 : index
    %c0_4 = arith.constant 0 : index
    %2 = vector.load %arg2[%c0_2, %c0_3, %c0_4] : memref<5x28x144xbf16, #tpu.memory_space<vmem>>, vector<1x28x144xbf16>
    %3 = vector.shape_cast %2 : vector<1x28x144xbf16> to vector<28x144xbf16>
    %cst = arith.constant dense<0.000000e+00> : vector<192x144xf32>
    %4 = tpu.matmul %1, %3, %cst {dimension_numbers = #tpu.dot_dimension_numbers<[1], [0], [0], [1], [0, 0, 1, 1], [], []>} : vector<192x28xbf16>, vector<28x144xbf16>, vector<192x144xf32> -> vector<192x144xf32>
    %c0_5 = arith.constant 0 : index
    %c1 = arith.constant 1 : index
    %c0_6 = arith.constant 0 : index
    %5 = vector.load %arg1[%c0_5, %c1, %c0_6] : memref<8x28x28xbf16, #tpu.memory_space<vmem>>, vector<8x24x28xbf16>
    %6 = vector.shape_cast %5 : vector<8x24x28xbf16> to vector<192x28xbf16>
    %c1_7 = arith.constant 1 : index
    %c0_8 = arith.constant 0 : index
    %c0_9 = arith.constant 0 : index
    %7 = vector.load %arg2[%c1_7, %c0_8, %c0_9] : memref<5x28x144xbf16, #tpu.memory_space<vmem>>, vector<1x28x144xbf16>
    %8 = vector.shape_cast %7 : vector<1x28x144xbf16> to vector<28x144xbf16>
    %cst_10 = arith.constant dense<0.000000e+00> : vector<192x144xf32>
    %9 = tpu.matmul %6, %8, %cst_10 {dimension_numbers = #tpu.dot_dimension_numbers<[1], [0], [0], [1], [0, 0, 1, 1], [], []>} : vector<192x28xbf16>, vector<28x144xbf16>, vector<192x144xf32> -> vector<192x144xf32>
    %10 = arith.addf %4, %9 : vector<192x144xf32>
    %c0_11 = arith.constant 0 : index
    %c2 = arith.constant 2 : index
    %c0_12 = arith.constant 0 : index
    %11 = vector.load %arg1[%c0_11, %c2, %c0_12] : memref<8x28x28xbf16, #tpu.memory_space<vmem>>, vector<8x24x28xbf16>
    %12 = vector.shape_cast %11 : vector<8x24x28xbf16> to vector<192x28xbf16>
    %c2_13 = arith.constant 2 : index
    %c0_14 = arith.constant 0 : index
    %c0_15 = arith.constant 0 : index
    %13 = vector.load %arg2[%c2_13, %c0_14, %c0_15] : memref<5x28x144xbf16, #tpu.memory_space<vmem>>, vector<1x28x144xbf16>
    %14 = vector.shape_cast %13 : vector<1x28x144xbf16> to vector<28x144xbf16>
    %cst_16 = arith.constant dense<0.000000e+00> : vector<192x144xf32>
    %15 = tpu.matmul %12, %14, %cst_16 {dimension_numbers = #tpu.dot_dimension_numbers<[1], [0], [0], [1], [0, 0, 1, 1], [], []>} : vector<192x28xbf16>, vector<28x144xbf16>, vector<192x144xf32> -> vector<192x144xf32>
    %16 = arith.addf %10, %15 : vector<192x144xf32>
    %c0_17 = arith.constant 0 : index
    %c3 = arith.constant 3 : index
    %c0_18 = arith.constant 0 : index
    %17 = vector.load %arg1[%c0_17, %c3, %c0_18] : memref<8x28x28xbf16, #tpu.memory_space<vmem>>, vector<8x24x28xbf16>
    %18 = vector.shape_cast %17 : vector<8x24x28xbf16> to vector<192x28xbf16>
    %c3_19 = arith.constant 3 : index
    %c0_20 = arith.constant 0 : index
    %c0_21 = arith.constant 0 : index
    %19 = vector.load %arg2[%c3_19, %c0_20, %c0_21] : memref<5x28x144xbf16, #tpu.memory_space<vmem>>, vector<1x28x144xbf16>
    %20 = vector.shape_cast %19 : vector<1x28x144xbf16> to vector<28x144xbf16>
    %cst_22 = arith.constant dense<0.000000e+00> : vector<192x144xf32>
    %21 = tpu.matmul %18, %20, %cst_22 {dimension_numbers = #tpu.dot_dimension_numbers<[1], [0], [0], [1], [0, 0, 1, 1], [], []>} : vector<192x28xbf16>, vector<28x144xbf16>, vector<192x144xf32> -> vector<192x144xf32>
    %22 = arith.addf %16, %21 : vector<192x144xf32>
    %c0_23 = arith.constant 0 : index
    %c4 = arith.constant 4 : index
    %c0_24 = arith.constant 0 : index
    %23 = vector.load %arg1[%c0_23, %c4, %c0_24] : memref<8x28x28xbf16, #tpu.memory_space<vmem>>, vector<8x24x28xbf16>
    %24 = vector.shape_cast %23 : vector<8x24x28xbf16> to vector<192x28xbf16>
    %c4_25 = arith.constant 4 : index
    %c0_26 = arith.constant 0 : index
    %c0_27 = arith.constant 0 : index
    %25 = vector.load %arg2[%c4_25, %c0_26, %c0_27] : memref<5x28x144xbf16, #tpu.memory_space<vmem>>, vector<1x28x144xbf16>
    %26 = vector.shape_cast %25 : vector<1x28x144xbf16> to vector<28x144xbf16>
    %cst_28 = arith.constant dense<0.000000e+00> : vector<192x144xf32>
    %27 = tpu.matmul %24, %26, %cst_28 {dimension_numbers = #tpu.dot_dimension_numbers<[1], [0], [0], [1], [0, 0, 1, 1], [], []>} : vector<192x28xbf16>, vector<28x144xbf16>, vector<192x144xf32> -> vector<192x144xf32>
    %28 = arith.addf %22, %27 : vector<192x144xf32>
    %c0_29 = arith.constant 0 : index
    %c0_30 = arith.constant 0 : index
    %29 = vector.load %arg3[%c0_29, %c0_30] : memref<1x144xf32, #tpu.memory_space<vmem>>, vector<1x144xf32>
    %30 = vector.broadcast %29 : vector<1x144xf32> to vector<192x144xf32>
    %31 = arith.addf %28, %30 : vector<192x144xf32>
    %cst_31 = arith.constant 0.000000e+00 : f32
    %32 = vector.broadcast %cst_31 : f32 to vector<192x144xf32>
    %33 = arith.maximumf %31, %32 : vector<192x144xf32>
    %34 = arith.truncf %33 : vector<192x144xf32> to vector<192x144xbf16>
    %c0_32 = arith.constant 0 : index
    %c0_33 = arith.constant 0 : index
    %35 = vector.load %arg4[%c0_32, %c0_33] : memref<192x192xbf16, #tpu.memory_space<vmem>>, vector<192x192xbf16>
    %cst_34 = arith.constant dense<0.000000e+00> : vector<192x144xf32>
    %36 = tpu.matmul %35, %34, %cst_34 {dimension_numbers = #tpu.dot_dimension_numbers<[1], [0], [0], [1], [0, 0, 1, 1], [], []>} : vector<192x192xbf16>, vector<192x144xbf16>, vector<192x144xf32> -> vector<192x144xf32>
    %37 = vector.extract_strided_slice %36 {offsets = [0, 0], sizes = [96, 144], strides = [1, 1]} : vector<192x144xf32> to vector<96x144xf32>
    %38 = vector.extract_strided_slice %36 {offsets = [96, 0], sizes = [96, 144], strides = [1, 1]} : vector<192x144xf32> to vector<96x144xf32>
    %39 = arith.maximumf %37, %38 : vector<96x144xf32>
    %40 = arith.truncf %39 : vector<96x144xf32> to vector<96x144xbf16>
    %c0_35 = arith.constant 0 : index
    %c0_36 = arith.constant 0 : index
    %c0_37 = arith.constant 0 : index
    %41 = vector.load %arg5[%c0_35, %c0_36, %c0_37] : memref<2x144x72xbf16, #tpu.memory_space<vmem>>, vector<1x144x72xbf16>
    %42 = vector.shape_cast %41 : vector<1x144x72xbf16> to vector<144x72xbf16>
    %cst_38 = arith.constant dense<0.000000e+00> : vector<96x72xf32>
    %43 = tpu.matmul %40, %42, %cst_38 {dimension_numbers = #tpu.dot_dimension_numbers<[1], [0], [0], [1], [0, 0, 1, 1], [], []>} : vector<96x144xbf16>, vector<144x72xbf16>, vector<96x72xf32> -> vector<96x72xf32>
    %c1_39 = arith.constant 1 : index
    %c0_40 = arith.constant 0 : index
    %c0_41 = arith.constant 0 : index
    %44 = vector.load %arg5[%c1_39, %c0_40, %c0_41] : memref<2x144x72xbf16, #tpu.memory_space<vmem>>, vector<1x144x72xbf16>
    %45 = vector.shape_cast %44 : vector<1x144x72xbf16> to vector<144x72xbf16>
    %cst_42 = arith.constant dense<0.000000e+00> : vector<96x72xf32>
    %46 = tpu.matmul %40, %45, %cst_42 {dimension_numbers = #tpu.dot_dimension_numbers<[1], [0], [0], [1], [0, 0, 1, 1], [], []>} : vector<96x144xbf16>, vector<144x72xbf16>, vector<96x72xf32> -> vector<96x72xf32>
    %47 = arith.maximumf %43, %46 : vector<96x72xf32>
    %48 = arith.truncf %47 : vector<96x72xf32> to vector<96x72xbf16>
    %c0_43 = arith.constant 0 : index
    %c0_44 = arith.constant 0 : index
    %49 = vector.load %arg6[%c0_43, %c0_44] : memref<320x96xbf16, #tpu.memory_space<vmem>>, vector<320x96xbf16>
    %cst_45 = arith.constant dense<0.000000e+00> : vector<320x72xf32>
    %50 = tpu.matmul %49, %48, %cst_45 {dimension_numbers = #tpu.dot_dimension_numbers<[1], [0], [0], [1], [0, 0, 1, 1], [], []>} : vector<320x96xbf16>, vector<96x72xbf16>, vector<320x72xf32> -> vector<320x72xf32>
    %51 = arith.truncf %50 : vector<320x72xf32> to vector<320x72xbf16>
    %52 = vector.extract_strided_slice %51 {offsets = [0, 0], sizes = [64, 72], strides = [1, 1]} : vector<320x72xbf16> to vector<64x72xbf16>
    %c0_46 = arith.constant 0 : index
    %c0_47 = arith.constant 0 : index
    %c0_48 = arith.constant 0 : index
    %53 = vector.load %arg7[%c0_46, %c0_47, %c0_48] : memref<5x72x128xbf16, #tpu.memory_space<vmem>>, vector<1x72x128xbf16>
    %54 = vector.shape_cast %53 : vector<1x72x128xbf16> to vector<72x128xbf16>
    %cst_49 = arith.constant dense<0.000000e+00> : vector<64x128xf32>
    %55 = tpu.matmul %52, %54, %cst_49 {dimension_numbers = #tpu.dot_dimension_numbers<[1], [0], [0], [1], [0, 0, 1, 1], [], []>} : vector<64x72xbf16>, vector<72x128xbf16>, vector<64x128xf32> -> vector<64x128xf32>
    %56 = vector.extract_strided_slice %51 {offsets = [64, 0], sizes = [64, 72], strides = [1, 1]} : vector<320x72xbf16> to vector<64x72xbf16>
    %c1_50 = arith.constant 1 : index
    %c0_51 = arith.constant 0 : index
    %c0_52 = arith.constant 0 : index
    %57 = vector.load %arg7[%c1_50, %c0_51, %c0_52] : memref<5x72x128xbf16, #tpu.memory_space<vmem>>, vector<1x72x128xbf16>
    %58 = vector.shape_cast %57 : vector<1x72x128xbf16> to vector<72x128xbf16>
    %cst_53 = arith.constant dense<0.000000e+00> : vector<64x128xf32>
    %59 = tpu.matmul %56, %58, %cst_53 {dimension_numbers = #tpu.dot_dimension_numbers<[1], [0], [0], [1], [0, 0, 1, 1], [], []>} : vector<64x72xbf16>, vector<72x128xbf16>, vector<64x128xf32> -> vector<64x128xf32>
    %60 = arith.addf %55, %59 : vector<64x128xf32>
    %61 = vector.extract_strided_slice %51 {offsets = [128, 0], sizes = [64, 72], strides = [1, 1]} : vector<320x72xbf16> to vector<64x72xbf16>
    %c2_54 = arith.constant 2 : index
    %c0_55 = arith.constant 0 : index
    %c0_56 = arith.constant 0 : index
    %62 = vector.load %arg7[%c2_54, %c0_55, %c0_56] : memref<5x72x128xbf16, #tpu.memory_space<vmem>>, vector<1x72x128xbf16>
    %63 = vector.shape_cast %62 : vector<1x72x128xbf16> to vector<72x128xbf16>
    %cst_57 = arith.constant dense<0.000000e+00> : vector<64x128xf32>
    %64 = tpu.matmul %61, %63, %cst_57 {dimension_numbers = #tpu.dot_dimension_numbers<[1], [0], [0], [1], [0, 0, 1, 1], [], []>} : vector<64x72xbf16>, vector<72x128xbf16>, vector<64x128xf32> -> vector<64x128xf32>
    %65 = arith.addf %60, %64 : vector<64x128xf32>
    %66 = vector.extract_strided_slice %51 {offsets = [192, 0], sizes = [64, 72], strides = [1, 1]} : vector<320x72xbf16> to vector<64x72xbf16>
    %c3_58 = arith.constant 3 : index
    %c0_59 = arith.constant 0 : index
    %c0_60 = arith.constant 0 : index
    %67 = vector.load %arg7[%c3_58, %c0_59, %c0_60] : memref<5x72x128xbf16, #tpu.memory_space<vmem>>, vector<1x72x128xbf16>
    %68 = vector.shape_cast %67 : vector<1x72x128xbf16> to vector<72x128xbf16>
    %cst_61 = arith.constant dense<0.000000e+00> : vector<64x128xf32>
    %69 = tpu.matmul %66, %68, %cst_61 {dimension_numbers = #tpu.dot_dimension_numbers<[1], [0], [0], [1], [0, 0, 1, 1], [], []>} : vector<64x72xbf16>, vector<72x128xbf16>, vector<64x128xf32> -> vector<64x128xf32>
    %70 = arith.addf %65, %69 : vector<64x128xf32>
    %71 = vector.extract_strided_slice %51 {offsets = [256, 0], sizes = [64, 72], strides = [1, 1]} : vector<320x72xbf16> to vector<64x72xbf16>
    %c4_62 = arith.constant 4 : index
    %c0_63 = arith.constant 0 : index
    %c0_64 = arith.constant 0 : index
    %72 = vector.load %arg7[%c4_62, %c0_63, %c0_64] : memref<5x72x128xbf16, #tpu.memory_space<vmem>>, vector<1x72x128xbf16>
    %73 = vector.shape_cast %72 : vector<1x72x128xbf16> to vector<72x128xbf16>
    %cst_65 = arith.constant dense<0.000000e+00> : vector<64x128xf32>
    %74 = tpu.matmul %71, %73, %cst_65 {dimension_numbers = #tpu.dot_dimension_numbers<[1], [0], [0], [1], [0, 0, 1, 1], [], []>} : vector<64x72xbf16>, vector<72x128xbf16>, vector<64x128xf32> -> vector<64x128xf32>
    %75 = arith.addf %70, %74 : vector<64x128xf32>
    %c0_66 = arith.constant 0 : index
    %c0_67 = arith.constant 0 : index
    %76 = vector.load %arg8[%c0_66, %c0_67] : memref<1x128xf32, #tpu.memory_space<vmem>>, vector<1x128xf32>
    %77 = vector.broadcast %76 : vector<1x128xf32> to vector<64x128xf32>
    %78 = arith.addf %75, %77 : vector<64x128xf32>
    %cst_68 = arith.constant 0.000000e+00 : f32
    %79 = vector.broadcast %cst_68 : f32 to vector<64x128xf32>
    %80 = arith.maximumf %78, %79 : vector<64x128xf32>
    %81 = arith.truncf %80 : vector<64x128xf32> to vector<64x128xbf16>
    %c0_69 = arith.constant 0 : index
    %c0_70 = arith.constant 0 : index
    %82 = vector.load %arg9[%c0_69, %c0_70] : memref<64x64xbf16, #tpu.memory_space<vmem>>, vector<64x64xbf16>
    %cst_71 = arith.constant dense<0.000000e+00> : vector<64x128xf32>
    %83 = tpu.matmul %82, %81, %cst_71 {dimension_numbers = #tpu.dot_dimension_numbers<[1], [0], [0], [1], [0, 0, 1, 1], [], []>} : vector<64x64xbf16>, vector<64x128xbf16>, vector<64x128xf32> -> vector<64x128xf32>
    %84 = vector.extract_strided_slice %83 {offsets = [0, 0], sizes = [32, 128], strides = [1, 1]} : vector<64x128xf32> to vector<32x128xf32>
    %85 = vector.extract_strided_slice %83 {offsets = [32, 0], sizes = [32, 128], strides = [1, 1]} : vector<64x128xf32> to vector<32x128xf32>
    %86 = arith.maximumf %84, %85 : vector<32x128xf32>
    %87 = arith.truncf %86 : vector<32x128xf32> to vector<32x128xbf16>
    %c0_72 = arith.constant 0 : index
    %c0_73 = arith.constant 0 : index
    %c0_74 = arith.constant 0 : index
    %88 = vector.load %arg10[%c0_72, %c0_73, %c0_74] : memref<2x128x64xbf16, #tpu.memory_space<vmem>>, vector<1x128x64xbf16>
    %89 = vector.shape_cast %88 : vector<1x128x64xbf16> to vector<128x64xbf16>
    %cst_75 = arith.constant dense<0.000000e+00> : vector<32x64xf32>
    %90 = tpu.matmul %87, %89, %cst_75 {dimension_numbers = #tpu.dot_dimension_numbers<[1], [0], [0], [1], [0, 0, 1, 1], [], []>} : vector<32x128xbf16>, vector<128x64xbf16>, vector<32x64xf32> -> vector<32x64xf32>
    %c1_76 = arith.constant 1 : index
    %c0_77 = arith.constant 0 : index
    %c0_78 = arith.constant 0 : index
    %91 = vector.load %arg10[%c1_76, %c0_77, %c0_78] : memref<2x128x64xbf16, #tpu.memory_space<vmem>>, vector<1x128x64xbf16>
    %92 = vector.shape_cast %91 : vector<1x128x64xbf16> to vector<128x64xbf16>
    %cst_79 = arith.constant dense<0.000000e+00> : vector<32x64xf32>
    %93 = tpu.matmul %87, %92, %cst_79 {dimension_numbers = #tpu.dot_dimension_numbers<[1], [0], [0], [1], [0, 0, 1, 1], [], []>} : vector<32x128xbf16>, vector<128x64xbf16>, vector<32x64xf32> -> vector<32x64xf32>
    %94 = arith.maximumf %90, %93 : vector<32x64xf32>
    %95 = arith.truncf %94 : vector<32x64xf32> to vector<32x64xbf16>
    %c0_80 = arith.constant 0 : index
    %c0_81 = arith.constant 0 : index
    %96 = vector.load %arg11[%c0_80, %c0_81] : memref<32x32xbf16, #tpu.memory_space<vmem>>, vector<32x32xbf16>
    %cst_82 = arith.constant dense<0.000000e+00> : vector<32x64xf32>
    %97 = tpu.matmul %96, %95, %cst_82 {dimension_numbers = #tpu.dot_dimension_numbers<[1], [0], [0], [1], [0, 0, 1, 1], [], []>} : vector<32x32xbf16>, vector<32x64xbf16>, vector<32x64xf32> -> vector<32x64xf32>
    %98 = vector.extract_strided_slice %97 {offsets = [0, 0], sizes = [8, 64], strides = [1, 1]} : vector<32x64xf32> to vector<8x64xf32>
    %99 = arith.truncf %98 : vector<8x64xf32> to vector<8x64xbf16>
    %c0_83 = arith.constant 0 : index
    %c0_84 = arith.constant 0 : index
    %c0_85 = arith.constant 0 : index
    %100 = vector.load %arg12[%c0_83, %c0_84, %c0_85] : memref<4x64x84xbf16, #tpu.memory_space<vmem>>, vector<1x64x84xbf16>
    %101 = vector.shape_cast %100 : vector<1x64x84xbf16> to vector<64x84xbf16>
    %cst_86 = arith.constant dense<0.000000e+00> : vector<8x84xf32>
    %102 = tpu.matmul %99, %101, %cst_86 {dimension_numbers = #tpu.dot_dimension_numbers<[1], [0], [0], [1], [0, 0, 1, 1], [], []>} : vector<8x64xbf16>, vector<64x84xbf16>, vector<8x84xf32> -> vector<8x84xf32>
    %103 = vector.extract_strided_slice %97 {offsets = [8, 0], sizes = [8, 64], strides = [1, 1]} : vector<32x64xf32> to vector<8x64xf32>
    %104 = arith.truncf %103 : vector<8x64xf32> to vector<8x64xbf16>
    %c1_87 = arith.constant 1 : index
    %c0_88 = arith.constant 0 : index
    %c0_89 = arith.constant 0 : index
    %105 = vector.load %arg12[%c1_87, %c0_88, %c0_89] : memref<4x64x84xbf16, #tpu.memory_space<vmem>>, vector<1x64x84xbf16>
    %106 = vector.shape_cast %105 : vector<1x64x84xbf16> to vector<64x84xbf16>
    %cst_90 = arith.constant dense<0.000000e+00> : vector<8x84xf32>
    %107 = tpu.matmul %104, %106, %cst_90 {dimension_numbers = #tpu.dot_dimension_numbers<[1], [0], [0], [1], [0, 0, 1, 1], [], []>} : vector<8x64xbf16>, vector<64x84xbf16>, vector<8x84xf32> -> vector<8x84xf32>
    %108 = arith.addf %102, %107 : vector<8x84xf32>
    %109 = vector.extract_strided_slice %97 {offsets = [16, 0], sizes = [8, 64], strides = [1, 1]} : vector<32x64xf32> to vector<8x64xf32>
    %110 = arith.truncf %109 : vector<8x64xf32> to vector<8x64xbf16>
    %c2_91 = arith.constant 2 : index
    %c0_92 = arith.constant 0 : index
    %c0_93 = arith.constant 0 : index
    %111 = vector.load %arg12[%c2_91, %c0_92, %c0_93] : memref<4x64x84xbf16, #tpu.memory_space<vmem>>, vector<1x64x84xbf16>
    %112 = vector.shape_cast %111 : vector<1x64x84xbf16> to vector<64x84xbf16>
    %cst_94 = arith.constant dense<0.000000e+00> : vector<8x84xf32>
    %113 = tpu.matmul %110, %112, %cst_94 {dimension_numbers = #tpu.dot_dimension_numbers<[1], [0], [0], [1], [0, 0, 1, 1], [], []>} : vector<8x64xbf16>, vector<64x84xbf16>, vector<8x84xf32> -> vector<8x84xf32>
    %114 = arith.addf %108, %113 : vector<8x84xf32>
    %115 = vector.extract_strided_slice %97 {offsets = [24, 0], sizes = [8, 64], strides = [1, 1]} : vector<32x64xf32> to vector<8x64xf32>
    %116 = arith.truncf %115 : vector<8x64xf32> to vector<8x64xbf16>
    %c3_95 = arith.constant 3 : index
    %c0_96 = arith.constant 0 : index
    %c0_97 = arith.constant 0 : index
    %117 = vector.load %arg12[%c3_95, %c0_96, %c0_97] : memref<4x64x84xbf16, #tpu.memory_space<vmem>>, vector<1x64x84xbf16>
    %118 = vector.shape_cast %117 : vector<1x64x84xbf16> to vector<64x84xbf16>
    %cst_98 = arith.constant dense<0.000000e+00> : vector<8x84xf32>
    %119 = tpu.matmul %116, %118, %cst_98 {dimension_numbers = #tpu.dot_dimension_numbers<[1], [0], [0], [1], [0, 0, 1, 1], [], []>} : vector<8x64xbf16>, vector<64x84xbf16>, vector<8x84xf32> -> vector<8x84xf32>
    %120 = arith.addf %114, %119 : vector<8x84xf32>
    %c0_99 = arith.constant 0 : index
    %c0_100 = arith.constant 0 : index
    %121 = vector.load %arg13[%c0_99, %c0_100] : memref<1x84xf32, #tpu.memory_space<vmem>>, vector<1x84xf32>
    %122 = vector.broadcast %121 : vector<1x84xf32> to vector<8x84xf32>
    %123 = arith.addf %120, %122 : vector<8x84xf32>
    %cst_101 = arith.constant 0.000000e+00 : f32
    %124 = vector.broadcast %cst_101 : f32 to vector<8x84xf32>
    %125 = arith.maximumf %123, %124 : vector<8x84xf32>
    %126 = arith.truncf %125 : vector<8x84xf32> to vector<8x84xbf16>
    %c0_102 = arith.constant 0 : index
    %c0_103 = arith.constant 0 : index
    %127 = vector.load %arg14[%c0_102, %c0_103] : memref<84x128xbf16, #tpu.memory_space<vmem>>, vector<84x128xbf16>
    %cst_104 = arith.constant dense<0.000000e+00> : vector<8x128xf32>
    %128 = tpu.matmul %126, %127, %cst_104 {dimension_numbers = #tpu.dot_dimension_numbers<[1], [0], [0], [1], [0, 0, 1, 1], [], []>} : vector<8x84xbf16>, vector<84x128xbf16>, vector<8x128xf32> -> vector<8x128xf32>
    %c0_105 = arith.constant 0 : index
    %c0_106 = arith.constant 0 : index
    %129 = vector.load %arg15[%c0_105, %c0_106] : memref<1x128xf32, #tpu.memory_space<vmem>>, vector<1x128xf32>
    %130 = vector.broadcast %129 : vector<1x128xf32> to vector<8x128xf32>
    %131 = arith.addf %128, %130 : vector<8x128xf32>
    %c0_107 = arith.constant 0 : index
    %c0_108 = arith.constant 0 : index
    %132 = vector.load %arg16[%c0_107, %c0_108] : memref<8x128xf32, #tpu.memory_space<vmem>>, vector<8x128xf32>
    tpu.vector_store %arg16[%c0_107, %c0_108], %131 {strides = array<i32>} : memref<8x128xf32, #tpu.memory_space<vmem>>, vector<8x128xf32>,
    return
  }
  func.func @transform_0(%arg0: i32) -> (i32, i32, i32) {
    %c0_i32 = arith.constant 0 : i32
    %c0_i32_0 = arith.constant 0 : i32
    %c0_i32_1 = arith.constant 0 : i32
    return %arg0, %c0_i32, %c0_i32_0 : i32, i32, i32
  }
  func.func @transform_1(%arg0: i32) -> (i32, i32, i32) {
    %c0_i32 = arith.constant 0 : i32
    %c0_i32_0 = arith.constant 0 : i32
    %c0_i32_1 = arith.constant 0 : i32
    %c0_i32_2 = arith.constant 0 : i32
    return %c0_i32, %c0_i32_0, %c0_i32_1 : i32, i32, i32
  }
  func.func @transform_2(%arg0: i32) -> (i32, i32) {
    %c0_i32 = arith.constant 0 : i32
    %c0_i32_0 = arith.constant 0 : i32
    %c0_i32_1 = arith.constant 0 : i32
    return %c0_i32, %c0_i32_0 : i32, i32
  }
  func.func @transform_3(%arg0: i32) -> (i32, i32) {
    %c0_i32 = arith.constant 0 : i32
    %c0_i32_0 = arith.constant 0 : i32
    %c0_i32_1 = arith.constant 0 : i32
    return %c0_i32, %c0_i32_0 : i32, i32
  }
  func.func @transform_4(%arg0: i32) -> (i32, i32, i32) {
    %c0_i32 = arith.constant 0 : i32
    %c0_i32_0 = arith.constant 0 : i32
    %c0_i32_1 = arith.constant 0 : i32
    %c0_i32_2 = arith.constant 0 : i32
    return %c0_i32, %c0_i32_0, %c0_i32_1 : i32, i32, i32
  }
  func.func @transform_5(%arg0: i32) -> (i32, i32) {
    %c0_i32 = arith.constant 0 : i32
    %c0_i32_0 = arith.constant 0 : i32
    %c0_i32_1 = arith.constant 0 : i32
    return %c0_i32, %c0_i32_0 : i32, i32
  }
  func.func @transform_6(%arg0: i32) -> (i32, i32, i32) {
    %c0_i32 = arith.constant 0 : i32
    %c0_i32_0 = arith.constant 0 : i32
    %c0_i32_1 = arith.constant 0 : i32
    %c0_i32_2 = arith.constant 0 : i32
    return %c0_i32, %c0_i32_0, %c0_i32_1 : i32, i32, i32
  }
  func.func @transform_7(%arg0: i32) -> (i32, i32) {
    %c0_i32 = arith.constant 0 : i32
    %c0_i32_0 = arith.constant 0 : i32
    %c0_i32_1 = arith.constant 0 : i32
    return %c0_i32, %c0_i32_0 : i32, i32
  }
  func.func @transform_8(%arg0: i32) -> (i32, i32) {
    %c0_i32 = arith.constant 0 : i32
    %c0_i32_0 = arith.constant 0 : i32
    %c0_i32_1 = arith.constant 0 : i32
    return %c0_i32, %c0_i32_0 : i32, i32
  }
  func.func @transform_9(%arg0: i32) -> (i32, i32, i32) {
    %c0_i32 = arith.constant 0 : i32
    %c0_i32_0 = arith.constant 0 : i32
    %c0_i32_1 = arith.constant 0 : i32
    %c0_i32_2 = arith.constant 0 : i32
    return %c0_i32, %c0_i32_0, %c0_i32_1 : i32, i32, i32
  }
  func.func @transform_10(%arg0: i32) -> (i32, i32) {
    %c0_i32 = arith.constant 0 : i32
    %c0_i32_0 = arith.constant 0 : i32
    %c0_i32_1 = arith.constant 0 : i32
    return %c0_i32, %c0_i32_0 : i32, i32
  }
  func.func @transform_11(%arg0: i32) -> (i32, i32, i32) {
    %c0_i32 = arith.constant 0 : i32
    %c0_i32_0 = arith.constant 0 : i32
    %c0_i32_1 = arith.constant 0 : i32
    %c0_i32_2 = arith.constant 0 : i32
    return %c0_i32, %c0_i32_0, %c0_i32_1 : i32, i32, i32
  }
  func.func @transform_12(%arg0: i32) -> (i32, i32) {
    %c0_i32 = arith.constant 0 : i32
    %c0_i32_0 = arith.constant 0 : i32
    %c0_i32_1 = arith.constant 0 : i32
    return %c0_i32, %c0_i32_0 : i32, i32
  }
  func.func @transform_13(%arg0: i32) -> (i32, i32) {
    %c0_i32 = arith.constant 0 : i32
    %c0_i32_0 = arith.constant 0 : i32
    %c0_i32_1 = arith.constant 0 : i32
    return %c0_i32, %c0_i32_0 : i32, i32
  }
  func.func @transform_14(%arg0: i32) -> (i32, i32) {
    %c0_i32 = arith.constant 0 : i32
    %c0_i32_0 = arith.constant 0 : i32
    %c0_i32_1 = arith.constant 0 : i32
    return %c0_i32, %c0_i32_0 : i32, i32
  }
  func.func @transform_15(%arg0: i32) -> (i32, i32) {
    %c0_i32 = arith.constant 0 : i32
    %c0_i32_0 = arith.constant 0 : i32
    return %arg0, %c0_i32 : i32, i32
  }
}

</mosaic_0001>

<bundles_post_ra>
// kernel: tile.13
= control target key start
LH: loop header
LB: loop body
LE: loop exit
PB: predicated region body
PF: predicated region fallthrough
CT: control target
= control target key end

     0   :  { %s34_s0 = inlined_call_operand.vmem [shape: f32[6], index: 0, kind: input, shape index: {}]   ;;  %s35_s1 = inlined_call_operand.vmem [shape: f32[24,6], index: 1, kind: output, shape index: {}]  }
   0x1   :  { %v4_v0 = vld [vmem:[%s34_s0] ss:$0 sm:$0xff] }
   0x2   :  { %5 = vst [vmem:[%s35_s1] sm:$0xff] %v4_v0  ;;  %10 = vst [vmem:[%s35_s1 + $0x8] sm:$0xff] %v4_v0 }
   0x3   :  { %11 = vst [vmem:[%s35_s1 + $0x10] sm:$0xff] %v4_v0 }

// kernel: tile.14
= control target key start
LH: loop header
LB: loop body
LE: loop exit
PB: predicated region body
PF: predicated region fallthrough
CT: control target
= control target key end

     0   :  { %vm9_vm0 = vcmask 15360   ;;  %s211_s12 = smov 126   ;;  %s212_s13 = smov 114   ;;  %vm3_vm1 = vcmask 48128   ;;  %vm13_vm2 = vcmask 31744   ;;  %vm16_vm3 = vcmask 1048560   ;;  %s325_s0 = inlined_call_operand.vmem [shape: f32[24,6], index: 0, kind: input, shape index: {}]   ;;  %s326_s1 = inlined_call_operand.vmem [shape: f32[1,144], index: 1, kind: output, shape index: {}]  }
   0x1   :  { %v163_v0 = vld [vmem:[%s325_s0 + $0x15] sm:$0x1]   ;;  %v166_v3 = vld [vmem:[%s325_s0 + $0x13] sm:$0x1]   ;;  %v165_v4 = vld [vmem:[%s325_s0 + $0x14] sm:$0x1]  }
   0x2   :  { %v164_v1 = vld [vmem:[%s325_s0 + $0x15] sm:$0x1]   ;;  %26 = vrot.lane.b32.xlu1 %v166_v3, %s212_s13  ;;  %v167_v5 = vld [vmem:[%s325_s0 + $0x12] sm:$0x1]   ;;  %s213_s18 = smov 120   ;;  %s214_s19 = smov 108  }
   0x3   :  { %v10_v2 = vsel %vm9_vm0, %v164_v1, %v163_v0  ;;  %v168_v6 = vld [vmem:[%s325_s0 + $0x11] sm:$0x1]   ;;  %v169_v7 = vld [vmem:[%s325_s0 + $0x10] sm:$0x1]   ;;  %s215_s24 = smov 102   ;;  %s216_s25 = smov 96  }
   0x4   :  { %11 = vrot.lane.b32.xlu0 %v10_v2, %s211_s12  ;;  %v170_v8 = vld [vmem:[%s325_s0 + $0xf] sm:$0x1]   ;;  %v171_v9 = vld [vmem:[%s325_s0 + $0xe] sm:$0x1]   ;;  %v2_v10 = vld [vmem:[%s325_s0] sm:$0x1]  }
   0x5   :  { %4 = vst.msk [vmem:[#allocation0] sm:$0x1] %vm3_vm1, %v2_v10   ;;  %s217_s3 = smov 90   ;;  %s218_s4 = smov 84   ;;  %v172_v11 = vld [vmem:[%s325_s0 + $0xd] sm:$0x1]  }
   0x6   :  { %32 = vrot.lane.b32.xlu1 %v167_v5, %s214_s19  ;;  %v173_v12 = vld [vmem:[%s325_s0 + $0xc] sm:$0x1]   ;;  %s219_s9 = smov 78   ;;  %s220_s10 = smov 72   ;;  %v174_v13 = vld [vmem:[%s325_s0 + $0xb] sm:$0x1]  }
   0x7   :  { %v175_v14 = vld [vmem:[%s325_s0 + $0xa] sm:$0x1]   ;;  %s221_s15 = smov 66   ;;  %s222_s16 = smov 60   ;;  %v176_v15 = vld [vmem:[%s325_s0 + $0x9] sm:$0x1]  }
   0x8   :  { %20 = vrot.lane.b32.xlu0 %v165_v4, %s213_s18  ;;  %v177_v16 = vld [vmem:[%s325_s0 + $0x8] sm:$0x1]   ;;  %s223_s21 = smov 54   ;;  %s224_s22 = smov 48   ;;  %v178_v17 = vld [vmem:[%s325_s0 + $0x7] sm:$0x1]  }
   0x9   :  { %v179_v18 = vld [vmem:[%s325_s0 + $0x6] sm:$0x1]   ;;  %s225_s27 = smov 42   ;;  %s226_s28 = smov 36   ;;  %v180_v19 = vld [vmem:[%s325_s0 + $0x5] sm:$0x1]  }
   0xa   :  { %44 = vrot.lane.b32.xlu1 %v169_v7, %s216_s25  ;;  %v181_v20 = vld [vmem:[%s325_s0 + $0x4] sm:$0x1]   ;;  %s228_s5 = smov 24   ;;  %v182_v21 = vld [vmem:[%s325_s0 + $0x3] sm:$0x1]   ;;  %s230_s11 = smov 12  }
   0xb   :  { %v183_v22 = vld [vmem:[%s325_s0 + $0x2] sm:$0x1]   ;;  %v184_v23 = vld [vmem:[%s325_s0 + $0x17] sm:$0x1]   ;;  %v185_v24 = vld [vmem:[%s325_s0 + $0x1] sm:$0x1]  }
   0xc   :  { %38 = vrot.lane.b32.xlu0 %v168_v6, %s215_s24  ;;  %s232_s17 = smov 6   ;;  %v186_v25 = vld [vmem:[%s325_s0 + $0x16] sm:$0x1]   ;;  %s233_s0 = smov 4   ;;  %vm22_vm4 = vcmask 1032128   ;;  %vm28_vm5 = vcmask 982928  }
   0xd   :  { %vm34_vm6 = vcmask 933728   ;;  %vm40_vm7 = vcmask 884528   ;;  %vm46_vm8 = vcmask 835328   ;;  %vm52_vm9 = vcmask 786128  }
   0xe   :  { %56 = vrot.lane.b32.xlu1 %v171_v9, %s218_s4  ;;  %s227_s4 = smov 30   ;;  %vm58_vm10 = vcmask 736928   ;;  %vm64_vm11 = vcmask 687728   ;;  %vm70_vm12 = vcmask 638528   ;;  %vm76_vm13 = vcmask 589328  }
   0xf   :  { %vm82_vm14 = vcmask 540128   ;;  %vm88_vm15 = vcmask 490928   ;;  %vm94_vm0 = vcmask 441728   ;;  %vm100_vm1 = vcmask 392528  }
  0x10   :  { %50 = vrot.lane.b32.xlu0 %v170_v8, %s217_s3 }
  0x12   :  { %68 = vrot.lane.b32.xlu1 %v173_v12, %s220_s10  ;;  %s229_s10 = smov 18  }
  0x14   :  { %62 = vrot.lane.b32.xlu0 %v172_v11, %s219_s9 }
  0x16   :  { %80 = vrot.lane.b32.xlu1 %v175_v14, %s222_s16  ;;  %s231_s16 = smov 10  }
  0x18   :  { %74 = vrot.lane.b32.xlu0 %v174_v13, %s221_s15 }
  0x1a   :  { %92 = vrot.lane.b32.xlu1 %v177_v16, %s224_s22 }
  0x1c   :  { %86 = vrot.lane.b32.xlu0 %v176_v15, %s223_s21 }
  0x1e   :  { %104 = vrot.lane.b32.xlu1 %v179_v18, %s226_s28 }
  0x20   :  { %98 = vrot.lane.b32.xlu0 %v178_v17, %s225_s27 }
  0x22   :  { %116 = vrot.lane.b32.xlu1 %v181_v20, %s228_s5 }
  0x24   :  { %110 = vrot.lane.b32.xlu0 %v180_v19, %s227_s4 }
  0x26   :  { %128 = vrot.lane.b32.xlu1 %v183_v22, %s230_s11 }
  0x28   :  { %122 = vrot.lane.b32.xlu0 %v182_v21, %s229_s10 }
  0x2a   :  { %141 = vrot.lane.b32.xlu1 %v185_v24, %s232_s17 }
  0x2c   :  { %134 = vrot.lane.b32.xlu0 %v184_v23, %s231_s16 }
  0x30   :  { %147 = vrot.lane.b32.xlu0 %v186_v25, %s233_s0 }
  0x74   :  { %v27_v27 = vpop.permute.xlu1 %26  }
  0x76   :  { %v12_v26 = vpop.permute.xlu0 %11  }
  0x77   :  { %15 = vst.msk [vmem:[#allocation0 + $0x8] sm:$0x1] %vm13_vm2, %v12_v26   ;;  %vm106_vm2 = vcmask 343328  }
  0x78   :  { %17 = vst.msk [vmem:[#allocation0] sm:$0x1] %vm16_vm3, %v12_v26   ;;  %v33_v29 = vpop.permute.xlu1 %32   ;;  %vm112_vm3 = vcmask 294128  }
  0x7a   :  { %v21_v28 = vpop.permute.xlu0 %20  }
  0x7b   :  { %23 = vst.msk [vmem:[#allocation0] sm:$0x1] %vm22_vm4, %v21_v28   ;;  %vm118_vm4 = vcmask 244928  }
  0x7c   :  { %29 = vst.msk [vmem:[#allocation0] sm:$0x1] %vm28_vm5, %v27_v27   ;;  %v45_v31 = vpop.permute.xlu1 %44   ;;  %vm124_vm5 = vcmask 195728  }
  0x7d   :  { %35 = vst.msk [vmem:[#allocation0] sm:$0x1] %vm34_vm6, %v33_v29   ;;  %vm130_vm6 = vcmask 146528  }
  0x7e   :  { %v39_v30 = vpop.permute.xlu0 %38  }
  0x7f   :  { %41 = vst.msk [vmem:[#allocation0] sm:$0x1] %vm40_vm7, %v39_v30   ;;  %vm136_vm7 = vcmask 130128  }
  0x80   :  { %47 = vst.msk [vmem:[#allocation0] sm:$0x1] %vm46_vm8, %v45_v31   ;;  %v57_v33 = vpop.permute.xlu1 %56   ;;  %vm143_vm8 = vcmask 97328  }
  0x82   :  { %v51_v32 = vpop.permute.xlu0 %50  }
  0x83   :  { %53 = vst.msk [vmem:[#allocation0] sm:$0x1] %vm52_vm9, %v51_v32   ;;  %vm149_vm9 = vcmask 80928  }
  0x84   :  { %59 = vst.msk [vmem:[#allocation0] sm:$0x1] %vm58_vm10, %v57_v33   ;;  %v69_v35 = vpop.permute.xlu1 %68  }
  0x86   :  { %v63_v34 = vpop.permute.xlu0 %62  }
  0x87   :  { %65 = vst.msk [vmem:[#allocation0] sm:$0x1] %vm64_vm11, %v63_v34  }
  0x88   :  { %71 = vst.msk [vmem:[#allocation0] sm:$0x1] %vm70_vm12, %v69_v35   ;;  %v81_v37 = vpop.permute.xlu1 %80  }
  0x8a   :  { %v75_v36 = vpop.permute.xlu0 %74  }
  0x8b   :  { %77 = vst.msk [vmem:[#allocation0] sm:$0x1] %vm76_vm13, %v75_v36  }
  0x8c   :  { %83 = vst.msk [vmem:[#allocation0] sm:$0x1] %vm82_vm14, %v81_v37   ;;  %v93_v39 = vpop.permute.xlu1 %92  }
  0x8e   :  { %v87_v38 = vpop.permute.xlu0 %86  }
  0x8f   :  { %89 = vst.msk [vmem:[#allocation0] sm:$0x1] %vm88_vm15, %v87_v38  }
  0x90   :  { %95 = vst.msk [vmem:[#allocation0] sm:$0x1] %vm94_vm0, %v93_v39   ;;  %v105_v41 = vpop.permute.xlu1 %104  }
  0x92   :  { %v99_v40 = vpop.permute.xlu0 %98  }
  0x93   :  { %101 = vst.msk [vmem:[#allocation0] sm:$0x1] %vm100_vm1, %v99_v40  }
  0x94   :  { %107 = vst.msk [vmem:[#allocation0] sm:$0x1] %vm106_vm2, %v105_v41   ;;  %v117_v43 = vpop.permute.xlu1 %116  }
  0x96   :  { %v111_v42 = vpop.permute.xlu0 %110  }
  0x97   :  { %113 = vst.msk [vmem:[#allocation0] sm:$0x1] %vm112_vm3, %v111_v42  }
  0x98   :  { %119 = vst.msk [vmem:[#allocation0] sm:$0x1] %vm118_vm4, %v117_v43   ;;  %v129_v45 = vpop.permute.xlu1 %128  }
  0x9a   :  { %v123_v44 = vpop.permute.xlu0 %122  }
  0x9b   :  { %125 = vst.msk [vmem:[#allocation0] sm:$0x1] %vm124_vm5, %v123_v44  }
  0x9c   :  { %131 = vst.msk [vmem:[#allocation0] sm:$0x1] %vm130_vm6, %v129_v45   ;;  %v142_v47 = vpop.permute.xlu1 %141  }
  0x9d   :  { %144 = vst.msk [vmem:[#allocation0] sm:$0x1] %vm143_vm8, %v142_v47  }
  0x9e   :  { %v135_v46 = vpop.permute.xlu0 %134  }
  0x9f   :  { %138 = vst.msk [vmem:[#allocation0 + $0x8] sm:$0x1] %vm136_vm7, %v135_v46  }
  0xa2   :  { %v148_v48 = vpop.permute.xlu0 %147  }
  0xa3   :  { %151 = vst.msk [vmem:[#allocation0 + $0x8] sm:$0x1] %vm149_vm9, %v148_v48  }
  0xa4   :  { %v155_v49 = vld [vmem:[#allocation0] sm:$0x1] }
  0xa5   :  { %157 = vst [vmem:[%s326_s1] sm:$0x1] %v155_v49 }
  0xaa   :  { %v159_v50 = vld [vmem:[#allocation0 + $0x8] sm:$0x1] }
  0xab   :  { %187 = vst [vmem:[%s326_s1 + $0x1] sm:$0x1] %v159_v50 }

// kernel: tile.18
= control target key start
LH: loop header
LB: loop body
LE: loop exit
PB: predicated region body
PF: predicated region fallthrough
CT: control target
= control target key end

     0   :  { %s22_s0 = inlined_call_operand.vmem [shape: f32[16], index: 0, kind: input, shape index: {}]   ;;  %s23_s1 = inlined_call_operand.vmem [shape: f32[8,16], index: 1, kind: output, shape index: {}]  }
   0x1   :  { %v4_v0 = vld [vmem:[%s22_s0] ss:$0 sm:$0xff] }
   0x2   :  { %5 = vst [vmem:[%s23_s1] sm:$0xff] %v4_v0 }

// kernel: tile.19
= control target key start
LH: loop header
LB: loop body
LE: loop exit
PB: predicated region body
PF: predicated region fallthrough
CT: control target
= control target key end

     0   :  { %s67_s10 = smov 112   ;;  %s68_s11 = smov 80   ;;  %vm3_vm0 = vcmask 130048   ;;  %vm9_vm1 = vcmask 1048448   ;;  %vm15_vm2 = vcmask 917248   ;;  %vm21_vm3 = vcmask 786048   ;;  %s111_s0 = inlined_call_operand.vmem [shape: f32[8,16], index: 0, kind: input, shape index: {}]   ;;  %s112_s1 = inlined_call_operand.vmem [shape: f32[1,128], index: 1, kind: output, shape index: {}]  }
   0x1   :  { %v53_v0 = vld [vmem:[%s111_s0 + $0x7] sm:$0x1]   ;;  %v55_v1 = vld [vmem:[%s111_s0 + $0x5] sm:$0x1]   ;;  %v54_v2 = vld [vmem:[%s111_s0 + $0x6] sm:$0x1]  }
   0x2   :  { %7 = vrot.lane.b32.xlu0 %v53_v0, %s67_s10  ;;  %19 = vrot.lane.b32.xlu1 %v55_v1, %s68_s11  ;;  %v56_v3 = vld [vmem:[%s111_s0 + $0x4] sm:$0x1]   ;;  %v2_v4 = vld [vmem:[%s111_s0] sm:$0x1]   ;;  %s69_s18 = smov 96   ;;  %s70_s19 = smov 64  }
   0x3   :  { %4 = vst.msk [vmem:[#allocation0] sm:$0x1] %vm3_vm0, %v2_v4   ;;  %v57_v5 = vld [vmem:[%s111_s0 + $0x3] sm:$0x1]   ;;  %v58_v6 = vld [vmem:[%s111_s0 + $0x2] sm:$0x1]  }
   0x4   :  { %s71_s24 = smov 48   ;;  %s72_s25 = smov 32   ;;  %v59_v7 = vld [vmem:[%s111_s0 + $0x1] sm:$0x1]   ;;  %vm27_vm4 = vcmask 654848   ;;  %vm33_vm5 = vcmask 523648  }
   0x5   :  { %s73_s0 = smov 16   ;;  %vm39_vm6 = vcmask 392448   ;;  %vm45_vm7 = vcmask 261248  }
   0x6   :  { %13 = vrot.lane.b32.xlu0 %v54_v2, %s69_s18  ;;  %25 = vrot.lane.b32.xlu1 %v56_v3, %s70_s19 }
   0xa   :  { %31 = vrot.lane.b32.xlu0 %v57_v5, %s71_s24  ;;  %37 = vrot.lane.b32.xlu1 %v58_v6, %s72_s25 }
   0xe   :  { %43 = vrot.lane.b32.xlu0 %v59_v7, %s73_s0 }
  0x74   :  { %v8_v8 = vpop.permute.xlu0 %7   ;;  %v20_v9 = vpop.permute.xlu1 %19  }
  0x75   :  { %10 = vst.msk [vmem:[#allocation0] sm:$0x1] %vm9_vm1, %v8_v8  }
  0x78   :  { %v14_v10 = vpop.permute.xlu0 %13   ;;  %v26_v11 = vpop.permute.xlu1 %25  }
  0x79   :  { %16 = vst.msk [vmem:[#allocation0] sm:$0x1] %vm15_vm2, %v14_v10  }
  0x7a   :  { %22 = vst.msk [vmem:[#allocation0] sm:$0x1] %vm21_vm3, %v20_v9  }
  0x7b   :  { %28 = vst.msk [vmem:[#allocation0] sm:$0x1] %vm27_vm4, %v26_v11  }
  0x7c   :  { %v32_v12 = vpop.permute.xlu0 %31   ;;  %v38_v13 = vpop.permute.xlu1 %37  }
  0x7d   :  { %34 = vst.msk [vmem:[#allocation0] sm:$0x1] %vm33_vm5, %v32_v12  }
  0x7e   :  { %40 = vst.msk [vmem:[#allocation0] sm:$0x1] %vm39_vm6, %v38_v13  }
  0x80   :  { %v44_v14 = vpop.permute.xlu0 %43  }
  0x81   :  { %46 = vst.msk [vmem:[#allocation0] sm:$0x1] %vm45_vm7, %v44_v14  }
  0x88   :  { %v50_v15 = vld [vmem:[#allocation0] sm:$0x1] }
  0x89   :  { %52 = vst [vmem:[%s112_s1] sm:$0x1] %v50_v15 }

// kernel: mycnn_forward.1
= control target key start
LH: loop header
LB: loop body
LE: loop exit
PB: predicated region body
PF: predicated region fallthrough
CT: control target
= control target key end

     0   :  { %v6305_v1 = vmov 0   ;;  %vm87_vm0 = vsmask.f32 3328  ;;  %vm458_vm1 = vcmask 1045504   ;;  %vm88_vm2 = vsmask.f32 7440  ;;  %s8024_s1 = inlined_call_operand.vmem [shape: bf16[5,28,144], index: 1, kind: input, shape index: {}]   ;;  %s8025_s0 = inlined_call_operand.vmem [shape: bf16[8,28,28], index: 0, kind: input, shape index: {}]   ;;  %s8026_s3 = inlined_call_operand.vmem [shape: bf16[192,192], index: 3, kind: input, shape index: {}]   ;;  %s8027_s2 = inlined_call_operand.vmem [shape: f32[1,144], index: 2, kind: input, shape index: {}]   ;;  %s8028_s4 = inlined_call_operand.vmem [shape: bf16[2,144,72], index: 4, kind: input, shape index: {}]   ;;  %s8029_s5 = inlined_call_operand.vmem [shape: bf16[320,96], index: 5, kind: input, shape index: {}]   ;;  %s8030_s6 = inlined_call_operand.vmem [shape: bf16[5,72,128], index: 6, kind: input, shape index: {}]   ;;  %s8031_s8 = inlined_call_operand.vmem [shape: bf16[64,64], index: 8, kind: input, shape index: {}]   ;;  %s8032_s9 = inlined_call_operand.vmem [shape: bf16[2,128,64], index: 9, kind: input, shape index: {}]   ;;  %s8033_s7 = inlined_call_operand.vmem [shape: f32[1,128], index: 7, kind: input, shape index: {}]   ;;  %s8034_s10 = inlined_call_operand.vmem [shape: bf16[32,32], index: 10, kind: input, shape index: {}]   ;;  %s8035_s11 = inlined_call_operand.vmem [shape: bf16[4,64,84], index: 11, kind: input, shape index: {}]   ;;  %s8036_s13 = inlined_call_operand.vmem [shape: bf16[84,128], index: 13, kind: input, shape index: {}]   ;;  %s8037_s12 = inlined_call_operand.vmem [shape: f32[1,84], index: 12, kind: input, shape index: {}]   ;;  %s8038_s14 = inlined_call_operand.vmem [shape: f32[1,128], index: 14, kind: input, shape index: {}]   ;;  %s8039_s15 = inlined_call_operand.vmem [shape: f32[8,128], index: 15, kind: output, shape index: {}]  }
   0x1   :  { %v6104_v0 = vld [vmem:[%s8024_s1 + $0x24] ss:$8 sps:$4 sm:$0xff]   ;;  %497 = vmatprep.mubr.bf16.mxu0 %v6305_v1  ;;  %v6106_v2 = vld [vmem:[%s8024_s1 + $0x20] ss:$8 sps:$4 sm:$0xff]   ;;  %v6429_v19 = vld [vmem:[%s8025_s0 + $0x10] sm:$0xf] }
   0x2   :  { %465 = vmatprep.subr.bf16.mxu0 %v6104_v0  ;;  %v6107_v3 = vld [vmem:[%s8024_s1 + $0x34] ss:$8 sps:$4 sm:$0x3f]   ;;  %v6109_v4 = vld [vmem:[%s8024_s1 + $0x30] ss:$8 sps:$4 sm:$0x3f]   ;;  %vm6446_vm3 = vmor %vm87_vm0, %vm88_vm2 }
   0x3   :  { %466 = vmatpush1.bf16.msra.mxu0 %v6106_v2  ;;  %v6404_v5 = vld [vmem:[%s8025_s0] sm:$0xf]  ;;  %v6409_v6 = vld [vmem:[%s8025_s0 + $0x4] sm:$0xf]  ;;  %v6414_v7 = vld [vmem:[%s8025_s0 + $0x8] sm:$0xf] }
   0x4   :  { %4988 = vmatprep.subr.msk.bf16.mxu0 %vm458_vm1, %v6107_v3  ;;  %v460_v8 = vsel %vm458_vm1, %v6109_v4, 0  ;;  %v91_v9 = vshrl.u32 %v6404_v5, 16  ;;  %v94_v10 = vshll.u32 %v6404_v5, 16  ;;  %v100_v11 = vshll.u32 %v6409_v6, 16  ;;  %v6112_v14 = vld [vmem:[%s8024_s1 + $0x4] ss:$8 sps:$4 sm:$0xff]  }
   0x5   :  { %v104_v12 = vshrl.u32 %v6409_v6, 16  ;;  %v110_v13 = vshll.u32 %v6414_v7, 16  ;;  %v6434_v24 = vld [vmem:[%s8025_s0 + $0x14] sm:$0xf]  ;;  %v6439_v26 = vld [vmem:[%s8025_s0 + $0xc] sm:$0x1] }
   0x6   :  { %v93_v15 = vrot.slane %v91_v9, 4  ;;  %v96_v16 = vrot.slane %v94_v10, 5  ;;  %v102_v17 = vrot.slane %v100_v11, 5  ;;  %v1321_v18 = vrot.slane %v100_v11, 6  ;;  %v6457_v39 = vld [vmem:[%s8025_s0 + $0x18] sm:$0xf] }
   0x7   :  { %468 = vmatpush1.bf16.msra.mxu0 %v460_v8  ;;  %v106_v20 = vrot.slane %v104_v12, 4  ;;  %v112_v21 = vrot.slane %v110_v13, 5  ;;  %v1320_v22 = vrot.slane %v104_v12, 5  ;;  %v1326_v23 = vrot.slane %v110_v13, 6  ;;  %v6110_v44 = vld [vmem:[%s8024_s1] ss:$8 sps:$4 sm:$0xff]  }
   0x8   :  { %v97_v25 = vor.u32 %v96_v16, %v93_v15  ;;  %738 = vmatprep.subr.bf16.mxu0 %v6112_v14  ;;  %v114_v27 = vshrl.u32 %v6414_v7, 16  ;;  %v125_v28 = vshrl.u32 %v6429_v19, 16  ;;  %v128_v29 = vshll.u32 %v6429_v19, 16  ;;  %v6474_v52 = vld [vmem:[%s8025_s0 + $0x20] sm:$0xf] }
   0x9   :  { %v107_v31 = vor.u32 %v106_v20, %v102_v17  ;;  %v6450_v32 = vor.u32 %v1321_v18, %v1320_v22  ;;  %v120_v33 = vshll.u32 %v6439_v26, 16  ;;  %v134_v34 = vshll.u32 %v6434_v24, 16  ;;  %v6481_v57 = vld [vmem:[%s8025_s0 + $0x1c] sm:$0x1]  ;;  %v6492_v61 = vld [vmem:[%s8025_s0 + $0x24] sm:$0xf] }
   0xa   :  { %v98_v35 = vrot.slane %v97_v25, 4  ;;  %v116_v36 = vrot.slane %v114_v27, 4  ;;  %v127_v37 = vrot.slane %v125_v28, 4  ;;  %v130_v38 = vrot.slane %v128_v29, 5  ;;  %v6508_v11 = vld [vmem:[%s8025_s0 + $0x28] sm:$0xf] }
   0xb   :  { %v108_v40 = vrot.slane %v107_v31, 4  ;;  %vm421_vm4 = vcmask 228352   ;;  %v122_v41 = vrot.slane %v120_v33, 5  ;;  %v136_v42 = vrot.slane %v134_v34, 5  ;;  %v6520_v22 = vld [vmem:[%s8025_s0 + $0x30] sm:$0xf] }
   0xc   :  { %v103_v43 = vsel %vm6446_vm3, %v98_v35, %v102_v17  ;;  %v117_v45 = vor.u32 %v116_v36, %v112_v21  ;;  %v131_v46 = vor.u32 %v130_v38, %v127_v37  ;;  %v1325_v47 = vrot.slane %v114_v27, 5  ;;  %v6113_v16 = vld [vmem:[%s8024_s1 + $0x14] ss:$8 sps:$4 sm:$0x3f]   ;;  %v6541_v37 = vld [vmem:[%s8025_s0 + $0x2c] sm:$0x1] }
   0xd   :  { %v113_v48 = vsel %vm6446_vm3, %v108_v40, %v112_v21  ;;  %v138_v49 = vshrl.u32 %v6434_v24, 16  ;;  %v144_v50 = vshll.u32 %v6457_v39, 16  ;;  %v148_v51 = vshrl.u32 %v6457_v39, 16  ;;  %v6536_v36 = vld [vmem:[%s8025_s0 + $0x34] sm:$0xf] }
   0xe   :  { %v4972_v53 = vcombine.low %v103_v43, %v113_v48  ;;  %v118_v54 = vrot.slane %v117_v45, 4  ;;  %v132_v55 = vrot.slane %v131_v46, 4  ;;  %v6476_v56 = vor.u32 %v1326_v23, %v1325_v47  ;;  %v6550_v43 = vld [vmem:[%s8025_s0 + $0x38] sm:$0xf] }
   0xf   :  { %v140_v58 = vrot.slane %v138_v49, 4  ;;  %v146_v59 = vrot.slane %v144_v50, 5  ;;  %v150_v60 = vrot.slane %v148_v51, 4  ;;  %v159_v63 = vshrl.u32 %v6474_v52, 16 }
  0x10   :  { %4989 = vmatmul.mubr.msk.bf16.vlgmr.msra.gmra.mrb[0].mxu0 %vm421_vm4, %v4972_v53  ;;  %v123_v62 = vsel %vm6446_vm3, %v118_v54, %v122_v41  ;;  %v162_v0 = vshll.u32 %v6474_v52, 16  ;;  %v137_v2 = vsel %vm6446_vm3, %v132_v55, %v136_v42  ;;  %v154_v8 = vshll.u32 %v6481_v57, 16  ;;  %v6115_v47 = vld [vmem:[%s8024_s1 + $0x10] ss:$8 sps:$4 sm:$0x3f]  }
  0x11   :  { %739 = vmatpush1.bf16.msra.mxu0 %v6110_v44  ;;  %507 = vmatprep.mubr.bf16.mxu0 %v6305_v1  ;;  %v141_v3 = vor.u32 %v140_v58, %v136_v42  ;;  %v151_v4 = vor.u32 %v150_v60, %v146_v59  ;;  %v168_v9 = vshll.u32 %v6492_v61, 16  ;;  %v172_v10 = vshrl.u32 %v6492_v61, 16  ;;  %v6119_v60 = vld [vmem:[%s8024_s1 + $0x44] ss:$8 sps:$4 sm:$0xff]  }
  0x12   :  { %v4973_v12 = vcombine.low %v123_v62, %v137_v2  ;;  %v161_v14 = vrot.slane %v159_v63, 4  ;;  %v164_v15 = vrot.slane %v162_v0, 5  ;;  %v156_v18 = vrot.slane %v154_v8, 5  ;;  %5017 = vmatprep.subr.msk.bf16.mxu0 %vm458_vm1, %v6113_v16  ;;  %v6128_v30 = vld [vmem:[%s8024_s1 + $0x50] ss:$8 sps:$4 sm:$0x3f]  }
  0x13   :  { %v142_v13 = vrot.slane %v141_v3, 4  ;;  %v152_v17 = vrot.slane %v151_v4, 4  ;;  %v170_v20 = vrot.slane %v168_v9, 5  ;;  %v174_v21 = vrot.slane %v172_v10, 4 }
  0x14   :  { %v182_v23 = vshrl.u32 %v6508_v11, 16  ;;  %v165_v27 = vor.u32 %v164_v15, %v161_v14  ;;  %v178_v28 = vshll.u32 %v6508_v11, 16  ;;  %v193_v33 = vshrl.u32 %v6520_v22, 16 }
  0x15   :  { %v147_v25 = vsel %vm6446_vm3, %v142_v13, %v146_v59  ;;  %v157_v29 = vsel %vm6446_vm3, %v152_v17, %v156_v18  ;;  %v175_v31 = vor.u32 %v174_v21, %v170_v20  ;;  %v196_v35 = vshll.u32 %v6520_v22, 16  ;;  %v6586_v18 = vld [vmem:[%s8025_s0 + $0x40] sm:$0xf] }
  0x16   :  { %v184_v38 = vrot.slane %v182_v23, 4  ;;  %v4974_v40 = vcombine.low %v147_v25, %v157_v29  ;;  %v166_v41 = vrot.slane %v165_v27, 4  ;;  %v180_v42 = vrot.slane %v178_v28, 5 }
  0x17   :  { %v176_v44 = vrot.slane %v175_v31, 4  ;;  %v195_v45 = vrot.slane %v193_v33, 4  ;;  %v198_v46 = vrot.slane %v196_v35, 5  ;;  %v188_v53 = vshll.u32 %v6541_v37, 16 }
  0x18   :  { %4990 = vmatmul.mubr.msk.bf16.gmra.mrb[4].mxu0 %vm421_vm4, %v4973_v12  ;;  %v185_v48 = vor.u32 %v184_v38, %v180_v42  ;;  %v202_v54 = vshll.u32 %v6536_v36, 16  ;;  %v171_v55 = vsel %vm6446_vm3, %v166_v41, %v170_v20  ;;  %v206_v58 = vshrl.u32 %v6536_v36, 16  ;;  %v6573_v12 = vld [vmem:[%s8025_s0 + $0x3c] sm:$0x1]  ;;  %v6591_v20 = vld [vmem:[%s8025_s0 + $0x44] sm:$0xf] }
  0x19   :  { %517 = vmatprep.mubr.bf16.mxu0 %v6305_v1  ;;  %v8052_v59 = vshll.u32 %v6550_v43, 16  ;;  %v181_v62 = vsel %vm6446_vm3, %v176_v44, %v180_v42  ;;  %v199_v63 = vor.u32 %v198_v46, %v195_v45  ;;  %v8053_v0 = vshrl.u32 %v6550_v43, 16 }
  0x1a   :  { %v733_v2 = vsel %vm458_vm1, %v6115_v47, 0  ;;  %v186_v3 = vrot.slane %v185_v48, 4  ;;  %v190_v4 = vrot.slane %v188_v53, 5  ;;  %v4975_v8 = vcombine.low %v171_v55, %v181_v62  ;;  %v6607_v48 = vld [vmem:[%s8025_s0 + $0x48] sm:$0xf] }
  0x1b   :  { %741 = vmatpush1.bf16.msra.mxu0 %v733_v2  ;;  %v208_v13 = vrot.slane %v206_v58, 4  ;;  %v200_v14 = vrot.slane %v199_v63, 4  ;;  %v204_v15 = vrot.slane %v202_v54, 5  ;;  %v214_v16 = vrot.slane %v8052_v59, 5 }
  0x1c   :  { %1099 = vmatprep.subr.bf16.mxu0 %v6119_v60  ;;  %v218_v17 = vrot.slane %v8053_v0, 4  ;;  %v191_v21 = vsel %vm6446_vm3, %v186_v3, %v190_v4  ;;  %v222_v27 = vshll.u32 %v6573_v12, 16  ;;  %v227_v29 = vshrl.u32 %v6586_v18, 16  ;;  %v6616_v60 = vld [vmem:[%s8025_s0 + $0x50] sm:$0xf] }
  0x1d   :  { %v209_v25 = vor.u32 %v208_v13, %v204_v15  ;;  %v230_v31 = vshll.u32 %v6586_v18, 16  ;;  %v205_v33 = vsel %vm6446_vm3, %v200_v14, %v204_v15  ;;  %v8046_v38 = vshll.u32 %v6591_v20, 16 }
  0x1e   :  { %v219_v35 = vor.u32 %v218_v17, %v214_v16  ;;  %v4976_v41 = vcombine.low %v191_v21, %v205_v33  ;;  %v229_v44 = vrot.slane %v227_v29, 4  ;;  %v224_v47 = vrot.slane %v222_v27, 5  ;;  %v6640_v29 = vld [vmem:[%s8025_s0 + $0x54] sm:$0xf] }
  0x1f   :  { %v210_v42 = vrot.slane %v209_v25, 4  ;;  %v232_v45 = vrot.slane %v230_v31, 5  ;;  %v238_v53 = vrot.slane %v8046_v38, 5  ;;  %v8044_v2 = vshll.u32 %v6607_v48, 16 }
  0x20   :  { %4991 = vmatmul.mubr.msk.bf16.gmra.mrb[8].mxu0 %vm421_vm4, %v4974_v40  ;;  %v8051_v40 = vshrl.u32 %v6591_v20, 16  ;;  %v220_v46 = vrot.slane %v219_v35, 4  ;;  %v8045_v3 = vshrl.u32 %v6607_v48, 16  ;;  %v261_v13 = vshrl.u32 %v6616_v60, 16  ;;  %v6645_v35 = vld [vmem:[%s8025_s0 + $0x58] sm:$0xf] }
  0x21   :  { %527 = vmatprep.mubr.bf16.mxu0 %v6305_v1  ;;  %v215_v62 = vsel %vm6446_vm3, %v210_v42, %v214_v16  ;;  %v233_v63 = vor.u32 %v232_v45, %v229_v44  ;;  %v264_v14 = vshll.u32 %v6616_v60, 16  ;;  %v6631_v16 = vld [vmem:[%s8025_s0 + $0x4c] sm:$0x1]  ;;  %v248_v27 = vrot.slane %v8044_v2, 5 }
  0x22   :  { %v242_v55 = vrot.slane %v8051_v40, 4  ;;  %v225_v4 = vsel %vm6446_vm3, %v220_v46, %v224_v47  ;;  %v252_v21 = vrot.slane %v8045_v3, 4  ;;  %v263_v31 = vrot.slane %v261_v13, 4 }
  0x23   :  { %v4977_v15 = vcombine.low %v215_v62, %v225_v4  ;;  %v234_v17 = vrot.slane %v233_v63, 4  ;;  %v266_v33 = vrot.slane %v264_v14, 5  ;;  %v8042_v45 = vshll.u32 %v6640_v29, 16 }
  0x24   :  { %v253_v44 = vor.u32 %v252_v21, %v248_v27  ;;  %v8043_v46 = vshrl.u32 %v6640_v29, 16  ;;  %v8040_v62 = vshll.u32 %v6645_v35, 16  ;;  %v8041_v63 = vshrl.u32 %v6645_v35, 16 }
  0x25   :  { %v239_v42 = vsel %vm6446_vm3, %v234_v17, %v238_v53  ;;  %v272_v17 = vrot.slane %v8042_v45, 5  ;;  %vm1308_vm5 = vsmask.f32 2304  ;;  %vm1309_vm6 = vsmask.f32 6416 }
  0x26   :  { %v276_v14 = vrot.slane %v8043_v46, 4  ;;  %v282_v21 = vrot.slane %v8040_v62, 5  ;;  %vm6824_vm7 = vmor %vm1308_vm5, %vm1309_vm6  ;;  %vm915_vm8 = vcmask 1042432   ;;  %vm916_vm9 = vcmask 1046532  }
  0x27   :  { %vm6852_vm10 = vmor %vm915_vm8, %vm916_vm9  ;;  %vm1861_vm11 = vcmask 1041408   ;;  %vm1862_vm12 = vcmask 1045508   ;;  %vm2510_vm14 = vcmask 523264   ;;  %vm2808_vm15 = vcmask 130048  }
  0x28   :  { %4992 = vmatmul.mubr.msk.bf16.gmra.mrb[12].mxu0 %vm421_vm4, %v4975_v8  ;;  %v243_v8 = vor.u32 %v242_v55, %v238_v53  ;;  %v267_v55 = vor.u32 %v266_v33, %v263_v31  ;;  %v6661_v53 = vld [vmem:[%s8025_s0 + $0x5c] sm:$0x1]  ;;  %v6679_v31 = vld [vmem:[%s8025_s0 + $0x64] sm:$0xf]  ;;  %vm7223_vm13 = vmor %vm1861_vm11, %vm1862_vm12  ;;  %vm3220_vm0 = vcmask 785408   ;;  %vm3540_vm2 = vcmask 588800  }
  0x29   :  { %537 = vmatprep.mubr.bf16.mxu0 %v6305_v1  ;;  %v290_v33 = vshll.u32 %v6661_v53, 16  ;;  %v8050_v45 = vshrl.u32 %v6679_v31, 16  ;;  %vm4915_vm5 = vcmask 687104  }
  0x2a   :  { %v244_v25 = vrot.slane %v243_v8, 4  ;;  %v254_v8 = vrot.slane %v253_v44, 4 }
  0x2c   :  { %v249_v47 = vsel %vm6446_vm3, %v244_v25, %v248_v27  ;;  %v286_v25 = vrot.slane %v8041_v63, 4  ;;  %v6674_v27 = vld [vmem:[%s8025_s0 + $0x60] sm:$0xf]  ;;  %v8047_v63 = vshll.u32 %v6679_v31, 16 }
  0x2d   :  { %v4978_v4 = vcombine.low %v239_v42, %v249_v47  ;;  %v277_v42 = vor.u32 %v276_v14, %v272_v17  ;;  %v295_v44 = vshrl.u32 %v6674_v27, 16  ;;  %v298_v47 = vshll.u32 %v6674_v27, 16  ;;  %v6695_v14 = vld [vmem:[%s8025_s0 + $0x68] sm:$0xf] }
  0x2e   :  { %v287_v62 = vor.u32 %v286_v25, %v282_v21  ;;  %v306_v38 = vrot.slane %v8047_v63, 5 }
  0x2f   :  { %v297_v2 = vrot.slane %v295_v44, 4  ;;  %v300_v3 = vrot.slane %v298_v47, 5 }
  0x30   :  { %4993 = vmatmul.mubr.msk.bf16.gmra.mrb[16].mxu0 %vm421_vm4, %v4976_v41  ;;  %v256_v41 = vshll.u32 %v6631_v16, 16 }
  0x31   :  { %547 = vmatprep.mubr.bf16.mxu0 %v6305_v1  ;;  %v301_v25 = vor.u32 %v300_v3, %v297_v2  ;;  %v6719_v2 = vld [vmem:[%s8025_s0 + $0x6c] sm:$0x1] }
  0x32   :  { %v258_v13 = vrot.slane %v256_v41, 5 }
  0x34   :  { %v259_v41 = vsel %vm6446_vm3, %v254_v8, %v258_v13  ;;  %v288_v8 = vrot.slane %v287_v62, 4  ;;  %v292_v13 = vrot.slane %v290_v33, 5  ;;  %v8048_v33 = vshll.u32 %v6695_v14, 16 }
  0x38   :  { %4994 = vmatmul.mubr.msk.bf16.gmra.mrb[20].mxu0 %vm421_vm4, %v4977_v15  ;;  %v268_v15 = vrot.slane %v267_v55, 4 }
  0x39   :  { %557 = vmatprep.mubr.bf16.mxu0 %v6305_v1 }
  0x3a   :  { %v273_v55 = vsel %vm6446_vm3, %v268_v15, %v272_v17  ;;  %v310_v15 = vrot.slane %v8050_v45, 4  ;;  %v6704_v17 = vld [vmem:[%s8025_s0 + $0x70] sm:$0xf] }
  0x3b   :  { %v4979_v46 = vcombine.low %v259_v41, %v273_v55  ;;  %v8049_v41 = vshrl.u32 %v6695_v14, 16  ;;  %v329_v47 = vshrl.u32 %v6704_v17, 16  ;;  %v332_v55 = vshll.u32 %v6704_v17, 16 }
  0x3c   :  { %v311_v44 = vor.u32 %v310_v15, %v306_v38 }
  0x3d   :  { %v320_v3 = vrot.slane %v8049_v41, 4  ;;  %v334_v15 = vrot.slane %v332_v55, 5 }
  0x40   :  { %4995 = vmatmul.mubr.msk.bf16.gmra.mrb[24].mxu0 %vm421_vm4, %v4978_v4  ;;  %v278_v4 = vrot.slane %v277_v42, 4  ;;  %v293_v42 = vsel %vm6446_vm3, %v288_v8, %v292_v13  ;;  %v6728_v8 = vld [vmem:[%s8025_s0 + $0x74] sm:$0xf]  ;;  %v331_v13 = vrot.slane %v329_v47, 4 }
  0x41   :  { %567 = vmatprep.mubr.bf16.mxu0 %v6305_v1  ;;  %v8056_v41 = vshrl.u32 %v6728_v8, 16 }
  0x42   :  { %v283_v62 = vsel %vm6446_vm3, %v278_v4, %v282_v21  ;;  %v312_v21 = vrot.slane %v311_v44, 4  ;;  %v316_v4 = vrot.slane %v8048_v33, 5  ;;  %v8054_v33 = vshll.u32 %v6728_v8, 16 }
  0x43   :  { %v4980_v63 = vcombine.low %v283_v62, %v293_v42  ;;  %v6733_v62 = vld [vmem:[%s8025_s0 + $0x78] sm:$0xf]  ;;  %v335_v55 = vor.u32 %v334_v15, %v331_v13 }
  0x44   :  { %v321_v44 = vor.u32 %v320_v3, %v316_v4  ;;  %v317_v47 = vsel %vm6446_vm3, %v312_v21, %v316_v4  ;;  %v8055_v45 = vshll.u32 %v6733_v62, 16  ;;  %v8057_v40 = vshrl.u32 %v6733_v62, 16  ;;  %v6751_v3 = vld [vmem:[%s8025_s0 + $0x7c] sm:$0x1] }
  0x45   :  { %v344_v21 = vrot.slane %v8056_v41, 4  ;;  %v358_v15 = vshll.u32 %v6751_v3, 16 }
  0x46   :  { %v350_v4 = vrot.slane %v8055_v45, 5  ;;  %v354_v13 = vrot.slane %v8057_v40, 4 }
  0x47   :  { %v360_v41 = vrot.slane %v358_v15, 5 }
  0x48   :  { %4996 = vmatmul.mubr.msk.bf16.gmra.mrb[28].mxu0 %vm421_vm4, %v4979_v46  ;;  %v302_v46 = vrot.slane %v301_v25, 4  ;;  %v324_v25 = vshll.u32 %v6719_v2, 16 }
  0x49   :  { %577 = vmatprep.mubr.bf16.mxu0 %v6305_v1 }
  0x4a   :  { %v307_v42 = vsel %vm6446_vm3, %v302_v46, %v306_v38  ;;  %v326_v0 = vrot.slane %v324_v25, 5  ;;  %v340_v38 = vrot.slane %v8054_v33, 5  ;;  %v336_v46 = vrot.slane %v335_v55, 4 }
  0x4b   :  { %v4981_v59 = vcombine.low %v307_v42, %v317_v47  ;;  %v355_v47 = vor.u32 %v354_v13, %v350_v4 }
  0x4c   :  { %v341_v42 = vsel %vm6446_vm3, %v336_v46, %v340_v38  ;;  %v6126_v46 = vld [vmem:[%s8024_s1 + $0x54] ss:$8 sps:$4 sm:$0x3f]  }
  0x4d   :  { %v356_v45 = vrot.slane %v355_v47, 4 }
  0x4f   :  { %v361_v40 = vsel %vm6446_vm3, %v356_v45, %v360_v41  ;;  %v5002_v45 = vcombine.low %v6414_v7, %v6429_v19  ;;  %v5004_v41 = vcombine.low %v6474_v52, %v6492_v61  ;;  %v5005_v19 = vcombine.low %v6508_v11, %v6520_v22 }
  0x50   :  { %4997 = vmatmul.mubr.msk.bf16.gmra.mrb[32].mxu0 %vm421_vm4, %v4980_v63  ;;  %v322_v63 = vrot.slane %v321_v44, 4  ;;  %v345_v44 = vor.u32 %v344_v21, %v340_v38  ;;  %v6117_v38 = vld [vmem:[%s8024_s1 + $0x40] ss:$8 sps:$4 sm:$0xff]   ;;  %v5006_v21 = vcombine.low %v6536_v36, %v6550_v43  ;;  %v5007_v52 = vcombine.low %v6586_v18, %v6591_v20 }
  0x51   :  { %587 = vmatprep.mubr.bf16.mxu0 %v6305_v1  ;;  %v5008_v22 = vcombine.low %v6607_v48, %v6616_v60 }
  0x52   :  { %v327_v25 = vsel %vm6446_vm3, %v322_v63, %v326_v0  ;;  %v346_v33 = vrot.slane %v345_v44, 4  ;;  %v5001_v63 = vcombine.low %v6404_v5, %v6409_v6  ;;  %v1094_v5 = vsel %vm458_vm1, %v6128_v30, 0 }
  0x53   :  { %v4982_v55 = vcombine.low %v327_v25, %v341_v42  ;;  %v1324_v25 = vrot.slane %v6450_v32, 4  ;;  %v5012_v30 = vcombine.low %v6728_v8, %v6733_v62 }
  0x58   :  { %4998 = vmatmul.mubr.msk.bf16.gmra.mrb[36].mxu0 %vm421_vm4, %v4981_v59  ;;  %v351_v59 = vsel %vm6446_vm3, %v346_v33, %v350_v4  ;;  %v5003_v33 = vcombine.low %v6434_v24, %v6457_v39  ;;  %v891_v4 = vld [vmem:[%s8025_s0] sm:$0xe]  ;;  %vm4489_vm3 = vcmask 261120  }
  0x59   :  { %597 = vmatprep.mubr.bf16.mxu0 %v6305_v1  ;;  %v4983_v0 = vcombine.low %v351_v59, %v361_v40  ;;  %v6136_v40 = vld [vmem:[%s8024_s1 + $0x64] ss:$8 sps:$4 sm:$0xff]   ;;  %v1312_v13 = vshrl.u32 %v891_v4, 16  ;;  %v1315_v15 = vshll.u32 %v891_v4, 16  ;;  %v5009_v59 = vcombine.low %v6640_v29, %v6645_v35 }
  0x5b   :  { %v1314_v42 = vrot.slane %v1312_v13, 5  ;;  %v1317_v44 = vrot.slane %v1315_v15, 6  ;;  %v6139_v13 = vld [vmem:[%s8024_s1 + $0x70] ss:$8 sps:$4 sm:$0x3f]  }
  0x5d   :  { %v1318_v18 = vor.u32 %v1317_v44, %v1314_v42  ;;  %v1631_v42 = vsel %vm458_vm1, %v6139_v13, 0  ;;  %v6142_v44 = vld [vmem:[%s8024_s1 + $0x84] ss:$8 sps:$4 sm:$0xff]   ;;  %v953_v13 = vrot.slane %v6550_v43, 5 }
  0x5f   :  { %v1319_v60 = vrot.slane %v1318_v18, 4 }
  0x60   :  { %4999 = vmatmul.mubr.msk.bf16.gmra.mrb[40].mxu0 %vm421_vm4, %v4982_v55  ;;  %v1328_v55 = vsel %vm6824_vm7, %v1324_v25, %v6476_v56  ;;  %v933_v25 = vrot.slane %v6457_v39, 5 }
  0x61   :  { %607 = vmatprep.mubr.bf16.mxu0 %v6305_v1 }
  0x68   :  { %5000 = vmatmul.mubr.msk.bf16.gmra.mrb[44].mxu0 %vm421_vm4, %v4983_v0  ;;  %v1323_v0 = vsel %vm6824_vm7, %v1319_v60, %v6450_v32  ;;  %v920_v32 = vrot.slane %v6409_v6, 5 }
  0x69   :  { %770 = vmatprep.mubr.bf16.mxu0 %v6305_v1 }
  0x70   :  { %5018 = vmatmul.mubr.msk.bf16.vlgmr.msra.gmra.mrb[0].mxu0 %vm421_vm4, %v5001_v63  ;;  %v6836_v63 = vcombine.low %v1323_v0, %v1328_v55  ;;  %v935_v55 = vrot.slane %v933_v25, 4 }
  0x71   :  { %1100 = vmatpush1.bf16.msra.mxu0 %v6117_v38  ;;  %780 = vmatprep.mubr.bf16.mxu0 %v6305_v1  ;;  %v5010_v38 = vcombine.low %v6674_v27, %v6679_v31  ;;  %v922_v27 = vrot.slane %v920_v32, 4 }
  0x72   :  { %5058 = vmatprep.subr.msk.bf16.mxu0 %vm458_vm1, %v6126_v46  ;;  %v5011_v46 = vcombine.low %v6695_v14, %v6704_v17 }
  0x75   :  { %1102 = vmatpush1.bf16.msra.mxu0 %v1094_v5  ;;  %v5030_v5 = vrot.slane %v891_v4, 9  ;;  %v6137_v4 = vld [vmem:[%s8024_s1 + $0x74] ss:$8 sps:$4 sm:$0x3f]  }
  0x76   :  { %1636 = vmatprep.subr.bf16.mxu0 %v6136_v40  ;;  %v923_v40 = vrot.slane %v6414_v7, 5 }
  0x77   :  { %v921_v6 = vsel %vm6852_vm10, %v5030_v5, %v920_v32  ;;  %v6902_v32 = vld [vmem:[%s8025_s0 + $0x20] sm:$0xe] }
  0x78   :  { %5019 = vmatmul.mubr.msk.bf16.gmra.mrb[4].mxu0 %vm421_vm4, %v5002_v45  ;;  %v924_v17 = vsel %vm6852_vm10, %v922_v27, %v923_v40  ;;  %v943_v27 = vrot.slane %v6508_v11, 5  ;;  %v7024_v45 = vld [vmem:[%s8025_s0 + $0x1c] sm:$0x3] }
  0x79   :  { %790 = vmatprep.mubr.bf16.mxu0 %v6305_v1  ;;  %v5042_v7 = vcombine.low %v921_v6, %v924_v17  ;;  %v6915_v17 = vld [vmem:[%s8025_s0 + $0x30] sm:$0xe] }
  0x80   :  { %5020 = vmatmul.mubr.msk.bf16.gmra.mrb[8].mxu0 %vm421_vm4, %v5003_v33  ;;  %v6865_v33 = vld [vmem:[%s8025_s0 + $0x10] sm:$0xe] }
  0x81   :  { %800 = vmatprep.mubr.bf16.mxu0 %v6305_v1 }
  0x88   :  { %5021 = vmatmul.mubr.msk.bf16.gmra.mrb[12].mxu0 %vm421_vm4, %v5004_v41  ;;  %v6134_v41 = vld [vmem:[%s8024_s1 + $0x60] ss:$8 sps:$4 sm:$0xff]  }
  0x89   :  { %810 = vmatprep.mubr.bf16.mxu0 %v6305_v1 }
  0x90   :  { %5022 = vmatmul.mubr.msk.bf16.gmra.mrb[16].mxu0 %vm421_vm4, %v5005_v19  ;;  %v925_v19 = vrot.slane %v923_v40, 4 }
  0x91   :  { %820 = vmatprep.mubr.bf16.mxu0 %v6305_v1 }
  0x98   :  { %5023 = vmatmul.mubr.msk.bf16.gmra.mrb[20].mxu0 %vm421_vm4, %v5006_v21  ;;  %v926_v21 = vrot.slane %v6439_v26, 5 }
  0x99   :  { %830 = vmatprep.mubr.bf16.mxu0 %v6305_v1 }
  0x9a   :  { %v927_v26 = vsel %vm6852_vm10, %v925_v19, %v926_v21  ;;  %v946_v19 = vrot.slane %v6541_v37, 5  ;;  %v5033_v21 = vrot.slane %v6915_v17, 9  ;;  %v956_v37 = vrot.slane %v6573_v12, 5 }
  0xa0   :  { %5024 = vmatmul.mubr.msk.bf16.gmra.mrb[24].mxu0 %vm421_vm4, %v5007_v52  ;;  %v5031_v52 = vrot.slane %v6865_v33, 9 }
  0xa1   :  { %840 = vmatprep.mubr.bf16.mxu0 %v6305_v1 }
  0xa8   :  { %5025 = vmatmul.mubr.msk.bf16.gmra.mrb[28].mxu0 %vm421_vm4, %v5008_v22  ;;  %v930_v22 = vrot.slane %v6434_v24, 5  ;;  %v1353_v24 = vrot.slane %v148_v51, 5 }
  0xa9   :  { %850 = vmatprep.mubr.bf16.mxu0 %v6305_v1 }
  0xaa   :  { %v931_v15 = vsel %vm6852_vm10, %v5031_v52, %v930_v22  ;;  %v932_v60 = vrot.slane %v930_v22, 4  ;;  %v950_v52 = vrot.slane %v6536_v36, 5 }
  0xab   :  { %v5043_v18 = vcombine.low %v927_v26, %v931_v15 }
  0xac   :  { %v934_v0 = vsel %vm6852_vm10, %v932_v60, %v933_v25  ;;  %v952_v15 = vrot.slane %v950_v52, 4  ;;  %v955_v25 = vrot.slane %v953_v13, 4  ;;  %v6938_v60 = vld [vmem:[%s8025_s0 + $0x40] sm:$0xe] }
  0xad   :  { %v5034_v12 = vrot.slane %v6938_v60, 9 }
  0xb0   :  { %5026 = vmatmul.mubr.msk.bf16.gmra.mrb[32].mxu0 %vm421_vm4, %v5009_v59  ;;  %v936_v59 = vrot.slane %v6481_v57, 5 }
  0xb1   :  { %860 = vmatprep.mubr.bf16.mxu0 %v6305_v1 }
  0xb8   :  { %5027 = vmatmul.mubr.msk.bf16.gmra.mrb[36].mxu0 %vm421_vm4, %v5010_v38  ;;  %v937_v38 = vsel %vm6852_vm10, %v935_v55, %v936_v59 }
  0xb9   :  { %870 = vmatprep.mubr.bf16.mxu0 %v6305_v1  ;;  %v5044_v57 = vcombine.low %v934_v0, %v937_v38  ;;  %v963_v0 = vrot.slane %v6607_v48, 5 }
  0xc0   :  { %5028 = vmatmul.mubr.msk.bf16.gmra.mrb[40].mxu0 %vm421_vm4, %v5011_v46  ;;  %v940_v46 = vrot.slane %v6492_v61, 5  ;;  %v7065_v61 = vld [vmem:[%s8025_s0 + $0x2c] sm:$0x3] }
  0xc1   :  { %880 = vmatprep.mubr.bf16.mxu0 %v6305_v1 }
  0xc2   :  { %v942_v5 = vrot.slane %v940_v46, 4 }
  0xc4   :  { %v944_v6 = vsel %vm6852_vm10, %v942_v5, %v943_v27  ;;  %v965_v5 = vrot.slane %v963_v0, 4 }
  0xc8   :  { %5029 = vmatmul.mubr.msk.bf16.gmra.mrb[44].mxu0 %vm421_vm4, %v5012_v30  ;;  %v5032_v30 = vrot.slane %v6902_v32, 9 }
  0xc9   :  { %1131 = vmatprep.mubr.bf16.mxu0 %v6305_v1 }
  0xca   :  { %v941_v40 = vsel %vm6852_vm10, %v5032_v30, %v940_v46 }
  0xd0   :  { %5059 = vmatmul.mubr.msk.bf16.vlgmr.msra.gmra.mrb[0].mxu0 %vm421_vm4, %v5042_v7  ;;  %v5045_v7 = vcombine.low %v941_v40, %v944_v6  ;;  %v970_v6 = vrot.slane %v6640_v29, 5 }
  0xd1   :  { %1637 = vmatpush1.bf16.msra.mxu0 %v6134_v41  ;;  %1141 = vmatprep.mubr.bf16.mxu0 %v6305_v1  ;;  %v945_v41 = vrot.slane %v943_v27, 4  ;;  %v966_v27 = vrot.slane %v6631_v16, 5  ;;  %v976_v16 = vrot.slane %v6661_v53, 5 }
  0xd2   :  { %5091 = vmatprep.subr.msk.bf16.mxu0 %vm458_vm1, %v6137_v4  ;;  %v951_v4 = vsel %vm6852_vm10, %v5033_v21, %v950_v52  ;;  %v972_v52 = vrot.slane %v970_v6, 4 }
  0xd3   :  { %v947_v22 = vsel %vm6852_vm10, %v945_v41, %v946_v19  ;;  %v973_v19 = vrot.slane %v6645_v35, 5 }
  0xd4   :  { %v5046_v26 = vcombine.low %v947_v22, %v951_v4 }
  0xd5   :  { %1639 = vmatpush1.bf16.msra.mxu0 %v1631_v42  ;;  %v954_v42 = vsel %vm6852_vm10, %v952_v15, %v953_v13  ;;  %v975_v22 = vrot.slane %v973_v19, 4  ;;  %v974_v4 = vsel %vm6852_vm10, %v972_v52, %v973_v19  ;;  %v6974_v15 = vld [vmem:[%s8025_s0 + $0x60] sm:$0xe]  ;;  %v1340_v19 = vshrl.u32 %v6865_v33, 16 }
  0xd6   :  { %2045 = vmatprep.subr.bf16.mxu0 %v6142_v44  ;;  %v957_v44 = vsel %vm6852_vm10, %v955_v25, %v956_v37  ;;  %v5036_v53 = vrot.slane %v6974_v15, 9 }
  0xd7   :  { %v5047_v55 = vcombine.low %v954_v42, %v957_v44  ;;  %v977_v13 = vsel %vm6852_vm10, %v975_v22, %v976_v16  ;;  %v983_v42 = vrot.slane %v6695_v14, 5 }
  0xd8   :  { %5060 = vmatmul.mubr.msk.bf16.gmra.mrb[4].mxu0 %vm421_vm4, %v5043_v18  ;;  %v960_v18 = vrot.slane %v6591_v20, 5  ;;  %v5050_v25 = vcombine.low %v974_v4, %v977_v13  ;;  %v1342_v13 = vrot.slane %v1340_v19, 5 }
  0xd9   :  { %1151 = vmatprep.mubr.bf16.mxu0 %v6305_v1 }
  0xda   :  { %v962_v59 = vrot.slane %v960_v18, 4  ;;  %v961_v38 = vsel %vm6852_vm10, %v5034_v12, %v960_v18 }
  0xdc   :  { %v964_v46 = vsel %vm6852_vm10, %v962_v59, %v963_v0  ;;  %v985_v59 = vrot.slane %v983_v42, 4  ;;  %v986_v0 = vrot.slane %v6719_v2, 5  ;;  %v996_v2 = vrot.slane %v6751_v3, 5 }
  0xdd   :  { %v5048_v30 = vcombine.low %v961_v38, %v964_v46  ;;  %v990_v46 = vrot.slane %v6728_v8, 5 }
  0xe0   :  { %5061 = vmatmul.mubr.msk.bf16.gmra.mrb[8].mxu0 %vm421_vm4, %v5044_v57  ;;  %v6951_v57 = vld [vmem:[%s8025_s0 + $0x50] sm:$0xe] }
  0xe1   :  { %1161 = vmatprep.mubr.bf16.mxu0 %v6305_v1  ;;  %v5035_v40 = vrot.slane %v6951_v57, 9 }
  0xe3   :  { %v971_v41 = vsel %vm6852_vm10, %v5035_v40, %v970_v6  ;;  %v992_v6 = vrot.slane %v990_v46, 4 }
  0xe8   :  { %5062 = vmatmul.mubr.msk.bf16.gmra.mrb[12].mxu0 %vm421_vm4, %v5045_v7  ;;  %v967_v7 = vsel %vm6852_vm10, %v965_v5, %v966_v27  ;;  %v993_v27 = vrot.slane %v6733_v62, 5 }
  0xe9   :  { %1171 = vmatprep.mubr.bf16.mxu0 %v6305_v1  ;;  %v5049_v21 = vcombine.low %v967_v7, %v971_v41  ;;  %v7004_v41 = vld [vmem:[%s8025_s0 + $0xc] sm:$0x3] }
  0xea   :  { %v995_v7 = vrot.slane %v993_v27, 4  ;;  %v994_v52 = vsel %vm6852_vm10, %v992_v6, %v993_v27  ;;  %v1331_v3 = vshrl.u32 %v7004_v41, 16  ;;  %v1334_v4 = vshll.u32 %v7004_v41, 16 }
  0xec   :  { %v997_v22 = vsel %vm6852_vm10, %v995_v7, %v996_v2  ;;  %v1377_v2 = vrot.slane %v168_v9, 6  ;;  %v1396_v9 = vshrl.u32 %v6915_v17, 16 }
  0xed   :  { %v5053_v16 = vcombine.low %v994_v52, %v997_v22 }
  0xf0   :  { %5063 = vmatmul.mubr.msk.bf16.gmra.mrb[16].mxu0 %vm421_vm4, %v5046_v26  ;;  %v980_v26 = vrot.slane %v6679_v31, 5 }
  0xf1   :  { %1181 = vmatprep.mubr.bf16.mxu0 %v6305_v1 }
  0xf2   :  { %v982_v37 = vrot.slane %v980_v26, 4  ;;  %v981_v44 = vsel %vm6852_vm10, %v5036_v53, %v980_v26  ;;  %v1336_v53 = vrot.slane %v1334_v4, 6  ;;  %v1381_v4 = vrot.slane %v182_v23, 5 }
  0xf4   :  { %v984_v18 = vsel %vm6852_vm10, %v982_v37, %v983_v42  ;;  %v1348_v37 = vrot.slane %v138_v49, 5  ;;  %v1349_v42 = vrot.slane %v134_v34, 6  ;;  %v1354_v34 = vrot.slane %v144_v50, 6 }
  0xf5   :  { %v5051_v12 = vcombine.low %v981_v44, %v984_v18  ;;  %v1329_v44 = vrot.slane %v6476_v56, 4  ;;  %v1359_v49 = vshrl.u32 %v7024_v45, 16  ;;  %v6143_v56 = vld [vmem:[%s8024_s1 + $0x94] ss:$8 sps:$4 sm:$0x3f]  }
  0xf6   :  { %v1355_v51 = vor.u32 %v1354_v34, %v1353_v24  ;;  %v1404_v24 = vrot.slane %v206_v58, 5  ;;  %v1405_v34 = vrot.slane %v202_v54, 6  ;;  %v8065_v58 = vshll.u32 %v6550_v43, 16 }
  0xf7   :  { %v1361_v27 = vrot.slane %v1359_v49, 5  ;;  %v7089_v49 = vld [vmem:[%s8025_s0 + $0x3c] sm:$0x3] }
  0xf8   :  { %5064 = vmatmul.mubr.msk.bf16.gmra.mrb[20].mxu0 %vm421_vm4, %v5047_v55  ;;  %v6987_v55 = vld [vmem:[%s8025_s0 + $0x70] sm:$0xe]  ;;  %v1357_v52 = vrot.slane %v1355_v51, 4  ;;  %v1415_v36 = vshrl.u32 %v7089_v49, 16  ;;  %v1418_v54 = vshll.u32 %v7089_v49, 16 }
  0xf9   :  { %1191 = vmatprep.mubr.bf16.mxu0 %v6305_v1  ;;  %v5037_v38 = vrot.slane %v6987_v55, 9 }
  0xfb   :  { %v991_v5 = vsel %vm6852_vm10, %v5037_v38, %v990_v46  ;;  %v1362_v38 = vshll.u32 %v7024_v45, 16  ;;  %v6145_v46 = vld [vmem:[%s8024_s1 + $0x90] ss:$8 sps:$4 sm:$0x3f]  }
  0xfc   :  { %v2040_v6 = vsel %vm458_vm1, %v6145_v46, 0 }
 0x100   :  { %5065 = vmatmul.mubr.msk.bf16.gmra.mrb[24].mxu0 %vm421_vm4, %v5048_v30  ;;  %v987_v30 = vsel %vm6852_vm10, %v985_v59, %v986_v0  ;;  %v1350_v59 = vor.u32 %v1349_v42, %v1348_v37  ;;  %v6140_v0 = vld [vmem:[%s8024_s1 + $0x80] ss:$8 sps:$4 sm:$0xff]   ;;  %v1390_v37 = vshll.u32 %v7065_v61, 16  ;;  %v1398_v42 = vrot.slane %v1396_v9, 5 }
 0x101   :  { %1201 = vmatprep.mubr.bf16.mxu0 %v6305_v1  ;;  %v5052_v40 = vcombine.low %v987_v30, %v991_v5  ;;  %v1368_v30 = vshrl.u32 %v6902_v32, 16  ;;  %v1371_v5 = vshll.u32 %v6902_v32, 16 }
 0x103   :  { %v1370_v32 = vrot.slane %v1368_v30, 5  ;;  %v1373_v7 = vrot.slane %v1371_v5, 6  ;;  %v1406_v5 = vor.u32 %v1405_v34, %v1404_v24 }
 0x108   :  { %5066 = vmatmul.mubr.msk.bf16.gmra.mrb[28].mxu0 %vm421_vm4, %v5049_v21  ;;  %v1343_v21 = vshll.u32 %v6865_v33, 16 }
 0x109   :  { %1211 = vmatprep.mubr.bf16.mxu0 %v6305_v1 }
 0x10a   :  { %v1345_v26 = vrot.slane %v1343_v21, 6  ;;  %v1352_v21 = vrot.slane %v1350_v59, 4 }
 0x10c   :  { %v1346_v33 = vor.u32 %v1345_v26, %v1342_v13  ;;  %v1382_v13 = vrot.slane %v178_v28, 6  ;;  %v1356_v26 = vsel %vm6824_vm7, %v1352_v21, %v1355_v51  ;;  %v1410_v51 = vrot.slane %v8065_v58, 6 }
 0x10d   :  { %v8066_v21 = vshrl.u32 %v6591_v20, 16 }
 0x110   :  { %5067 = vmatmul.mubr.msk.bf16.gmra.mrb[32].mxu0 %vm421_vm4, %v5050_v25  ;;  %v1333_v25 = vrot.slane %v1331_v3, 5  ;;  %v1374_v3 = vor.u32 %v1373_v7, %v1370_v32  ;;  %v1417_v7 = vrot.slane %v1415_v36, 5 }
 0x111   :  { %1221 = vmatprep.mubr.bf16.mxu0 %v6305_v1 }
 0x112   :  { %v1337_v18 = vor.u32 %v1336_v53, %v1333_v25  ;;  %v1375_v23 = vrot.slane %v1374_v3, 4  ;;  %v1383_v25 = vor.u32 %v1382_v13, %v1381_v4  ;;  %v1387_v53 = vshrl.u32 %v7065_v61, 16 }
 0x114   :  { %v1338_v39 = vsel %vm6824_vm7, %v1329_v44, %v1337_v18 }
 0x118   :  { %5068 = vmatmul.mubr.msk.bf16.gmra.mrb[36].mxu0 %vm421_vm4, %v5051_v12  ;;  %v1347_v12 = vrot.slane %v1346_v33, 4 }
 0x119   :  { %1231 = vmatprep.mubr.bf16.mxu0 %v6305_v1 }
 0x11a   :  { %v1351_v50 = vsel %vm6824_vm7, %v1347_v12, %v1350_v59  ;;  %v1389_v12 = vrot.slane %v1387_v53, 5  ;;  %v1392_v59 = vrot.slane %v1390_v37, 6  ;;  %v1455_v53 = vshll.u32 %v6951_v57, 16 }
 0x11b   :  { %v5076_v19 = vcombine.low %v1338_v39, %v1351_v50  ;;  %v8064_v39 = vshrl.u32 %v6550_v43, 16 }
 0x11c   :  { %v1393_v46 = vor.u32 %v1392_v59, %v1389_v12 }
 0x11d   :  { %v1409_v50 = vrot.slane %v8064_v39, 5 }
 0x11f   :  { %v1411_v43 = vor.u32 %v1410_v51, %v1409_v50  ;;  %v7141_v50 = vld [vmem:[%s8025_s0 + $0x5c] sm:$0x3] }
 0x120   :  { %5069 = vmatmul.mubr.msk.bf16.gmra.mrb[40].mxu0 %vm421_vm4, %v5052_v40  ;;  %v1364_v40 = vrot.slane %v1362_v38, 6 }
 0x121   :  { %1241 = vmatprep.mubr.bf16.mxu0 %v6305_v1  ;;  %v1413_v4 = vrot.slane %v1411_v43, 4 }
 0x122   :  { %v1365_v22 = vor.u32 %v1364_v40, %v1361_v27  ;;  %v1424_v27 = vshrl.u32 %v6938_v60, 16  ;;  %v1427_v40 = vshll.u32 %v6938_v60, 16  ;;  %v8067_v60 = vshll.u32 %v6591_v20, 16 }
 0x123   :  { %v1452_v20 = vshrl.u32 %v6951_v57, 16 }
 0x124   :  { %v1366_v11 = vsel %vm6824_vm7, %v1357_v52, %v1365_v22  ;;  %v1432_v52 = vrot.slane %v8066_v21, 5  ;;  %v1433_v22 = vrot.slane %v8067_v60, 6 }
 0x125   :  { %v5077_v33 = vcombine.low %v1356_v26, %v1366_v11  ;;  %v8068_v26 = vshrl.u32 %v6607_v48, 16  ;;  %v1454_v59 = vrot.slane %v1452_v20, 5  ;;  %v8076_v20 = vshrl.u32 %v6695_v14, 16 }
 0x127   :  { %v1437_v11 = vrot.slane %v8068_v26, 5 }
 0x128   :  { %5070 = vmatmul.mubr.msk.bf16.gmra.mrb[44].mxu0 %vm421_vm4, %v5053_v16 }
 0x129   :  { %1668 = vmatprep.mubr.bf16.mxu0 %v6305_v1 }
 0x130   :  { %5092 = vmatmul.mubr.msk.bf16.vlgmr.msra.gmra.mrb[0].mxu0 %vm421_vm4, %v6836_v63  ;;  %v1376_v63 = vrot.slane %v172_v10, 5  ;;  %v1399_v10 = vshll.u32 %v6915_v17, 16 }
 0x131   :  { %2046 = vmatpush1.bf16.msra.mxu0 %v6140_v0  ;;  %1678 = vmatprep.mubr.bf16.mxu0 %v6305_v1 }
 0x132   :  { %5132 = vmatprep.subr.msk.bf16.mxu0 %vm458_vm1, %v6143_v56  ;;  %v1378_v16 = vor.u32 %v1377_v2, %v1376_v63  ;;  %v1401_v44 = vrot.slane %v1399_v10, 6  ;;  %v1385_v56 = vrot.slane %v1383_v25, 4  ;;  %v1420_v63 = vrot.slane %v1418_v54, 6 }
 0x133   :  { %v1426_v2 = vrot.slane %v1424_v27, 5  ;;  %v1434_v10 = vor.u32 %v1433_v22, %v1432_v52  ;;  %vm3553_vm1 = vcmask 1043456  }
 0x134   :  { %v1380_v28 = vrot.slane %v1378_v16, 4  ;;  %v1379_v17 = vsel %vm6824_vm7, %v1375_v23, %v1378_v16  ;;  %v1402_v0 = vor.u32 %v1401_v44, %v1398_v42  ;;  %v1408_v16 = vrot.slane %v1406_v5, 4 }
 0x135   :  { %2048 = vmatpush1.bf16.msra.mxu0 %v2040_v6  ;;  %v1394_v6 = vsel %vm6824_vm7, %v1385_v56, %v1393_v46  ;;  %v1421_v13 = vor.u32 %v1420_v63, %v1417_v7  ;;  %v8069_v23 = vshll.u32 %v6607_v48, 16  ;;  %v1436_v42 = vrot.slane %v1434_v10, 4 }
 0x136   :  { %v1384_v18 = vsel %vm6824_vm7, %v1380_v28, %v1383_v25  ;;  %v1403_v30 = vrot.slane %v1402_v0, 4  ;;  %v7117_v25 = vld [vmem:[%s8025_s0 + $0x4c] sm:$0x3]  ;;  %v1457_v0 = vrot.slane %v1455_v53, 6  ;;  %v8070_v46 = vshrl.u32 %v6640_v29, 16 }
 0x137   :  { %v5078_v38 = vcombine.low %v1379_v17, %v1384_v18  ;;  %v1438_v28 = vrot.slane %v8069_v23, 6  ;;  %v1422_v48 = vsel %vm6824_vm7, %v1413_v4, %v1421_v13  ;;  %v1443_v17 = vshrl.u32 %v7117_v25, 16 }
 0x138   :  { %5093 = vmatmul.mubr.msk.bf16.gmra.mrb[4].mxu0 %vm421_vm4, %v5076_v19  ;;  %v1407_v32 = vsel %vm6824_vm7, %v1403_v30, %v1406_v5  ;;  %v1429_v19 = vrot.slane %v1427_v40, 6  ;;  %v1446_v12 = vshll.u32 %v7117_v25, 16  ;;  %v1458_v56 = vor.u32 %v1457_v0, %v1454_v59 }
 0x139   :  { %1688 = vmatprep.mubr.bf16.mxu0 %v6305_v1  ;;  %v5079_v3 = vcombine.low %v1394_v6, %v1407_v32  ;;  %v1439_v44 = vor.u32 %v1438_v28, %v1437_v11  ;;  %v1445_v34 = vrot.slane %v1443_v17, 5  ;;  %v1460_v30 = vrot.slane %v8070_v46, 5 }
 0x13a   :  { %v1430_v9 = vor.u32 %v1429_v19, %v1426_v2  ;;  %v8071_v5 = vshll.u32 %v6640_v29, 16  ;;  %v1459_v54 = vrot.slane %v1458_v56, 4  ;;  %v8072_v40 = vshrl.u32 %v6645_v35, 16 }
 0x13b   :  { %v1440_v24 = vsel %vm6824_vm7, %v1436_v42, %v1439_v44  ;;  %v1441_v51 = vrot.slane %v1439_v44, 4  ;;  %v8073_v32 = vshll.u32 %v6645_v35, 16  ;;  %v1471_v29 = vshrl.u32 %v7141_v50, 16 }
 0x13c   :  { %v1431_v37 = vrot.slane %v1430_v9, 4  ;;  %v1461_v39 = vrot.slane %v8071_v5, 6  ;;  %v1465_v6 = vrot.slane %v8072_v40, 5  ;;  %v1474_v7 = vshll.u32 %v7141_v50, 16 }
 0x13d   :  { %v1480_v63 = vshrl.u32 %v6974_v15, 16  ;;  %v1483_v2 = vshll.u32 %v6974_v15, 16  ;;  %v1473_v52 = vrot.slane %v1471_v29, 5  ;;  %v8075_v15 = vshll.u32 %v6679_v31, 16 }
 0x13e   :  { %v1435_v57 = vsel %vm6824_vm7, %v1431_v37, %v1434_v10  ;;  %v1462_v27 = vor.u32 %v1461_v39, %v1460_v30  ;;  %v1476_v60 = vrot.slane %v1474_v7, 6  ;;  %v1493_v53 = vrot.slane %v8076_v20, 5  ;;  %v7169_v37 = vld [vmem:[%s8025_s0 + $0x6c] sm:$0x3] }
 0x13f   :  { %v5081_v58 = vcombine.low %v1435_v57, %v1440_v24  ;;  %v1482_v22 = vrot.slane %v1480_v63, 5  ;;  %v1489_v13 = vrot.slane %v8075_v15, 6  ;;  %v1511_v42 = vshll.u32 %v6987_v55, 16 }
 0x140   :  { %5094 = vmatmul.mubr.msk.bf16.gmra.mrb[8].mxu0 %vm421_vm4, %v5077_v33  ;;  %v1412_v33 = vsel %vm6824_vm7, %v1408_v16, %v1411_v43  ;;  %v1466_v43 = vrot.slane %v8073_v32, 6  ;;  %v1463_v21 = vsel %vm6824_vm7, %v1459_v54, %v1462_v27  ;;  %v8074_v16 = vshrl.u32 %v6679_v31, 16 }
 0x141   :  { %1698 = vmatprep.mubr.bf16.mxu0 %v6305_v1  ;;  %v5080_v18 = vcombine.low %v1412_v33, %v1422_v48  ;;  %v1464_v10 = vrot.slane %v1462_v27, 4  ;;  %v1477_v11 = vor.u32 %v1476_v60, %v1473_v52  ;;  %v8077_v33 = vshll.u32 %v6695_v14, 16 }
 0x142   :  { %v1467_v35 = vor.u32 %v1466_v43, %v1465_v6  ;;  %v1488_v4 = vrot.slane %v8074_v16, 5  ;;  %v1508_v31 = vshrl.u32 %v6987_v55, 16  ;;  %v1499_v59 = vshrl.u32 %v7169_v37, 16 }
 0x143   :  { %v1494_v48 = vrot.slane %v8077_v33, 6  ;;  %v1502_v57 = vshll.u32 %v7169_v37, 16  ;;  %v8078_v5 = vshrl.u32 %v6728_v8, 16  ;;  %v8080_v43 = vshrl.u32 %v6733_v62, 16 }
 0x144   :  { %v1469_v26 = vrot.slane %v1467_v35, 4  ;;  %v1490_v28 = vor.u32 %v1489_v13, %v1488_v4  ;;  %v1468_v44 = vsel %vm6824_vm7, %v1464_v10, %v1467_v35  ;;  %v1510_v24 = vrot.slane %v1508_v31, 5  ;;  %v6289_v13 = vld [vmem:[%s8025_s0 + $0x4] sm:$0xf]  ;;  %v1837_v10 = vld [vmem:[%s8025_s0] sm:$0xc] }
 0x145   :  { %v1501_v56 = vrot.slane %v1499_v59, 5  ;;  %v1504_v46 = vrot.slane %v1502_v57, 6  ;;  %v1516_v39 = vrot.slane %v8078_v5, 5  ;;  %v1521_v29 = vrot.slane %v8080_v43, 5  ;;  %v1839_v5 = vld [vmem:[%s8025_s0 + $0x20] sm:$0xc] }
 0x146   :  { %v1478_v14 = vsel %vm6824_vm7, %v1469_v26, %v1477_v11  ;;  %v8081_v7 = vshll.u32 %v6733_v62, 16  ;;  %v5104_v11 = vrot.slane %v1837_v10, 10  ;;  %v6298_v10 = vld [vmem:[%s8025_s0 + $0x48] sm:$0xf] }
 0x147   :  { %v5083_v0 = vcombine.low %v1468_v44, %v1478_v14  ;;  %v1505_v40 = vor.u32 %v1504_v46, %v1501_v56  ;;  %v1872_v44 = vrot.slane %v7004_v41, 6  ;;  %v6292_v41 = vld [vmem:[%s8025_s0 + $0x18] sm:$0xf]  ;;  %v6293_v46 = vld [vmem:[%s8025_s0 + $0x24] sm:$0xf] }
 0x148   :  { %5095 = vmatmul.mubr.msk.bf16.gmra.mrb[12].mxu0 %vm421_vm4, %v5078_v38  ;;  %v1448_v38 = vrot.slane %v1446_v12, 6  ;;  %v1495_v12 = vor.u32 %v1494_v48, %v1493_v53  ;;  %v1522_v63 = vrot.slane %v8081_v7, 6  ;;  %v1838_v48 = vld [vmem:[%s8025_s0 + $0x10] sm:$0xc] }
 0x149   :  { %1708 = vmatprep.mubr.bf16.mxu0 %v6305_v1  ;;  %v5105_v14 = vrot.slane %v1838_v48, 10 }
 0x14a   :  { %v1449_v36 = vor.u32 %v1448_v38, %v1445_v34  ;;  %v1513_v34 = vrot.slane %v1511_v42, 6  ;;  %v1497_v27 = vrot.slane %v1495_v12, 4  ;;  %v1523_v35 = vor.u32 %v1522_v63, %v1521_v29  ;;  %v6295_v63 = vld [vmem:[%s8025_s0 + $0x34] sm:$0xf] }
 0x14b   :  { %v1892_v29 = vrot.slane %v7065_v61, 6  ;;  %v6296_v61 = vld [vmem:[%s8025_s0 + $0x38] sm:$0xf] }
 0x14c   :  { %v1450_v19 = vsel %vm6824_vm7, %v1441_v51, %v1449_v36  ;;  %v1514_v30 = vor.u32 %v1513_v34, %v1510_v24  ;;  %v7193_v36 = vld [vmem:[%s8025_s0 + $0x7c] sm:$0x3] }
 0x14d   :  { %v5082_v9 = vcombine.low %v1450_v19, %v1463_v21  ;;  %v1506_v19 = vsel %vm6824_vm7, %v1497_v27, %v1505_v40 }
 0x14e   :  { %v1515_v6 = vrot.slane %v1514_v30, 4  ;;  %v1886_v30 = vrot.slane %v6293_v46, 6  ;;  %v6302_v46 = vld [vmem:[%s8025_s0 + $0x68] sm:$0xf] }
 0x150   :  { %5096 = vmatmul.mubr.msk.bf16.gmra.mrb[16].mxu0 %vm421_vm4, %v5079_v3  ;;  %v1485_v3 = vrot.slane %v1483_v2, 6  ;;  %v1530_v2 = vshll.u32 %v7193_v36, 16 }
 0x151   :  { %1718 = vmatprep.mubr.bf16.mxu0 %v6305_v1 }
 0x152   :  { %v1486_v23 = vor.u32 %v1485_v3, %v1482_v22  ;;  %v1532_v60 = vrot.slane %v1530_v2, 6  ;;  %v1525_v3 = vrot.slane %v1523_v35, 4 }
 0x154   :  { %v1487_v17 = vrot.slane %v1486_v23, 4 }
 0x156   :  { %v1491_v55 = vsel %vm6824_vm7, %v1487_v17, %v1490_v28  ;;  %v6291_v17 = vld [vmem:[%s8025_s0 + $0x14] sm:$0xf] }
 0x158   :  { %5097 = vmatmul.mubr.msk.bf16.gmra.mrb[20].mxu0 %vm421_vm4, %v5080_v18  ;;  %v1492_v18 = vrot.slane %v1490_v28, 4  ;;  %v6290_v28 = vld [vmem:[%s8025_s0 + $0x8] sm:$0xf] }
 0x159   :  { %1728 = vmatprep.mubr.bf16.mxu0 %v6305_v1  ;;  %v1869_v47 = vrot.slane %v6290_v28, 6  ;;  %v1842_v28 = vld [vmem:[%s8025_s0 + $0x50] sm:$0xc] }
 0x15a   :  { %v1496_v38 = vsel %vm6824_vm7, %v1492_v18, %v1495_v12  ;;  %v1876_v18 = vrot.slane %v6291_v17, 6  ;;  %v5109_v48 = vrot.slane %v1842_v28, 10 }
 0x15b   :  { %v5084_v54 = vcombine.low %v1491_v55, %v1496_v38  ;;  %v1871_v42 = vrot.slane %v1869_v47, 4  ;;  %v1882_v55 = vrot.slane %v7024_v45, 6 }
 0x15c   :  { %v1877_v59 = vsel %vm7223_vm13, %v5105_v14, %v1876_v18  ;;  %v1878_v24 = vrot.slane %v1876_v18, 4 }
 0x15d   :  { %v1873_v12 = vsel %vm7223_vm13, %v1871_v42, %v1872_v44 }
 0x15e   :  { %v5117_v57 = vcombine.low %v1873_v12, %v1877_v59 }
 0x160   :  { %5098 = vmatmul.mubr.msk.bf16.gmra.mrb[24].mxu0 %vm421_vm4, %v5081_v58  ;;  %v8079_v58 = vshll.u32 %v6728_v8, 16  ;;  %v1527_v8 = vshrl.u32 %v7193_v36, 16 }
 0x161   :  { %1738 = vmatprep.mubr.bf16.mxu0 %v6305_v1 }
 0x162   :  { %v1517_v51 = vrot.slane %v8079_v58, 6  ;;  %v1529_v52 = vrot.slane %v1527_v8, 5  ;;  %v1888_v58 = vrot.slane %v1886_v30, 4  ;;  %v1896_v8 = vrot.slane %v6295_v63, 6 }
 0x164   :  { %v1518_v32 = vor.u32 %v1517_v51, %v1516_v39  ;;  %v1533_v16 = vor.u32 %v1532_v60, %v1529_v52  ;;  %v5106_v39 = vrot.slane %v1839_v5, 10  ;;  %v6294_v51 = vld [vmem:[%s8025_s0 + $0x28] sm:$0xf]  ;;  %v1898_v52 = vrot.slane %v1896_v8, 4 }
 0x166   :  { %v1519_v21 = vsel %vm6824_vm7, %v1515_v6, %v1518_v32  ;;  %v1520_v62 = vrot.slane %v1518_v32, 4  ;;  %v1534_v15 = vsel %vm6824_vm7, %v1525_v3, %v1533_v16  ;;  %v1887_v27 = vsel %vm7223_vm13, %v5106_v39, %v1886_v30  ;;  %v1840_v6 = vld [vmem:[%s8025_s0 + $0x30] sm:$0xc]  ;;  %v6297_v16 = vld [vmem:[%s8025_s0 + $0x44] sm:$0xf] }
 0x167   :  { %v5085_v22 = vcombine.low %v1506_v19, %v1519_v21  ;;  %v5107_v7 = vrot.slane %v1840_v6, 10  ;;  %v1899_v21 = vrot.slane %v6296_v61, 6  ;;  %v1929_v30 = vrot.slane %v6302_v46, 6  ;;  %v1844_v39 = vld [vmem:[%s8025_s0 + $0x70] sm:$0xc] }
 0x168   :  { %5099 = vmatmul.mubr.msk.bf16.gmra.mrb[28].mxu0 %vm421_vm4, %v5082_v9  ;;  %v1524_v4 = vsel %vm6824_vm7, %v1520_v62, %v1523_v35  ;;  %v1866_v9 = vrot.slane %v6289_v13, 6 }
 0x169   :  { %1748 = vmatprep.mubr.bf16.mxu0 %v6305_v1  ;;  %v5086_v26 = vcombine.low %v1524_v4, %v1534_v15  ;;  %v1897_v19 = vsel %vm7223_vm13, %v5107_v7, %v1896_v8  ;;  %v1901_v60 = vrot.slane %v1899_v21, 4  ;;  %v1900_v62 = vsel %vm7223_vm13, %v1898_v52, %v1899_v21  ;;  %v1841_v15 = vld [vmem:[%s8025_s0 + $0x40] sm:$0xc] }
 0x16a   :  { %v1868_v23 = vrot.slane %v1866_v9, 4  ;;  %v1867_v53 = vsel %vm7223_vm13, %v5104_v11, %v1866_v9  ;;  %v1906_v4 = vrot.slane %v6297_v16, 6  ;;  %v5108_v13 = vrot.slane %v1841_v15, 10 }
 0x16c   :  { %v1870_v33 = vsel %vm7223_vm13, %v1868_v23, %v1869_v47  ;;  %v1908_v9 = vrot.slane %v1906_v4, 4  ;;  %v1907_v11 = vsel %vm7223_vm13, %v5108_v13, %v1906_v4 }
 0x16d   :  { %v5116_v31 = vcombine.low %v1867_v53, %v1870_v33  ;;  %v1912_v33 = vrot.slane %v7117_v25, 6  ;;  %v6300_v25 = vld [vmem:[%s8025_s0 + $0x58] sm:$0xf] }
 0x16e   :  { %v1919_v17 = vrot.slane %v6300_v25, 6 }
 0x170   :  { %5100 = vmatmul.mubr.msk.bf16.gmra.mrb[32].mxu0 %vm421_vm4, %v5083_v0  ;;  %v1879_v0 = vrot.slane %v6292_v41, 6  ;;  %v1921_v59 = vrot.slane %v1919_v17, 4  ;;  %v1922_v41 = vrot.slane %v7141_v50, 6 }
 0x171   :  { %1758 = vmatprep.mubr.bf16.mxu0 %v6305_v1 }
 0x172   :  { %v1881_v34 = vrot.slane %v1879_v0, 4  ;;  %v1880_v38 = vsel %vm7223_vm13, %v1878_v24, %v1879_v0  ;;  %v6301_v24 = vld [vmem:[%s8025_s0 + $0x64] sm:$0xf] }
 0x174   :  { %v1883_v56 = vsel %vm7223_vm13, %v1881_v34, %v1882_v55  ;;  %v1926_v34 = vrot.slane %v6301_v24, 6  ;;  %v1843_v55 = vld [vmem:[%s8025_s0 + $0x60] sm:$0xc] }
 0x175   :  { %v5118_v45 = vcombine.low %v1880_v38, %v1883_v56  ;;  %v5110_v38 = vrot.slane %v1843_v55, 10 }
 0x176   :  { %v1928_v56 = vrot.slane %v1926_v34, 4 }
 0x177   :  { %v1927_v5 = vsel %vm7223_vm13, %v5110_v38, %v1926_v34 }
 0x178   :  { %5101 = vmatmul.mubr.msk.bf16.gmra.mrb[36].mxu0 %vm421_vm4, %v5084_v54  ;;  %v1889_v54 = vrot.slane %v6294_v51, 6  ;;  %v1931_v51 = vrot.slane %v1929_v30, 4 }
 0x179   :  { %1768 = vmatprep.mubr.bf16.mxu0 %v6305_v1 }
 0x17a   :  { %v1890_v40 = vsel %vm7223_vm13, %v1888_v58, %v1889_v54  ;;  %v1891_v43 = vrot.slane %v1889_v54, 4  ;;  %v1932_v54 = vrot.slane %v7169_v37, 6  ;;  %v6304_v37 = vld [vmem:[%s8025_s0 + $0x78] sm:$0xf] }
 0x17b   :  { %v5119_v32 = vcombine.low %v1887_v27, %v1890_v40  ;;  %v5111_v27 = vrot.slane %v1844_v39, 10  ;;  %v6303_v40 = vld [vmem:[%s8025_s0 + $0x74] sm:$0xf] }
 0x17c   :  { %v1893_v2 = vsel %vm7223_vm13, %v1891_v43, %v1892_v29  ;;  %v1936_v6 = vrot.slane %v6303_v40, 6  ;;  %v1939_v29 = vrot.slane %v6304_v37, 6 }
 0x17d   :  { %v5120_v35 = vcombine.low %v1893_v2, %v1897_v19  ;;  %v1942_v2 = vrot.slane %v7193_v36, 6  ;;  %v2248_v36 = vlaneseq }
 0x17e   :  { %v1937_v43 = vsel %vm7223_vm13, %v5111_v27, %v1936_v6  ;;  %v1938_v63 = vrot.slane %v1936_v6, 4  ;;  %v1941_v8 = vrot.slane %v1939_v29, 4 }
 0x17f   :  { %v2249_v52 = vshrl.u32 %v2248_v36, 7 }
 0x180   :  { %5102 = vmatmul.mubr.msk.bf16.gmra.mrb[40].mxu0 %vm421_vm4, %v5085_v22  ;;  %v1902_v22 = vrot.slane %v7089_v49, 6  ;;  %v1940_v19 = vsel %vm7223_vm13, %v1938_v63, %v1939_v29  ;;  %v1943_v61 = vsel %vm7223_vm13, %v1941_v8, %v1942_v2 }
 0x181   :  { %1778 = vmatprep.mubr.bf16.mxu0 %v6305_v1  ;;  %v5127_v21 = vcombine.low %v1940_v19, %v1943_v61 }
 0x182   :  { %v1903_v3 = vsel %vm7223_vm13, %v1901_v60, %v1902_v22  ;;  %v2250_v60 = vsub.s32 0, %v2249_v52  ;;  %v2246_v22 = vld [vmem:[%s8027_s2] sm:$0x3] }
 0x183   :  { %v5121_v49 = vcombine.low %v1900_v62, %v1903_v3  ;;  %v2254_v62 = vsub.s32 1, %v2249_v52 }
 0x184   :  { %v7378_v20 = vrot.slane %v2246_v22, %v2250_v60 }
 0x185   :  { %v7380_v3 = vrot.slane %v2246_v22, %v2254_v62 }
 0x188   :  { %5103 = vmatmul.mubr.msk.bf16.gmra.mrb[44].mxu0 %vm421_vm4, %v5086_v26  ;;  %v1909_v26 = vrot.slane %v6298_v10, 6 }
 0x189   :  { %2077 = vmatprep.mubr.bf16.mxu0 %v6305_v1 }
 0x18a   :  { %v1910_v23 = vsel %vm7223_vm13, %v1908_v9, %v1909_v26  ;;  %v1911_v53 = vrot.slane %v1909_v26, 4 }
 0x18b   :  { %v5122_v47 = vcombine.low %v1907_v11, %v1910_v23 }
 0x18c   :  { %v1913_v44 = vsel %vm7223_vm13, %v1911_v53, %v1912_v33  ;;  %v6163_v53 = vld [vmem:[%s8026_s3 + $0x4] ss:$8 sps:$4 sm:$0xff]  }
 0x190   :  { %5133 = vmatmul.mubr.msk.bf16.vlgmr.msra.gmra.mrb[0].mxu0 %vm421_vm4, %v5116_v31  ;;  %v6299_v31 = vld [vmem:[%s8025_s0 + $0x54] sm:$0xf] }
 0x191   :  { %2087 = vmatprep.mubr.bf16.mxu0 %v6305_v1  ;;  %v1916_v42 = vrot.slane %v6299_v31, 6 }
 0x193   :  { %v1917_v14 = vsel %vm7223_vm13, %v5109_v48, %v1916_v42  ;;  %v1918_v12 = vrot.slane %v1916_v42, 4 }
 0x194   :  { %v5123_v18 = vcombine.low %v1913_v44, %v1917_v14 }
 0x195   :  { %v1920_v0 = vsel %vm7223_vm13, %v1918_v12, %v1919_v17 }
 0x198   :  { %5134 = vmatmul.mubr.msk.bf16.gmra.mrb[4].mxu0 %vm421_vm4, %v5117_v57  ;;  %v1923_v57 = vsel %vm7223_vm13, %v1921_v59, %v1922_v41 }
 0x199   :  { %2097 = vmatprep.mubr.bf16.mxu0 %v6305_v1  ;;  %v5124_v50 = vcombine.low %v1920_v0, %v1923_v57 }
 0x1a0   :  { %5135 = vmatmul.mubr.msk.bf16.gmra.mrb[8].mxu0 %vm421_vm4, %v5118_v45  ;;  %v1930_v45 = vsel %vm7223_vm13, %v1928_v56, %v1929_v30 }
 0x1a1   :  { %2107 = vmatprep.mubr.bf16.mxu0 %v6305_v1  ;;  %v5125_v58 = vcombine.low %v1927_v5, %v1930_v45 }
 0x1a8   :  { %5136 = vmatmul.mubr.msk.bf16.gmra.mrb[12].mxu0 %vm421_vm4, %v5119_v32  ;;  %v1933_v32 = vsel %vm7223_vm13, %v1931_v51, %v1932_v54 }
 0x1a9   :  { %2117 = vmatprep.mubr.bf16.mxu0 %v6305_v1  ;;  %v5126_v7 = vcombine.low %v1933_v32, %v1937_v43 }
 0x1b0   :  { %5137 = vmatmul.mubr.msk.bf16.gmra.mrb[16].mxu0 %vm421_vm4, %v5120_v35  ;;  %v6148_v35 = vld [vmem:[%s8026_s3 + $0x14] ss:$8 sps:$4 sm:$0xff]  }
 0x1b1   :  { %2127 = vmatprep.mubr.bf16.mxu0 %v6305_v1  ;;  %5170 = vmatprep.mubr.msk.bf16.mxu1 %vm2510_vm14, %v6148_v35 }
 0x1b8   :  { %5138 = vmatmul.mubr.msk.bf16.gmra.mrb[20].mxu0 %vm421_vm4, %v5121_v49 }
 0x1b9   :  { %2137 = vmatprep.mubr.bf16.mxu0 %v6305_v1 }
 0x1c0   :  { %5139 = vmatmul.mubr.msk.bf16.gmra.mrb[24].mxu0 %vm421_vm4, %v5122_v47 }
 0x1c1   :  { %2147 = vmatprep.mubr.bf16.mxu0 %v6305_v1 }
 0x1c8   :  { %5140 = vmatmul.mubr.msk.bf16.gmra.mrb[28].mxu0 %vm421_vm4, %v5123_v18 }
 0x1c9   :  { %2157 = vmatprep.mubr.bf16.mxu0 %v6305_v1 }
 0x1d0   :  { %5141 = vmatmul.mubr.msk.bf16.gmra.mrb[32].mxu0 %vm421_vm4, %v5124_v50 }
 0x1d1   :  { %2167 = vmatprep.mubr.bf16.mxu0 %v6305_v1 }
 0x1d8   :  { %5142 = vmatmul.mubr.msk.bf16.gmra.mrb[36].mxu0 %vm421_vm4, %v5125_v58 }
 0x1d9   :  { %2177 = vmatprep.mubr.bf16.mxu0 %v6305_v1 }
 0x1e0   :  { %5143 = vmatmul.mubr.msk.bf16.gmra.mrb[40].mxu0 %vm421_vm4, %v5126_v7 }
 0x1e1   :  { %2187 = vmatprep.mubr.bf16.mxu0 %v6305_v1 }
 0x1e8   :  { %5144 = vmatmul.mubr.msk.bf16.gmra.mrb[44].mxu0 %vm421_vm4, %v5127_v21  ;;  %vm6307_vm4 = vmmov 0  }
 0x1e9   :  { %5169 = vmatprep.mubr.msk.bf16.mxu0 %vm2510_vm14, %v6163_v53 }
 0x263   :  { %v2079_v16 = vpop.f32.mrb[0].mxu0 }
 0x264   :  { %v2258_v4 = vadd.f32 %v7378_v20, %v2079_v16  ;;  %v2081_v15 = vpop.f32.mrb[1].mxu0 }
 0x265   :  { %v2259_v49 = vadd.f32 %v7380_v3, %v2081_v15  ;;  %v2083_v13 = vpop.f32.mrb[2].mxu0 }
 0x266   :  { %v2260_v9 = vadd.f32 %v7378_v20, %v2083_v13  ;;  %v2085_v10 = vpop.f32.mrb[3].mxu0  ;;  %v2306_v11 = vmax.f32 %v2258_v4, 0.0 }
 0x267   :  { %v2261_v26 = vadd.f32 %v7380_v3, %v2085_v10  ;;  %v2307_v28 = vmax.f32 %v2259_v49, 0.0 }
 0x268   :  { %v2308_v23 = vmax.f32 %v2260_v9, 0.0 }
 0x269   :  { %v2309_v47 = vmax.f32 %v2261_v26, 0.0 }
 0x26a   :  { %v2354_v33 = vpack.c.bf16 %v2308_v23, %v2306_v11 }
 0x26b   :  { %v2355_v48 = vpack.c.bf16 %v2309_v47, %v2307_v28  ;;  %v2089_v31 = vpop.f32.mrb[4].mxu0 }
 0x26c   :  { %v2262_v42 = vadd.f32 %v7378_v20, %v2089_v31  ;;  %v2091_v44 = vpop.f32.mrb[5].mxu0 }
 0x26d   :  { %v2263_v14 = vadd.f32 %v7380_v3, %v2091_v44  ;;  %v2093_v25 = vpop.f32.mrb[6].mxu0  ;;  %2547 = vmatprep.subr.bf16.mxu0 %v2355_v48  ;;  %5848 = vmatprep.subr.bf16.mxu1 %v2355_v48 }
 0x26e   :  { %v2264_v17 = vadd.f32 %v7378_v20, %v2093_v25  ;;  %v2095_v18 = vpop.f32.mrb[7].mxu0  ;;  %2548 = vmatpush1.bf16.msra.mxu0 %v2354_v33  ;;  %5860 = vmatpush1.bf16.msra.mxu1 %v2354_v33  ;;  %v2310_v59 = vmax.f32 %v2262_v42, 0.0 }
 0x26f   :  { %v2265_v12 = vadd.f32 %v7380_v3, %v2095_v18  ;;  %v2311_v0 = vmax.f32 %v2263_v14, 0.0 }
 0x270   :  { %v2312_v41 = vmax.f32 %v2264_v17, 0.0 }
 0x271   :  { %v2313_v57 = vmax.f32 %v2265_v12, 0.0 }
 0x272   :  { %v2356_v24 = vpack.c.bf16 %v2312_v41, %v2310_v59 }
 0x273   :  { %v2357_v34 = vpack.c.bf16 %v2313_v57, %v2311_v0  ;;  %v2099_v55 = vpop.f32.mrb[8].mxu0 }
 0x274   :  { %v2266_v50 = vadd.f32 %v7378_v20, %v2099_v55  ;;  %v2101_v38 = vpop.f32.mrb[9].mxu0 }
 0x275   :  { %v2267_v56 = vadd.f32 %v7380_v3, %v2101_v38  ;;  %v2103_v46 = vpop.f32.mrb[10].mxu0  ;;  %2549 = vmatprep.subr.bf16.mxu0 %v2357_v34  ;;  %5849 = vmatprep.subr.bf16.mxu1 %v2357_v34 }
 0x276   :  { %v2268_v30 = vadd.f32 %v7378_v20, %v2103_v46  ;;  %v2105_v5 = vpop.f32.mrb[11].mxu0  ;;  %2550 = vmatpush1.bf16.msra.mxu0 %v2356_v24  ;;  %5861 = vmatpush1.bf16.msra.mxu1 %v2356_v24  ;;  %v2314_v39 = vmax.f32 %v2266_v50, 0.0 }
 0x277   :  { %v2269_v45 = vadd.f32 %v7380_v3, %v2105_v5  ;;  %v2315_v51 = vmax.f32 %v2267_v56, 0.0 }
 0x278   :  { %v2316_v58 = vmax.f32 %v2268_v30, 0.0 }
 0x279   :  { %v2317_v54 = vmax.f32 %v2269_v45, 0.0 }
 0x27a   :  { %v2358_v27 = vpack.c.bf16 %v2316_v58, %v2314_v39 }
 0x27b   :  { %v2359_v40 = vpack.c.bf16 %v2317_v54, %v2315_v51  ;;  %v2109_v6 = vpop.f32.mrb[12].mxu0 }
 0x27c   :  { %v2270_v32 = vadd.f32 %v7378_v20, %v2109_v6  ;;  %v2111_v43 = vpop.f32.mrb[13].mxu0 }
 0x27d   :  { %v2271_v37 = vadd.f32 %v7380_v3, %v2111_v43  ;;  %v2113_v29 = vpop.f32.mrb[14].mxu0  ;;  %2551 = vmatprep.subr.bf16.mxu0 %v2359_v40  ;;  %5850 = vmatprep.subr.bf16.mxu1 %v2359_v40 }
 0x27e   :  { %v2272_v7 = vadd.f32 %v7378_v20, %v2113_v29  ;;  %v2115_v63 = vpop.f32.mrb[15].mxu0  ;;  %2552 = vmatpush1.bf16.msra.mxu0 %v2358_v27  ;;  %5862 = vmatpush1.bf16.msra.mxu1 %v2358_v27  ;;  %v2318_v2 = vmax.f32 %v2270_v32, 0.0 }
 0x27f   :  { %v2273_v8 = vadd.f32 %v7380_v3, %v2115_v63  ;;  %v2319_v61 = vmax.f32 %v2271_v37, 0.0 }
 0x280   :  { %v2320_v19 = vmax.f32 %v2272_v7, 0.0 }
 0x281   :  { %v2321_v21 = vmax.f32 %v2273_v8, 0.0 }
 0x282   :  { %v2360_v35 = vpack.c.bf16 %v2320_v19, %v2318_v2 }
 0x283   :  { %v2361_v36 = vpack.c.bf16 %v2321_v21, %v2319_v61  ;;  %v2119_v52 = vpop.f32.mrb[16].mxu0 }
 0x284   :  { %v2274_v60 = vadd.f32 %v7378_v20, %v2119_v52  ;;  %v2121_v22 = vpop.f32.mrb[17].mxu0 }
 0x285   :  { %v2275_v62 = vadd.f32 %v7380_v3, %v2121_v22  ;;  %v2123_v16 = vpop.f32.mrb[18].mxu0  ;;  %2553 = vmatprep.subr.bf16.mxu0 %v2361_v36  ;;  %5851 = vmatprep.subr.bf16.mxu1 %v2361_v36 }
 0x286   :  { %v2276_v4 = vadd.f32 %v7378_v20, %v2123_v16  ;;  %v2125_v15 = vpop.f32.mrb[19].mxu0  ;;  %2554 = vmatpush1.bf16.msra.mxu0 %v2360_v35  ;;  %5863 = vmatpush1.bf16.msra.mxu1 %v2360_v35  ;;  %v2322_v13 = vmax.f32 %v2274_v60, 0.0 }
 0x287   :  { %v2277_v49 = vadd.f32 %v7380_v3, %v2125_v15  ;;  %v2323_v10 = vmax.f32 %v2275_v62, 0.0 }
 0x288   :  { %v2324_v9 = vmax.f32 %v2276_v4, 0.0 }
 0x289   :  { %v2325_v26 = vmax.f32 %v2277_v49, 0.0 }
 0x28a   :  { %v2362_v11 = vpack.c.bf16 %v2324_v9, %v2322_v13 }
 0x28b   :  { %v2363_v23 = vpack.c.bf16 %v2325_v26, %v2323_v10  ;;  %v2129_v28 = vpop.f32.mrb[20].mxu0 }
 0x28c   :  { %v2278_v47 = vadd.f32 %v7378_v20, %v2129_v28  ;;  %v2131_v53 = vpop.f32.mrb[21].mxu0 }
 0x28d   :  { %v2279_v33 = vadd.f32 %v7380_v3, %v2131_v53  ;;  %v2133_v48 = vpop.f32.mrb[22].mxu0  ;;  %2555 = vmatprep.subr.bf16.mxu0 %v2363_v23  ;;  %5852 = vmatprep.subr.bf16.mxu1 %v2363_v23 }
 0x28e   :  { %v2280_v31 = vadd.f32 %v7378_v20, %v2133_v48  ;;  %v2135_v42 = vpop.f32.mrb[23].mxu0  ;;  %2556 = vmatpush1.bf16.msra.mxu0 %v2362_v11  ;;  %5864 = vmatpush1.bf16.msra.mxu1 %v2362_v11  ;;  %v2326_v14 = vmax.f32 %v2278_v47, 0.0 }
 0x28f   :  { %v2281_v44 = vadd.f32 %v7380_v3, %v2135_v42  ;;  %v2327_v17 = vmax.f32 %v2279_v33, 0.0 }
 0x290   :  { %v2328_v25 = vmax.f32 %v2280_v31, 0.0 }
 0x291   :  { %v2329_v18 = vmax.f32 %v2281_v44, 0.0 }
 0x292   :  { %v2364_v12 = vpack.c.bf16 %v2328_v25, %v2326_v14 }
 0x293   :  { %v2365_v59 = vpack.c.bf16 %v2329_v18, %v2327_v17  ;;  %v2139_v41 = vpop.f32.mrb[24].mxu0 }
 0x294   :  { %v2282_v0 = vadd.f32 %v7378_v20, %v2139_v41  ;;  %v2141_v57 = vpop.f32.mrb[25].mxu0 }
 0x295   :  { %v2283_v24 = vadd.f32 %v7380_v3, %v2141_v57  ;;  %v2143_v34 = vpop.f32.mrb[26].mxu0  ;;  %2557 = vmatprep.subr.bf16.mxu0 %v2365_v59  ;;  %5853 = vmatprep.subr.bf16.mxu1 %v2365_v59 }
 0x296   :  { %v2284_v55 = vadd.f32 %v7378_v20, %v2143_v34  ;;  %v2145_v50 = vpop.f32.mrb[27].mxu0  ;;  %2558 = vmatpush1.bf16.msra.mxu0 %v2364_v12  ;;  %5865 = vmatpush1.bf16.msra.mxu1 %v2364_v12  ;;  %v2330_v56 = vmax.f32 %v2282_v0, 0.0 }
 0x297   :  { %v2285_v38 = vadd.f32 %v7380_v3, %v2145_v50  ;;  %v2331_v30 = vmax.f32 %v2283_v24, 0.0 }
 0x298   :  { %v2332_v46 = vmax.f32 %v2284_v55, 0.0 }
 0x299   :  { %v2333_v5 = vmax.f32 %v2285_v38, 0.0 }
 0x29a   :  { %v2366_v45 = vpack.c.bf16 %v2332_v46, %v2330_v56 }
 0x29b   :  { %v2367_v39 = vpack.c.bf16 %v2333_v5, %v2331_v30  ;;  %v2149_v58 = vpop.f32.mrb[28].mxu0 }
 0x29c   :  { %v2286_v51 = vadd.f32 %v7378_v20, %v2149_v58  ;;  %v2151_v54 = vpop.f32.mrb[29].mxu0 }
 0x29d   :  { %v2287_v27 = vadd.f32 %v7380_v3, %v2151_v54  ;;  %v2153_v40 = vpop.f32.mrb[30].mxu0  ;;  %2559 = vmatprep.subr.bf16.mxu0 %v2367_v39  ;;  %5854 = vmatprep.subr.bf16.mxu1 %v2367_v39 }
 0x29e   :  { %v2288_v6 = vadd.f32 %v7378_v20, %v2153_v40  ;;  %v2155_v32 = vpop.f32.mrb[31].mxu0  ;;  %2560 = vmatpush1.bf16.msra.mxu0 %v2366_v45  ;;  %5866 = vmatpush1.bf16.msra.mxu1 %v2366_v45  ;;  %v2334_v37 = vmax.f32 %v2286_v51, 0.0 }
 0x29f   :  { %v2289_v43 = vadd.f32 %v7380_v3, %v2155_v32  ;;  %v2335_v7 = vmax.f32 %v2287_v27, 0.0 }
 0x2a0   :  { %v2336_v29 = vmax.f32 %v2288_v6, 0.0 }
 0x2a1   :  { %v2337_v63 = vmax.f32 %v2289_v43, 0.0 }
 0x2a2   :  { %v2368_v8 = vpack.c.bf16 %v2336_v29, %v2334_v37  ;;  %v6146_v29 = vld [vmem:[%s8026_s3 + $0x10] ss:$8 sps:$4 sm:$0xff]  }
 0x2a3   :  { %v2369_v2 = vpack.c.bf16 %v2337_v63, %v2335_v7  ;;  %v2159_v19 = vpop.f32.mrb[32].mxu0  ;;  %v6182_v7 = vld [vmem:[%s8028_s4] sm:$0xff]   ;;  %v6183_v63 = vld [vmem:[%s8028_s4 + $0x8] sm:$0xff]  }
 0x2a4   :  { %v2290_v61 = vadd.f32 %v7378_v20, %v2159_v19  ;;  %v2161_v21 = vpop.f32.mrb[33].mxu0  ;;  %v6184_v19 = vld [vmem:[%s8028_s4 + $0x10] sm:$0xff]  }
 0x2a5   :  { %v2291_v35 = vadd.f32 %v7380_v3, %v2161_v21  ;;  %v2163_v36 = vpop.f32.mrb[34].mxu0  ;;  %2561 = vmatprep.subr.bf16.mxu0 %v2369_v2  ;;  %5855 = vmatprep.subr.bf16.mxu1 %v2369_v2  ;;  %v6152_v2 = vld [vmem:[%s8026_s3 + $0x34] ss:$8 sps:$4 sm:$0xff]   ;;  %v6154_v21 = vld [vmem:[%s8026_s3 + $0x30] ss:$8 sps:$4 sm:$0xff]  }
 0x2a6   :  { %v2292_v52 = vadd.f32 %v7378_v20, %v2163_v36  ;;  %v2165_v60 = vpop.f32.mrb[35].mxu0  ;;  %2562 = vmatpush1.bf16.msra.mxu0 %v2368_v8  ;;  %5867 = vmatpush1.bf16.msra.mxu1 %v2368_v8  ;;  %v2338_v62 = vmax.f32 %v2290_v61, 0.0  ;;  %v6151_v8 = vld [vmem:[%s8026_s3 + $0x20] ss:$8 sps:$4 sm:$0xff]   ;;  %v6185_v61 = vld [vmem:[%s8028_s4 + $0x18] sm:$0xff]  }
 0x2a7   :  { %v2293_v22 = vadd.f32 %v7380_v3, %v2165_v60  ;;  %v2339_v4 = vmax.f32 %v2291_v35, 0.0  ;;  %v6155_v35 = vld [vmem:[%s8026_s3 + $0x44] ss:$8 sps:$4 sm:$0xff]   ;;  %v6157_v36 = vld [vmem:[%s8026_s3 + $0x40] ss:$8 sps:$4 sm:$0xff]  }
 0x2a8   :  { %v2340_v16 = vmax.f32 %v2292_v52, 0.0  ;;  %v6158_v52 = vld [vmem:[%s8026_s3 + $0x54] ss:$8 sps:$4 sm:$0xff]   ;;  %v6160_v60 = vld [vmem:[%s8026_s3 + $0x50] ss:$8 sps:$4 sm:$0xff]  }
 0x2a9   :  { %v2341_v15 = vmax.f32 %v2293_v22, 0.0  ;;  %v6164_v22 = vld [vmem:[%s8026_s3 + $0x64] ss:$8 sps:$4 sm:$0xff]  }
 0x2aa   :  { %v2370_v49 = vpack.c.bf16 %v2340_v16, %v2338_v62  ;;  %v6166_v62 = vld [vmem:[%s8026_s3 + $0x60] ss:$8 sps:$4 sm:$0xff]   ;;  %v6167_v16 = vld [vmem:[%s8026_s3 + $0x74] ss:$8 sps:$4 sm:$0xff]  }
 0x2ab   :  { %v2371_v13 = vpack.c.bf16 %v2341_v15, %v2339_v4  ;;  %v2169_v9 = vpop.f32.mrb[36].mxu0  ;;  %v6169_v4 = vld [vmem:[%s8026_s3 + $0x70] ss:$8 sps:$4 sm:$0xff]   ;;  %v6170_v15 = vld [vmem:[%s8026_s3 + $0x84] ss:$8 sps:$4 sm:$0xff]  }
 0x2ac   :  { %v2294_v10 = vadd.f32 %v7378_v20, %v2169_v9  ;;  %v2171_v26 = vpop.f32.mrb[37].mxu0  ;;  %v6175_v9 = vld [vmem:[%s8026_s3 + $0x90] ss:$8 sps:$4 sm:$0xff]  }
 0x2ad   :  { %v2295_v11 = vadd.f32 %v7380_v3, %v2171_v26  ;;  %v2173_v23 = vpop.f32.mrb[38].mxu0  ;;  %2563 = vmatprep.subr.bf16.mxu0 %v2371_v13  ;;  %5856 = vmatprep.subr.bf16.mxu1 %v2371_v13  ;;  %v6173_v13 = vld [vmem:[%s8026_s3 + $0x94] ss:$8 sps:$4 sm:$0xff]   ;;  %v6178_v26 = vld [vmem:[%s8026_s3 + $0xa0] ss:$8 sps:$4 sm:$0xff]  }
 0x2ae   :  { %v2296_v28 = vadd.f32 %v7378_v20, %v2173_v23  ;;  %v2175_v47 = vpop.f32.mrb[39].mxu0  ;;  %2564 = vmatpush1.bf16.msra.mxu0 %v2370_v49  ;;  %5868 = vmatpush1.bf16.msra.mxu1 %v2370_v49  ;;  %v2342_v33 = vmax.f32 %v2294_v10, 0.0  ;;  %v6172_v49 = vld [vmem:[%s8026_s3 + $0x80] ss:$8 sps:$4 sm:$0xff]   ;;  %v6176_v10 = vld [vmem:[%s8026_s3 + $0xa4] ss:$8 sps:$4 sm:$0xff]  }
 0x2af   :  { %v2297_v53 = vadd.f32 %v7380_v3, %v2175_v47  ;;  %v2343_v31 = vmax.f32 %v2295_v11, 0.0  ;;  %v6179_v11 = vld [vmem:[%s8026_s3 + $0xb4] ss:$8 sps:$4 sm:$0xff]   ;;  %v6181_v23 = vld [vmem:[%s8026_s3 + $0xb0] ss:$8 sps:$4 sm:$0xff]   ;;  %v6187_v47 = vld [vmem:[%s8028_s4 + $0x28] sm:$0xff]  }
 0x2b0   :  { %v2344_v48 = vmax.f32 %v2296_v28, 0.0  ;;  %v6186_v28 = vld [vmem:[%s8028_s4 + $0x20] sm:$0xff]  }
 0x2b1   :  { %v2345_v42 = vmax.f32 %v2297_v53, 0.0  ;;  %v6188_v53 = vld [vmem:[%s8028_s4 + $0x30] sm:$0xff]  }
 0x2b2   :  { %v2372_v44 = vpack.c.bf16 %v2344_v48, %v2342_v33  ;;  %v6189_v33 = vld [vmem:[%s8028_s4 + $0x38] sm:$0xff]   ;;  %v6190_v48 = vld [vmem:[%s8028_s4 + $0x40] sm:$0xff]  }
 0x2b3   :  { %v2373_v14 = vpack.c.bf16 %v2345_v42, %v2343_v31  ;;  %v2179_v25 = vpop.f32.mrb[40].mxu0 }
 0x2b4   :  { %v2298_v17 = vadd.f32 %v7378_v20, %v2179_v25  ;;  %v2181_v18 = vpop.f32.mrb[41].mxu0 }
 0x2b5   :  { %v2299_v12 = vadd.f32 %v7380_v3, %v2181_v18  ;;  %v2183_v59 = vpop.f32.mrb[42].mxu0  ;;  %2565 = vmatprep.subr.bf16.mxu0 %v2373_v14  ;;  %5857 = vmatprep.subr.bf16.mxu1 %v2373_v14 }
 0x2b6   :  { %v2300_v41 = vadd.f32 %v7378_v20, %v2183_v59  ;;  %v2185_v0 = vpop.f32.mrb[43].mxu0  ;;  %2566 = vmatpush1.bf16.msra.mxu0 %v2372_v44  ;;  %5869 = vmatpush1.bf16.msra.mxu1 %v2372_v44  ;;  %v2346_v24 = vmax.f32 %v2298_v17, 0.0 }
 0x2b7   :  { %v2301_v57 = vadd.f32 %v7380_v3, %v2185_v0  ;;  %v2347_v55 = vmax.f32 %v2299_v12, 0.0 }
 0x2b8   :  { %v2348_v34 = vmax.f32 %v2300_v41, 0.0 }
 0x2b9   :  { %v2349_v50 = vmax.f32 %v2301_v57, 0.0 }
 0x2ba   :  { %v2374_v38 = vpack.c.bf16 %v2348_v34, %v2346_v24 }
 0x2bb   :  { %v2375_v56 = vpack.c.bf16 %v2349_v50, %v2347_v55  ;;  %v2189_v46 = vpop.f32.mrb[44].mxu0 }
 0x2bc   :  { %v2302_v30 = vadd.f32 %v7378_v20, %v2189_v46  ;;  %v2191_v5 = vpop.f32.mrb[45].mxu0 }
 0x2bd   :  { %v2303_v45 = vadd.f32 %v7380_v3, %v2191_v5  ;;  %v2193_v39 = vpop.f32.mrb[46].mxu0  ;;  %2567 = vmatprep.subr.bf16.mxu0 %v2375_v56  ;;  %5858 = vmatprep.subr.bf16.mxu1 %v2375_v56 }
 0x2be   :  { %v2304_v58 = vadd.f32 %v7378_v20, %v2193_v39  ;;  %v2195_v51 = vpop.f32.mrb[47].mxu0  ;;  %2568 = vmatpush1.bf16.msra.mxu0 %v2374_v38  ;;  %5870 = vmatpush1.bf16.msra.mxu1 %v2374_v38  ;;  %v2350_v27 = vmax.f32 %v2302_v30, 0.0  ;;  %v6161_v20 = vld [vmem:[%s8026_s3] ss:$8 sps:$4 sm:$0xff]  }
 0x2bf   :  { %v2305_v54 = vadd.f32 %v7380_v3, %v2195_v51  ;;  %v2351_v6 = vmax.f32 %v2303_v45, 0.0  ;;  %v6149_v3 = vld [vmem:[%s8026_s3 + $0x24] ss:$8 sps:$4 sm:$0xff]  }
 0x2c0   :  { %v2352_v40 = vmax.f32 %v2304_v58, 0.0 }
 0x2c1   :  { %v2353_v32 = vmax.f32 %v2305_v54, 0.0 }
 0x2c2   :  { %v2376_v43 = vpack.c.bf16 %v2352_v40, %v2350_v27 }
 0x2c3   :  { %v2377_v37 = vpack.c.bf16 %v2353_v32, %v2351_v6 }
 0x2c5   :  { %2569 = vmatprep.subr.bf16.mxu0 %v2377_v37  ;;  %5859 = vmatprep.subr.bf16.mxu1 %v2377_v37 }
 0x2c6   :  { %2570 = vmatpush1.bf16.msra.mxu0 %v2376_v43  ;;  %5871 = vmatpush1.bf16.msra.mxu1 %v2376_v43 }
 0x2c7   :  { %2827 = vmatprep.subr.bf16.mxu1 %v6305_v1 }
 0x2c9   :  { %2590 = vmatmul.mubr.bf16.vlgmr.msra.gmra.mrb[0].mxu1 %v6146_v29  ;;  %2580 = vmatmul.mubr.bf16.vlgmr.msra.gmra.mrb[48].mxu0 %v6161_v20 }
 0x2ca   :  { %5171 = vmatprep.mubr.msk.bf16.mxu1 %vm2510_vm14, %v6149_v3  ;;  %2828 = vmatpush1.bf16.msra.mxu1 %v6182_v7  ;;  %v6191_v3 = vld [vmem:[%s8028_s4 + $0x48] sm:$0xff]  }
 0x2cb   :  { %2829 = vmatprep.subr.bf16.mxu1 %v6305_v1 }
 0x2ce   :  { %2830 = vmatpush1.bf16.msra.mxu1 %v6183_v63 }
 0x2cf   :  { %2831 = vmatprep.subr.bf16.mxu1 %v6305_v1 }
 0x2d1   :  { %2600 = vmatmul.mubr.bf16.gmra.mrb[4].mxu1 %v6151_v8 }
 0x2d2   :  { %5172 = vmatprep.mubr.msk.bf16.mxu1 %vm2510_vm14, %v6152_v2  ;;  %2832 = vmatpush1.bf16.msra.mxu1 %v6184_v19 }
 0x2d3   :  { %2833 = vmatprep.subr.bf16.mxu1 %v6305_v1 }
 0x2d6   :  { %2834 = vmatpush1.bf16.msra.mxu1 %v6185_v61  ;;  %v6192_v61 = vld [vmem:[%s8028_s4 + $0x50] sm:$0xff]  }
 0x2d7   :  { %2835 = vmatprep.subr.bf16.mxu1 %v6305_v1 }
 0x2d9   :  { %2610 = vmatmul.mubr.bf16.gmra.mrb[8].mxu1 %v6154_v21 }
 0x2da   :  { %5173 = vmatprep.mubr.msk.bf16.mxu1 %vm2510_vm14, %v6155_v35  ;;  %2836 = vmatpush1.bf16.msra.mxu1 %v6186_v28  ;;  %v6195_v28 = vld [vmem:[%s8028_s4 + $0x68] sm:$0xff]  }
 0x2db   :  { %2837 = vmatprep.subr.bf16.mxu1 %v6305_v1 }
 0x2de   :  { %2838 = vmatpush1.bf16.msra.mxu1 %v6187_v47 }
 0x2df   :  { %2839 = vmatprep.subr.bf16.mxu1 %v6305_v1 }
 0x2e1   :  { %2620 = vmatmul.mubr.bf16.gmra.mrb[12].mxu1 %v6157_v36 }
 0x2e2   :  { %5174 = vmatprep.mubr.msk.bf16.mxu1 %vm2510_vm14, %v6158_v52  ;;  %2840 = vmatpush1.bf16.msra.mxu1 %v6188_v53 }
 0x2e3   :  { %2841 = vmatprep.subr.bf16.mxu1 %v6305_v1 }
 0x2e6   :  { %2842 = vmatpush1.bf16.msra.mxu1 %v6189_v33 }
 0x2e7   :  { %2843 = vmatprep.subr.bf16.mxu1 %v6305_v1 }
 0x2e9   :  { %2630 = vmatmul.mubr.bf16.gmra.mrb[16].mxu1 %v6160_v60 }
 0x2ea   :  { %5175 = vmatprep.mubr.msk.bf16.mxu1 %vm2510_vm14, %v6164_v22  ;;  %2844 = vmatpush1.bf16.msra.mxu1 %v6190_v48  ;;  %v6193_v22 = vld [vmem:[%s8028_s4 + $0x58] sm:$0xff]  }
 0x2eb   :  { %2981 = vmatprep.subr.bf16.mxu1 %v6305_v1 }
 0x2f1   :  { %2640 = vmatmul.mubr.bf16.gmra.mrb[20].mxu1 %v6166_v62 }
 0x2f2   :  { %5176 = vmatprep.mubr.msk.bf16.mxu1 %vm2510_vm14, %v6167_v16 }
 0x2f9   :  { %2650 = vmatmul.mubr.bf16.gmra.mrb[24].mxu1 %v6169_v4 }
 0x2fa   :  { %5177 = vmatprep.mubr.msk.bf16.mxu1 %vm2510_vm14, %v6170_v15 }
 0x301   :  { %2660 = vmatmul.mubr.bf16.gmra.mrb[28].mxu1 %v6172_v49 }
 0x302   :  { %5178 = vmatprep.mubr.msk.bf16.mxu1 %vm2510_vm14, %v6173_v13  ;;  %v6194_v13 = vld [vmem:[%s8028_s4 + $0x60] sm:$0xff]  }
 0x309   :  { %2670 = vmatmul.mubr.bf16.gmra.mrb[32].mxu1 %v6175_v9 }
 0x30a   :  { %5179 = vmatprep.mubr.msk.bf16.mxu1 %vm2510_vm14, %v6176_v10 }
 0x311   :  { %2680 = vmatmul.mubr.bf16.gmra.mrb[36].mxu1 %v6178_v26 }
 0x312   :  { %5180 = vmatprep.mubr.msk.bf16.mxu1 %vm2510_vm14, %v6179_v11 }
 0x319   :  { %2690 = vmatmul.mubr.bf16.gmra.mrb[40].mxu1 %v6181_v23 }
 0x39c   :  { %v2591_v31 = vpop.f32.mrb[0].mxu1  ;;  %v2581_v42 = vpop.f32.mrb[48].mxu0 }
 0x39d   :  { %v2593_v44 = vpop.f32.mrb[1].mxu1  ;;  %v2583_v14 = vpop.f32.mrb[49].mxu0 }
 0x39e   :  { %v2595_v25 = vpop.f32.mrb[2].mxu1  ;;  %v2585_v17 = vpop.f32.mrb[50].mxu0 }
 0x39f   :  { %v2597_v18 = vpop.f32.mrb[3].mxu1  ;;  %v2587_v12 = vpop.f32.mrb[51].mxu0 }
 0x3a4   :  { %v2601_v59 = vpop.f32.mrb[4].mxu1 }
 0x3a5   :  { %v2603_v41 = vpop.f32.mrb[5].mxu1 }
 0x3a6   :  { %v2605_v0 = vpop.f32.mrb[6].mxu1 }
 0x3a7   :  { %v2607_v57 = vpop.f32.mrb[7].mxu1 }
 0x3ac   :  { %v7547_v24 = vpop.f32.mrb[8].mxu1 }
 0x3ad   :  { %v7549_v34 = vpop.f32.mrb[9].mxu1 }
 0x3ae   :  { %v7551_v55 = vpop.f32.mrb[10].mxu1 }
 0x3af   :  { %v7553_v50 = vpop.f32.mrb[11].mxu1 }
 0x3b4   :  { %v7555_v38 = vpop.f32.mrb[12].mxu1 }
 0x3b5   :  { %v7557_v56 = vpop.f32.mrb[13].mxu1 }
 0x3b6   :  { %v7559_v46 = vpop.f32.mrb[14].mxu1 }
 0x3b7   :  { %v7561_v30 = vpop.f32.mrb[15].mxu1 }
 0x3bc   :  { %v7563_v5 = vpop.f32.mrb[16].mxu1 }
 0x3bd   :  { %v7565_v45 = vpop.f32.mrb[17].mxu1 }
 0x3be   :  { %v7567_v39 = vpop.f32.mrb[18].mxu1 }
 0x3bf   :  { %v7569_v58 = vpop.f32.mrb[19].mxu1 }
 0x3c4   :  { %v2641_v51 = vpop.f32.mrb[20].mxu1 }
 0x3c5   :  { %v2700_v54 = vmax.f32 %v2581_v42, %v2641_v51  ;;  %v2643_v27 = vpop.f32.mrb[21].mxu1  ;;  %v6196_v42 = vld [vmem:[%s8028_s4 + $0x70] sm:$0xff]  }
 0x3c6   :  { %v2701_v40 = vmax.f32 %v2583_v14, %v2643_v27  ;;  %v2645_v6 = vpop.f32.mrb[22].mxu1 }
 0x3c7   :  { %v2702_v32 = vmax.f32 %v2585_v17, %v2645_v6  ;;  %v2647_v43 = vpop.f32.mrb[23].mxu1 }
 0x3c8   :  { %v2703_v37 = vmax.f32 %v2587_v12, %v2647_v43  ;;  %v6197_v12 = vld [vmem:[%s8028_s4 + $0x78] sm:$0xff]  }
 0x3c9   :  { %v7571_v29 = vpack.c.bf16 %v2702_v32, %v2700_v54 }
 0x3ca   :  { %v7573_v20 = vpack.c.bf16 %v2703_v37, %v2701_v40 }
 0x3cc   :  { %v2651_v7 = vpop.f32.mrb[24].mxu1  ;;  %5190 = vmatprep.mubr.msk.bf16.mxu1 %vm2808_vm15, %v7573_v20 }
 0x3cd   :  { %v2704_v63 = vmax.f32 %v2591_v31, %v2651_v7  ;;  %v2653_v8 = vpop.f32.mrb[25].mxu1  ;;  %2860 = vmatmul.mubr.bf16.vlgmr.msra.gmra.mrb[44].mxu1 %v7571_v29 }
 0x3ce   :  { %v2705_v2 = vmax.f32 %v2593_v44, %v2653_v8  ;;  %v2655_v19 = vpop.f32.mrb[26].mxu1  ;;  %2982 = vmatpush1.bf16.msra.mxu1 %v6191_v3 }
 0x3cf   :  { %v2706_v21 = vmax.f32 %v2595_v25, %v2655_v19  ;;  %v2657_v35 = vpop.f32.mrb[27].mxu1  ;;  %2983 = vmatprep.subr.bf16.mxu1 %v6305_v1 }
 0x3d0   :  { %v2707_v36 = vmax.f32 %v2597_v18, %v2657_v35 }
 0x3d1   :  { %v7585_v52 = vpack.c.bf16 %v2706_v21, %v2704_v63 }
 0x3d2   :  { %v7587_v60 = vpack.c.bf16 %v2707_v36, %v2705_v2  ;;  %2984 = vmatpush1.bf16.msra.mxu1 %v6192_v61 }
 0x3d3   :  { %2985 = vmatprep.subr.bf16.mxu1 %v6305_v1 }
 0x3d4   :  { %v2661_v62 = vpop.f32.mrb[28].mxu1  ;;  %5191 = vmatprep.mubr.msk.bf16.mxu1 %vm2808_vm15, %v7587_v60 }
 0x3d5   :  { %v2708_v16 = vmax.f32 %v2601_v59, %v2661_v62  ;;  %v2663_v4 = vpop.f32.mrb[29].mxu1  ;;  %2868 = vmatmul.mubr.bf16.gmra.mrb[48].mxu1 %v7585_v52 }
 0x3d6   :  { %v2709_v15 = vmax.f32 %v2603_v41, %v2663_v4  ;;  %v2665_v49 = vpop.f32.mrb[30].mxu1  ;;  %2986 = vmatpush1.bf16.msra.mxu1 %v6193_v22 }
 0x3d7   :  { %v2710_v9 = vmax.f32 %v2605_v0, %v2665_v49  ;;  %v2667_v10 = vpop.f32.mrb[31].mxu1  ;;  %2987 = vmatprep.subr.bf16.mxu1 %v6305_v1 }
 0x3d8   :  { %v2711_v26 = vmax.f32 %v2607_v57, %v2667_v10 }
 0x3d9   :  { %v2728_v11 = vpack.c.bf16 %v2710_v9, %v2708_v16 }
 0x3da   :  { %v2729_v23 = vpack.c.bf16 %v2711_v26, %v2709_v15  ;;  %2988 = vmatpush1.bf16.msra.mxu1 %v6194_v13 }
 0x3db   :  { %2989 = vmatprep.subr.bf16.mxu1 %v6305_v1 }
 0x3dc   :  { %v2671_v47 = vpop.f32.mrb[32].mxu1  ;;  %5192 = vmatprep.mubr.msk.bf16.mxu1 %vm2808_vm15, %v2729_v23 }
 0x3dd   :  { %v2712_v53 = vmax.f32 %v7547_v24, %v2671_v47  ;;  %v2673_v33 = vpop.f32.mrb[33].mxu1  ;;  %2876 = vmatmul.mubr.bf16.gmra.mrb[52].mxu1 %v2728_v11 }
 0x3de   :  { %v2713_v48 = vmax.f32 %v7549_v34, %v2673_v33  ;;  %v2675_v31 = vpop.f32.mrb[34].mxu1  ;;  %2990 = vmatpush1.bf16.msra.mxu1 %v6195_v28  ;;  %v6198_v34 = vld [vmem:[%s8028_s4 + $0x80] sm:$0xff]  }
 0x3df   :  { %v2714_v44 = vmax.f32 %v7551_v55, %v2675_v31  ;;  %v2677_v14 = vpop.f32.mrb[35].mxu1  ;;  %2991 = vmatprep.subr.bf16.mxu1 %v6305_v1 }
 0x3e0   :  { %v2715_v25 = vmax.f32 %v7553_v50, %v2677_v14 }
 0x3e1   :  { %v2730_v17 = vpack.c.bf16 %v2714_v44, %v2712_v53 }
 0x3e2   :  { %v2731_v18 = vpack.c.bf16 %v2715_v25, %v2713_v48  ;;  %2992 = vmatpush1.bf16.msra.mxu1 %v6196_v42 }
 0x3e3   :  { %2993 = vmatprep.subr.bf16.mxu1 %v6305_v1 }
 0x3e4   :  { %v2681_v59 = vpop.f32.mrb[36].mxu1  ;;  %5193 = vmatprep.mubr.msk.bf16.mxu1 %vm2808_vm15, %v2731_v18 }
 0x3e5   :  { %v2716_v41 = vmax.f32 %v7555_v38, %v2681_v59  ;;  %v2683_v0 = vpop.f32.mrb[37].mxu1  ;;  %2884 = vmatmul.mubr.bf16.gmra.mrb[56].mxu1 %v2730_v17  ;;  %v6199_v38 = vld [vmem:[%s8028_s4 + $0x88] sm:$0xff]  }
 0x3e6   :  { %v2717_v57 = vmax.f32 %v7557_v56, %v2683_v0  ;;  %v2685_v24 = vpop.f32.mrb[38].mxu1  ;;  %2994 = vmatpush1.bf16.msra.mxu1 %v6197_v12 }
 0x3e7   :  { %v2718_v55 = vmax.f32 %v7559_v46, %v2685_v24  ;;  %v2687_v50 = vpop.f32.mrb[39].mxu1  ;;  %2995 = vmatprep.subr.bf16.mxu1 %v6305_v1 }
 0x3e8   :  { %v2719_v51 = vmax.f32 %v7561_v30, %v2687_v50 }
 0x3e9   :  { %v2732_v54 = vpack.c.bf16 %v2718_v55, %v2716_v41 }
 0x3ea   :  { %v2733_v27 = vpack.c.bf16 %v2719_v51, %v2717_v57  ;;  %2996 = vmatpush1.bf16.msra.mxu1 %v6198_v34 }
 0x3eb   :  { %2997 = vmatprep.subr.bf16.mxu1 %v6305_v1  ;;  %v6200_v1 = vld [vmem:[%s8029_s5] sm:$0xff]  }
 0x3ec   :  { %v2691_v56 = vpop.f32.mrb[40].mxu1  ;;  %5194 = vmatprep.mubr.msk.bf16.mxu1 %vm2808_vm15, %v2733_v27 }
 0x3ed   :  { %v2720_v40 = vmax.f32 %v7563_v5, %v2691_v56  ;;  %v2693_v46 = vpop.f32.mrb[41].mxu1  ;;  %2892 = vmatmul.mubr.bf16.gmra.mrb[60].mxu1 %v2732_v54 }
 0x3ee   :  { %v2721_v6 = vmax.f32 %v7565_v45, %v2693_v46  ;;  %v2695_v32 = vpop.f32.mrb[42].mxu1  ;;  %2998 = vmatpush1.bf16.msra.mxu1 %v6199_v38 }
 0x3ef   :  { %v2722_v30 = vmax.f32 %v7567_v39, %v2695_v32  ;;  %v2697_v43 = vpop.f32.mrb[43].mxu1 }
 0x3f0   :  { %v2723_v37 = vmax.f32 %v7569_v58, %v2697_v43 }
 0x3f1   :  { %v2734_v3 = vpack.c.bf16 %v2722_v30, %v2720_v40 }
 0x3f2   :  { %v2735_v7 = vpack.c.bf16 %v2723_v37, %v2721_v6 }
 0x3f4   :  { %5195 = vmatprep.mubr.msk.bf16.mxu1 %vm2808_vm15, %v2735_v7 }
 0x3f5   :  { %2900 = vmatmul.mubr.bf16.gmra.mrb[64].mxu1 %v2734_v3 }
 0x3f6   :  { %5223 = vmatprep.mubr.msk.bf16.mxu1 %vm2808_vm15, %v7573_v20 }
 0x3fd   :  { %3014 = vmatmul.mubr.bf16.vlgmr.msra.gmra.mrb[68].mxu1 %v7571_v29 }
 0x3fe   :  { %5224 = vmatprep.mubr.msk.bf16.mxu1 %vm2808_vm15, %v7587_v60 }
 0x405   :  { %3022 = vmatmul.mubr.bf16.gmra.mrb[72].mxu1 %v7585_v52 }
 0x406   :  { %5225 = vmatprep.mubr.msk.bf16.mxu1 %vm2808_vm15, %v2729_v23 }
 0x40d   :  { %3030 = vmatmul.mubr.bf16.gmra.mrb[76].mxu1 %v2728_v11 }
 0x40e   :  { %5226 = vmatprep.mubr.msk.bf16.mxu1 %vm2808_vm15, %v2731_v18 }
 0x415   :  { %3038 = vmatmul.mubr.bf16.gmra.mrb[80].mxu1 %v2730_v17 }
 0x416   :  { %5227 = vmatprep.mubr.msk.bf16.mxu1 %vm2808_vm15, %v2733_v27 }
 0x41d   :  { %3046 = vmatmul.mubr.bf16.gmra.mrb[84].mxu1 %v2732_v54 }
 0x41e   :  { %5228 = vmatprep.mubr.msk.bf16.mxu1 %vm2808_vm15, %v2735_v7 }
 0x425   :  { %3054 = vmatmul.mubr.bf16.gmra.mrb[88].mxu1 %v2734_v3 }
 0x426   :  { %5590 = vmatprep.mubr.msk.bf16.mxu1 %vm3220_vm0, %v6200_v1 }
 0x4a0   :  { %v2861_v5 = vpop.f32.mrb[44].mxu1 }
 0x4a1   :  { %v2863_v45 = vpop.f32.mrb[45].mxu1 }
 0x4a2   :  { %v2864_v39 = vpop.f32.mrb[46].mxu1 }
 0x4a3   :  { %v2866_v58 = vpop.f32.mrb[47].mxu1 }
 0x4a4   :  { %v6201_v58 = vld [vmem:[%s8029_s5 + $0x8] sm:$0xff]  }
 0x4a8   :  { %v2869_v29 = vpop.f32.mrb[48].mxu1 }
 0x4a9   :  { %v2871_v20 = vpop.f32.mrb[49].mxu1 }
 0x4aa   :  { %v2872_v63 = vpop.f32.mrb[50].mxu1  ;;  %v6221_v20 = vld [vmem:[%s8030_s6 + $0x2c] sm:$0xff]  }
 0x4ab   :  { %v2874_v8 = vpop.f32.mrb[51].mxu1 }
 0x4ac   :  { %v6203_v8 = vld [vmem:[%s8029_s5 + $0x18] sm:$0xff]  }
 0x4b0   :  { %v2877_v2 = vpop.f32.mrb[52].mxu1 }
 0x4b1   :  { %v2879_v19 = vpop.f32.mrb[53].mxu1 }
 0x4b2   :  { %v2880_v61 = vpop.f32.mrb[54].mxu1  ;;  %v6223_v19 = vld [vmem:[%s8030_s6 + $0x3c] sm:$0xff]  }
 0x4b3   :  { %v2882_v21 = vpop.f32.mrb[55].mxu1 }
 0x4b4   :  { %v6206_v21 = vld [vmem:[%s8029_s5 + $0x30] sm:$0xff]  }
 0x4b8   :  { %v2885_v35 = vpop.f32.mrb[56].mxu1 }
 0x4b9   :  { %v2887_v36 = vpop.f32.mrb[57].mxu1 }
 0x4ba   :  { %v2888_v52 = vpop.f32.mrb[58].mxu1  ;;  %v6208_v36 = vld [vmem:[%s8029_s5 + $0x40] sm:$0xff]  }
 0x4bb   :  { %v2890_v60 = vpop.f32.mrb[59].mxu1 }
 0x4bc   :  { %v6210_v60 = vld [vmem:[%s8029_s5 + $0x50] sm:$0xff]  }
 0x4c0   :  { %v2893_v22 = vpop.f32.mrb[60].mxu1 }
 0x4c1   :  { %v2895_v62 = vpop.f32.mrb[61].mxu1 }
 0x4c2   :  { %v2896_v16 = vpop.f32.mrb[62].mxu1  ;;  %v6212_v62 = vld [vmem:[%s8029_s5 + $0x60] sm:$0xff]  }
 0x4c3   :  { %v2898_v4 = vpop.f32.mrb[63].mxu1 }
 0x4c4   :  { %v6214_v4 = vld [vmem:[%s8029_s5 + $0x70] sm:$0xff]  }
 0x4c8   :  { %v2901_v15 = vpop.f32.mrb[64].mxu1 }
 0x4c9   :  { %v2903_v49 = vpop.f32.mrb[65].mxu1 }
 0x4ca   :  { %v2904_v13 = vpop.f32.mrb[66].mxu1  ;;  %v6216_v49 = vld [vmem:[%s8029_s5 + $0x80] sm:$0xff]  }
 0x4cb   :  { %v2906_v9 = vpop.f32.mrb[67].mxu1 }
 0x4cc   :  { %v6218_v9 = vld [vmem:[%s8029_s5 + $0x90] sm:$0xff]  }
 0x4d0   :  { %v3015_v10 = vpop.f32.mrb[68].mxu1 }
 0x4d1   :  { %v3062_v26 = vmax.f32 %v2861_v5, %v3015_v10  ;;  %v3017_v11 = vpop.f32.mrb[69].mxu1  ;;  %v6219_v10 = vld [vmem:[%s8029_s5 + $0x98] sm:$0xff]  }
 0x4d2   :  { %v3018_v23 = vpop.f32.mrb[70].mxu1 }
 0x4d3   :  { %v3063_v28 = vmax.f32 %v2864_v39, %v3018_v23  ;;  %v3020_v47 = vpop.f32.mrb[71].mxu1  ;;  %v6220_v39 = vld [vmem:[%s8030_s6 + $0x24] sm:$0xff]  }
 0x4d4   :  { %v6225_v23 = vld [vmem:[%s8030_s6] sm:$0xff]  }
 0x4d5   :  { %v3074_v53 = vpack.c.bf16 %v3063_v28, %v3062_v26  ;;  %v6224_v26 = vld [vmem:[%s8030_s6 + $0x44] ss:$0 sps:$4 sm:$0xff]  }
 0x4d6   :  { %v3555_v11 = vsel %vm3553_vm1, %v6224_v26, 0 }
 0x4d7   :  { %5578 = vmatprep.subr.bf16.mxu1 %v3074_v53 }
 0x4d8   :  { %v3023_v33 = vpop.f32.mrb[72].mxu1  ;;  %5579 = vmatpush3.bf16.msra.mxu1 %v3074_v53 }
 0x4d9   :  { %v3064_v48 = vmax.f32 %v2869_v29, %v3023_v33  ;;  %v3025_v31 = vpop.f32.mrb[73].mxu1  ;;  %v6202_v29 = vld [vmem:[%s8029_s5 + $0x10] sm:$0xff]  }
 0x4da   :  { %v3026_v42 = vpop.f32.mrb[74].mxu1 }
 0x4db   :  { %v3065_v44 = vmax.f32 %v2872_v63, %v3026_v42  ;;  %v3028_v14 = vpop.f32.mrb[75].mxu1  ;;  %v6222_v63 = vld [vmem:[%s8030_s6 + $0x34] sm:$0xff]  }
 0x4dd   :  { %v3075_v25 = vpack.c.bf16 %v3065_v44, %v3064_v48 }
 0x4df   :  { %5580 = vmatprep.subr.bf16.mxu1 %v3075_v25 }
 0x4e0   :  { %v3031_v17 = vpop.f32.mrb[76].mxu1  ;;  %5581 = vmatpush3.bf16.msra.mxu1 %v3075_v25 }
 0x4e1   :  { %v3066_v18 = vmax.f32 %v2877_v2, %v3031_v17  ;;  %v3033_v12 = vpop.f32.mrb[77].mxu1  ;;  %v6204_v2 = vld [vmem:[%s8029_s5 + $0x20] sm:$0xff]  }
 0x4e2   :  { %v3034_v59 = vpop.f32.mrb[78].mxu1 }
 0x4e3   :  { %v3067_v41 = vmax.f32 %v2880_v61, %v3034_v59  ;;  %v3036_v0 = vpop.f32.mrb[79].mxu1  ;;  %v6205_v61 = vld [vmem:[%s8029_s5 + $0x28] sm:$0xff]  }
 0x4e5   :  { %v3076_v57 = vpack.c.bf16 %v3067_v41, %v3066_v18 }
 0x4e7   :  { %5582 = vmatprep.subr.bf16.mxu1 %v3076_v57 }
 0x4e8   :  { %v3039_v24 = vpop.f32.mrb[80].mxu1  ;;  %5583 = vmatpush3.bf16.msra.mxu1 %v3076_v57 }
 0x4e9   :  { %v3068_v34 = vmax.f32 %v2885_v35, %v3039_v24  ;;  %v3041_v55 = vpop.f32.mrb[81].mxu1  ;;  %v6207_v35 = vld [vmem:[%s8029_s5 + $0x38] sm:$0xff]  }
 0x4ea   :  { %v3042_v50 = vpop.f32.mrb[82].mxu1 }
 0x4eb   :  { %v3069_v51 = vmax.f32 %v2888_v52, %v3042_v50  ;;  %v3044_v54 = vpop.f32.mrb[83].mxu1  ;;  %v6209_v52 = vld [vmem:[%s8029_s5 + $0x48] sm:$0xff]  }
 0x4ed   :  { %v3077_v27 = vpack.c.bf16 %v3069_v51, %v3068_v34  ;;  %v6226_v34 = vld [vmem:[%s8030_s6 + $0x8] sm:$0xff]   ;;  %v6227_v51 = vld [vmem:[%s8030_s6 + $0x10] sm:$0xff]  }
 0x4ef   :  { %5584 = vmatprep.subr.bf16.mxu1 %v3077_v27 }
 0x4f0   :  { %v3047_v38 = vpop.f32.mrb[84].mxu1  ;;  %5585 = vmatpush3.bf16.msra.mxu1 %v3077_v27 }
 0x4f1   :  { %v3070_v56 = vmax.f32 %v2893_v22, %v3047_v38  ;;  %v3049_v40 = vpop.f32.mrb[85].mxu1  ;;  %v6211_v22 = vld [vmem:[%s8029_s5 + $0x58] sm:$0xff]  }
 0x4f2   :  { %v3050_v46 = vpop.f32.mrb[86].mxu1  ;;  %v6228_v40 = vld [vmem:[%s8030_s6 + $0x18] sm:$0xff]  }
 0x4f3   :  { %v3071_v6 = vmax.f32 %v2896_v16, %v3050_v46  ;;  %v3052_v32 = vpop.f32.mrb[87].mxu1  ;;  %v6213_v16 = vld [vmem:[%s8029_s5 + $0x68] sm:$0xff]  }
 0x4f5   :  { %v3078_v30 = vpack.c.bf16 %v3071_v6, %v3070_v56  ;;  %v6229_v6 = vld [vmem:[%s8030_s6 + $0x20] ss:$0 sps:$4 sm:$0xff]  }
 0x4f7   :  { %5586 = vmatprep.subr.bf16.mxu1 %v3078_v30 }
 0x4f8   :  { %v3055_v43 = vpop.f32.mrb[88].mxu1  ;;  %5587 = vmatpush3.bf16.msra.mxu1 %v3078_v30 }
 0x4f9   :  { %v3072_v37 = vmax.f32 %v2901_v15, %v3055_v43  ;;  %v3057_v3 = vpop.f32.mrb[89].mxu1  ;;  %v6215_v15 = vld [vmem:[%s8029_s5 + $0x78] sm:$0xff]  }
 0x4fa   :  { %v3058_v7 = vpop.f32.mrb[90].mxu1 }
 0x4fb   :  { %v3073_v1 = vmax.f32 %v2904_v13, %v3058_v7  ;;  %v3060_v5 = vpop.f32.mrb[91].mxu1  ;;  %v6217_v13 = vld [vmem:[%s8029_s5 + $0x88] sm:$0xff]   ;;  %v3662_v7 = vsel %vm3553_vm1, %v6229_v6, 0 }
 0x4fd   :  { %v3079_v45 = vpack.c.bf16 %v3073_v1, %v3072_v37  ;;  %v6230_v1 = vld [vmem:[%s8030_s6 + $0x48] sm:$0xff]  }
 0x4ff   :  { %5588 = vmatprep.subr.bf16.mxu1 %v3079_v45 }
 0x500   :  { %5589 = vmatpush3.bf16.msra.mxu1 %v3079_v45  ;;  %v6231_v45 = vld [vmem:[%s8030_s6 + $0x50] sm:$0xff]  }
 0x501   :  { %5630 = vmatprep.subr.bf16.mxu1 %v6220_v39 }
 0x503   :  { %5591 = vmatmul.mubr.msk.bf16.vlgmr.msra.gmra.mrb[92].mxu1 %vm3220_vm0, %v6201_v58 }
 0x504   :  { %5594 = vmatprep.mubr.msk.bf16.mxu1 %vm3220_vm0, %v6202_v29  ;;  %5631 = vmatpush3.bf16.msra.mxu1 %v6220_v39 }
 0x505   :  { %5632 = vmatprep.subr.bf16.mxu1 %v6221_v20 }
 0x508   :  { %5633 = vmatpush3.bf16.msra.mxu1 %v6221_v20 }
 0x509   :  { %5634 = vmatprep.subr.bf16.mxu1 %v6222_v63 }
 0x50b   :  { %5595 = vmatmul.mubr.msk.bf16.gmra.mrb[96].mxu1 %vm3220_vm0, %v6203_v8  ;;  %v6232_v8 = vld [vmem:[%s8030_s6 + $0x58] sm:$0xff]  }
 0x50c   :  { %5598 = vmatprep.mubr.msk.bf16.mxu1 %vm3220_vm0, %v6204_v2  ;;  %5635 = vmatpush3.bf16.msra.mxu1 %v6222_v63 }
 0x50d   :  { %5636 = vmatprep.subr.bf16.mxu1 %v6223_v19 }
 0x510   :  { %5637 = vmatpush3.bf16.msra.mxu1 %v6223_v19  ;;  %v6233_v19 = vld [vmem:[%s8030_s6 + $0x60] sm:$0xff]  }
 0x511   :  { %6096 = vmatprep.subr.msk.bf16.mxu1 %vm3553_vm1, %v6224_v26 }
 0x513   :  { %5599 = vmatmul.mubr.msk.bf16.gmra.mrb[100].mxu1 %vm3220_vm0, %v6205_v61 }
 0x514   :  { %5602 = vmatprep.mubr.msk.bf16.mxu1 %vm3220_vm0, %v6206_v21  ;;  %5639 = vmatpush3.bf16.msra.mxu1 %v3555_v11  ;;  %v6237_v11 = vld [vmem:[%s8030_s6 + $0x7c] sm:$0xff]  }
 0x515   :  { %5648 = vmatprep.subr.bf16.mxu1 %v6225_v23 }
 0x51b   :  { %5603 = vmatmul.mubr.msk.bf16.gmra.mrb[104].mxu1 %vm3220_vm0, %v6207_v35 }
 0x51c   :  { %5606 = vmatprep.mubr.msk.bf16.mxu1 %vm3220_vm0, %v6208_v36 }
 0x523   :  { %5607 = vmatmul.mubr.msk.bf16.gmra.mrb[108].mxu1 %vm3220_vm0, %v6209_v52 }
 0x524   :  { %5610 = vmatprep.mubr.msk.bf16.mxu1 %vm3220_vm0, %v6210_v60  ;;  %v6234_v60 = vld [vmem:[%s8030_s6 + $0x68] ss:$0 sps:$4 sm:$0xff]  }
 0x52b   :  { %5611 = vmatmul.mubr.msk.bf16.gmra.mrb[112].mxu1 %vm3220_vm0, %v6211_v22 }
 0x52c   :  { %5614 = vmatprep.mubr.msk.bf16.mxu1 %vm3220_vm0, %v6212_v62  ;;  %v3779_v62 = vsel %vm3553_vm1, %v6234_v60, 0 }
 0x533   :  { %5615 = vmatmul.mubr.msk.bf16.gmra.mrb[116].mxu1 %vm3220_vm0, %v6213_v16  ;;  %v6235_v16 = vld [vmem:[%s8030_s6 + $0x6c] sm:$0xff]  }
 0x534   :  { %5618 = vmatprep.mubr.msk.bf16.mxu1 %vm3220_vm0, %v6214_v4 }
 0x53b   :  { %5619 = vmatmul.mubr.msk.bf16.gmra.mrb[120].mxu1 %vm3220_vm0, %v6215_v15 }
 0x53c   :  { %5622 = vmatprep.mubr.msk.bf16.mxu1 %vm3220_vm0, %v6216_v49 }
 0x543   :  { %5623 = vmatmul.mubr.msk.bf16.gmra.mrb[124].mxu1 %vm3220_vm0, %v6217_v13 }
 0x544   :  { %5626 = vmatprep.mubr.msk.bf16.mxu1 %vm3220_vm0, %v6218_v9 }
 0x54b   :  { %5627 = vmatmul.mubr.msk.bf16.gmra.mrb[128].mxu1 %vm3220_vm0, %v6219_v10  ;;  %v6236_v10 = vld [vmem:[%s8030_s6 + $0x74] sm:$0xff]  }
 0x5d6   :  { %v5592_v28 = vpop.f32.mrb[92].mxu1 }
 0x5d7   :  { %v3315_v47 = vpop.f32.mrb[93].mxu1 }
 0x5d8   :  { %v5593_v53 = vpop.f32.mrb[94].mxu1 }
 0x5d9   :  { %v3475_v33 = vpack.c.bf16 %v5593_v53, %v5592_v28  ;;  %v3318_v48 = vpop.f32.mrb[95].mxu1 }
 0x5da   :  { %v3474_v31 = vpack.c.bf16 %v3318_v48, %v3315_v47  ;;  %v6238_v48 = vld [vmem:[%s8030_s6 + $0x84] sm:$0xff]  }
 0x5de   :  { %v7746_v42 = vpop.f32.mrb[96].mxu1 }
 0x5df   :  { %v3331_v44 = vpop.f32.mrb[97].mxu1 }
 0x5e0   :  { %v7748_v14 = vpop.f32.mrb[98].mxu1 }
 0x5e1   :  { %v3477_v25 = vpack.c.bf16 %v7748_v14, %v7746_v42  ;;  %v3334_v17 = vpop.f32.mrb[99].mxu1  ;;  %v6239_v42 = vld [vmem:[%s8030_s6 + $0x8c] ss:$0 sps:$4 sm:$0xff]  }
 0x5e2   :  { %v3476_v18 = vpack.c.bf16 %v3334_v17, %v3331_v44 }
 0x5e6   :  { %v5600_v12 = vpop.f32.mrb[100].mxu1 }
 0x5e7   :  { %v3347_v59 = vpop.f32.mrb[101].mxu1 }
 0x5e8   :  { %v5601_v41 = vpop.f32.mrb[102].mxu1 }
 0x5e9   :  { %v3479_v0 = vpack.c.bf16 %v5601_v41, %v5600_v12  ;;  %v3350_v57 = vpop.f32.mrb[103].mxu1  ;;  %v3904_v12 = vsel %vm3553_vm1, %v6239_v42, 0  ;;  %v6241_v41 = vld [vmem:[%s8030_s6 + $0x98] sm:$0xff]  }
 0x5ea   :  { %v3478_v24 = vpack.c.bf16 %v3350_v57, %v3347_v59  ;;  %v6240_v59 = vld [vmem:[%s8030_s6 + $0x90] sm:$0xff]   ;;  %v6243_v57 = vld [vmem:[%s8030_s6 + $0xa8] sm:$0xff]  }
 0x5ec   :  { %5640 = vmatprep.mubr.msk.bf16.mxu1 %vm3540_vm2, %v3478_v24  ;;  %v6244_v24 = vld [vmem:[%s8030_s6 + $0xb0] ss:$0 sps:$4 sm:$0xff]  }
 0x5ed   :  { %5641 = vmatmul.mubr.msk.bf16.vlgmr.msra.gmra.mrb[132].mxu1 %vm3540_vm2, %v3479_v0  ;;  %v6242_v0 = vld [vmem:[%s8030_s6 + $0xa0] sm:$0xff]  }
 0x5ee   :  { %5649 = vmatpush3.bf16.msra.mxu1 %v6225_v23  ;;  %v5604_v55 = vpop.f32.mrb[104].mxu1 }
 0x5ef   :  { %v3363_v50 = vpop.f32.mrb[105].mxu1  ;;  %5650 = vmatprep.subr.bf16.mxu1 %v6226_v34 }
 0x5f0   :  { %v5605_v54 = vpop.f32.mrb[106].mxu1 }
 0x5f1   :  { %v3481_v27 = vpack.c.bf16 %v5605_v54, %v5604_v55  ;;  %v3366_v38 = vpop.f32.mrb[107].mxu1  ;;  %v6245_v55 = vld [vmem:[%s8031_s8] sm:$0xff]  }
 0x5f2   :  { %v3480_v56 = vpack.c.bf16 %v3366_v38, %v3363_v50  ;;  %5651 = vmatpush3.bf16.msra.mxu1 %v6226_v34  ;;  %v4029_v34 = vsel %vm3553_vm1, %v6244_v24, 0  ;;  %v5350_v50 = vld [vmem:[%s8033_s7] ss:$0 sm:$0xff] }
 0x5f3   :  { %5652 = vmatprep.subr.bf16.mxu1 %v6227_v51 }
 0x5f4   :  { %5644 = vmatprep.mubr.msk.bf16.mxu1 %vm3540_vm2, %v3480_v56 }
 0x5f5   :  { %5645 = vmatmul.mubr.msk.bf16.gmra.mrb[136].mxu1 %vm3540_vm2, %v3481_v27 }
 0x5f6   :  { %5653 = vmatpush3.bf16.msra.mxu1 %v6227_v51  ;;  %5658 = vmatprep.mubr.msk.bf16.mxu1 %vm3540_vm2, %v3474_v31  ;;  %v5608_v46 = vpop.f32.mrb[108].mxu1 }
 0x5f7   :  { %5654 = vmatprep.subr.bf16.mxu1 %v6228_v40  ;;  %v3379_v32 = vpop.f32.mrb[109].mxu1 }
 0x5f8   :  { %v5609_v30 = vpop.f32.mrb[110].mxu1 }
 0x5f9   :  { %v3483_v43 = vpack.c.bf16 %v5609_v30, %v5608_v46  ;;  %v3382_v37 = vpop.f32.mrb[111].mxu1 }
 0x5fa   :  { %5655 = vmatpush3.bf16.msra.mxu1 %v6228_v40  ;;  %v3482_v3 = vpack.c.bf16 %v3382_v37, %v3379_v32 }
 0x5fb   :  { %6097 = vmatprep.subr.msk.bf16.mxu1 %vm3553_vm1, %v6229_v6 }
 0x5fe   :  { %5657 = vmatpush3.bf16.msra.mxu1 %v3662_v7  ;;  %v5612_v5 = vpop.f32.mrb[112].mxu1 }
 0x5ff   :  { %5666 = vmatprep.subr.bf16.mxu1 %v6230_v1  ;;  %v3395_v39 = vpop.f32.mrb[113].mxu1 }
 0x600   :  { %v5613_v58 = vpop.f32.mrb[114].mxu1 }
 0x601   :  { %5659 = vmatmul.mubr.msk.bf16.vlgmr.msra.gmra.mrb[132].mxu1 %vm3540_vm2, %v3475_v33  ;;  %v3485_v29 = vpack.c.bf16 %v5613_v58, %v5612_v5  ;;  %v3398_v20 = vpop.f32.mrb[115].mxu1 }
 0x602   :  { %5662 = vmatprep.mubr.msk.bf16.mxu1 %vm3540_vm2, %v3476_v18  ;;  %5667 = vmatpush3.bf16.msra.mxu1 %v6230_v1  ;;  %v3484_v63 = vpack.c.bf16 %v3398_v20, %v3395_v39 }
 0x603   :  { %5668 = vmatprep.subr.bf16.mxu1 %v6231_v45 }
 0x606   :  { %5669 = vmatpush3.bf16.msra.mxu1 %v6231_v45  ;;  %v5616_v2 = vpop.f32.mrb[116].mxu1 }
 0x607   :  { %5670 = vmatprep.subr.bf16.mxu1 %v6232_v8  ;;  %v3411_v61 = vpop.f32.mrb[117].mxu1 }
 0x608   :  { %v5617_v21 = vpop.f32.mrb[118].mxu1 }
 0x609   :  { %5663 = vmatmul.mubr.msk.bf16.gmra.mrb[136].mxu1 %vm3540_vm2, %v3477_v25  ;;  %v3487_v35 = vpack.c.bf16 %v5617_v21, %v5616_v2  ;;  %v3414_v36 = vpop.f32.mrb[119].mxu1 }
 0x60a   :  { %5671 = vmatpush3.bf16.msra.mxu1 %v6232_v8  ;;  %5676 = vmatprep.mubr.msk.bf16.mxu1 %vm3540_vm2, %v3482_v3  ;;  %v3486_v52 = vpack.c.bf16 %v3414_v36, %v3411_v61  ;;  %v6249_v36 = vld [vmem:[%s8032_s9] sm:$0xff]  }
 0x60b   :  { %5672 = vmatprep.subr.bf16.mxu1 %v6233_v19 }
 0x60e   :  { %5673 = vmatpush3.bf16.msra.mxu1 %v6233_v19  ;;  %v5620_v22 = vpop.f32.mrb[120].mxu1 }
 0x60f   :  { %6098 = vmatprep.subr.msk.bf16.mxu1 %vm3553_vm1, %v6234_v60  ;;  %v3427_v4 = vpop.f32.mrb[121].mxu1  ;;  %v6247_v60 = vld [vmem:[%s8031_s8 + $0x10] sm:$0xff]  }
 0x610   :  { %v5621_v15 = vpop.f32.mrb[122].mxu1 }
 0x611   :  { %v3489_v49 = vpack.c.bf16 %v5621_v15, %v5620_v22  ;;  %v3430_v13 = vpop.f32.mrb[123].mxu1  ;;  %v6250_v22 = vld [vmem:[%s8032_s9 + $0x8] sm:$0xff]   ;;  %v6253_v15 = vld [vmem:[%s8032_s9 + $0x20] sm:$0xff]  }
 0x612   :  { %5675 = vmatpush3.bf16.msra.mxu1 %v3779_v62  ;;  %v3488_v9 = vpack.c.bf16 %v3430_v13, %v3427_v4  ;;  %v6251_v62 = vld [vmem:[%s8032_s9 + $0x10] sm:$0xff]   ;;  %v6252_v4 = vld [vmem:[%s8032_s9 + $0x18] sm:$0xff]  }
 0x613   :  { %5684 = vmatprep.subr.bf16.mxu1 %v6235_v16  ;;  %v6255_v13 = vld [vmem:[%s8032_s9 + $0x30] sm:$0xff]  }
 0x615   :  { %5677 = vmatmul.mubr.msk.bf16.vlgmr.msra.gmra.mrb[132].mxu1 %vm3540_vm2, %v3483_v43 }
 0x616   :  { %5685 = vmatpush3.bf16.msra.mxu1 %v6235_v16  ;;  %5680 = vmatprep.mubr.msk.bf16.mxu1 %vm3540_vm2, %v3484_v63  ;;  %v5624_v26 = vpop.f32.mrb[124].mxu1  ;;  %v6248_v16 = vld [vmem:[%s8031_s8 + $0x18] sm:$0xff]  }
 0x617   :  { %5686 = vmatprep.subr.bf16.mxu1 %v6236_v10  ;;  %v3443_v23 = vpop.f32.mrb[125].mxu1 }
 0x618   :  { %v5625_v28 = vpop.f32.mrb[126].mxu1 }
 0x619   :  { %v3491_v47 = vpack.c.bf16 %v5625_v28, %v5624_v26  ;;  %v3446_v53 = vpop.f32.mrb[127].mxu1 }
 0x61a   :  { %5687 = vmatpush3.bf16.msra.mxu1 %v6236_v10  ;;  %v3490_v33 = vpack.c.bf16 %v3446_v53, %v3443_v23  ;;  %v6257_v10 = vld [vmem:[%s8032_s9 + $0x40] sm:$0xff]  }
 0x61b   :  { %5688 = vmatprep.subr.bf16.mxu1 %v6237_v11 }
 0x61d   :  { %5681 = vmatmul.mubr.msk.bf16.gmra.mrb[136].mxu1 %vm3540_vm2, %v3485_v29 }
 0x61e   :  { %5689 = vmatpush3.bf16.msra.mxu1 %v6237_v11  ;;  %5694 = vmatprep.mubr.msk.bf16.mxu1 %vm3540_vm2, %v3486_v52  ;;  %v5628_v31 = vpop.f32.mrb[128].mxu1  ;;  %v6246_v52 = vld [vmem:[%s8031_s8 + $0x8] sm:$0xff]  }
 0x61f   :  { %5690 = vmatprep.subr.bf16.mxu1 %v6238_v48  ;;  %v3459_v44 = vpop.f32.mrb[129].mxu1 }
 0x620   :  { %v5629_v14 = vpop.f32.mrb[130].mxu1 }
 0x621   :  { %v3493_v25 = vpack.c.bf16 %v5629_v14, %v5628_v31  ;;  %v3462_v17 = vpop.f32.mrb[131].mxu1 }
 0x622   :  { %5691 = vmatpush3.bf16.msra.mxu1 %v6238_v48  ;;  %v3492_v18 = vpack.c.bf16 %v3462_v17, %v3459_v44 }
 0x623   :  { %6099 = vmatprep.subr.msk.bf16.mxu1 %vm3553_vm1, %v6239_v42 }
 0x626   :  { %5693 = vmatpush3.bf16.msra.mxu1 %v3904_v12  ;;  %v6259_v12 = vld [vmem:[%s8032_s9 + $0x50] sm:$0xff]  }
 0x627   :  { %5702 = vmatprep.subr.bf16.mxu1 %v6240_v59 }
 0x629   :  { %5695 = vmatmul.mubr.msk.bf16.vlgmr.msra.gmra.mrb[132].mxu1 %vm3540_vm2, %v3487_v35 }
 0x62a   :  { %5703 = vmatpush3.bf16.msra.mxu1 %v6240_v59  ;;  %5698 = vmatprep.mubr.msk.bf16.mxu1 %vm3540_vm2, %v3488_v9  ;;  %v6256_v9 = vld [vmem:[%s8032_s9 + $0x38] sm:$0xff]  }
 0x62b   :  { %5704 = vmatprep.subr.bf16.mxu1 %v6241_v41  ;;  %v6260_v59 = vld [vmem:[%s8032_s9 + $0x58] sm:$0xff]  }
 0x62e   :  { %5705 = vmatpush3.bf16.msra.mxu1 %v6241_v41  ;;  %v6261_v41 = vld [vmem:[%s8032_s9 + $0x60] sm:$0xff]  }
 0x62f   :  { %5706 = vmatprep.subr.bf16.mxu1 %v6242_v0 }
 0x631   :  { %5699 = vmatmul.mubr.msk.bf16.gmra.mrb[136].mxu1 %vm3540_vm2, %v3489_v49  ;;  %v6254_v49 = vld [vmem:[%s8032_s9 + $0x28] sm:$0xff]  }
 0x632   :  { %5707 = vmatpush3.bf16.msra.mxu1 %v6242_v0  ;;  %5712 = vmatprep.mubr.msk.bf16.mxu1 %vm3540_vm2, %v3490_v33  ;;  %v6262_v0 = vld [vmem:[%s8032_s9 + $0x68] sm:$0xff]  }
 0x633   :  { %5708 = vmatprep.subr.bf16.mxu1 %v6243_v57 }
 0x636   :  { %5709 = vmatpush3.bf16.msra.mxu1 %v6243_v57  ;;  %v6263_v57 = vld [vmem:[%s8032_s9 + $0x70] sm:$0xff]  }
 0x637   :  { %6100 = vmatprep.subr.msk.bf16.mxu1 %vm3553_vm1, %v6244_v24  ;;  %v6264_v24 = vld [vmem:[%s8032_s9 + $0x78] sm:$0xff]  }
 0x63a   :  { %5711 = vmatpush3.bf16.msra.mxu1 %v4029_v34  ;;  %v6265_v34 = vld [vmem:[%s8034_s10] sm:$0xff]  }
 0x63b   :  { %5780 = vmatprep.mubr.msk.bf16.mxu0 %vm4489_vm3, %v6265_v34  ;;  %v5439_v34 = vld [vmem:[%s8037_s12] ss:$0 sm:$0xff] }
 0x63d   :  { %5713 = vmatmul.mubr.msk.bf16.vlgmr.msra.gmra.mrb[132].mxu1 %vm3540_vm2, %v3491_v47 }
 0x63e   :  { %5716 = vmatprep.mubr.msk.bf16.mxu1 %vm3540_vm2, %v3492_v18  ;;  %v6258_v18 = vld [vmem:[%s8032_s9 + $0x48] sm:$0xff]  }
 0x645   :  { %5717 = vmatmul.mubr.msk.bf16.gmra.mrb[136].mxu1 %vm3540_vm2, %v3493_v25 }
 0x646   :  { %5728 = vmatprep.mubr.msk.bf16.mxu1 %vm2510_vm14, %v6245_v55  ;;  %v6306_v55 = vmov 0.0  }
 0x710   :  { %v5714_v51 = vpop.f32.mrb[132].mxu1 }
 0x711   :  { %v4113_v54 = vadd.f32 %v5714_v51, %v5350_v50  ;;  %v4065_v27 = vpop.f32.mrb[133].mxu1  ;;  %v6270_v51 = vld [vmem:[%s8035_s11 + $0x28] sm:$0xff]  }
 0x712   :  { %v4111_v38 = vadd.f32 %v5350_v50, %v4065_v27  ;;  %v5715_v56 = vpop.f32.mrb[134].mxu1 }
 0x713   :  { %v4114_v40 = vadd.f32 %v5715_v56, %v5350_v50  ;;  %v4068_v46 = vpop.f32.mrb[135].mxu1  ;;  %v4121_v32 = vmax.f32 %v4113_v54, 0.0  ;;  %v6272_v54 = vld [vmem:[%s8035_s11 + $0x30] sm:$0xff]  }
 0x714   :  { %v4112_v6 = vadd.f32 %v5350_v50, %v4068_v46  ;;  %v4119_v43 = vmax.f32 %v4111_v38, 0.0 }
 0x715   :  { %v4122_v30 = vmax.f32 %v4114_v40, 0.0 }
 0x716   :  { %v4120_v37 = vmax.f32 %v4112_v6, 0.0 }
 0x717   :  { %v4128_v3 = vpack.c.bf16 %v4122_v30, %v4121_v32 }
 0x718   :  { %v4127_v7 = vpack.c.bf16 %v4120_v37, %v4119_v43  ;;  %v5718_v1 = vpop.f32.mrb[136].mxu1 }
 0x719   :  { %v4117_v5 = vadd.f32 %v5718_v1, %v5350_v50  ;;  %v4081_v45 = vpop.f32.mrb[137].mxu1 }
 0x71a   :  { %v4115_v39 = vadd.f32 %v5350_v50, %v4081_v45  ;;  %v5719_v58 = vpop.f32.mrb[138].mxu1  ;;  %5720 = vmatprep.subr.bf16.mxu1 %v4127_v7  ;;  %v6266_v45 = vld [vmem:[%s8034_s10 + $0x8] sm:$0xff]  }
 0x71b   :  { %v4118_v29 = vadd.f32 %v5719_v58, %v5350_v50  ;;  %v4084_v20 = vpop.f32.mrb[139].mxu1  ;;  %5721 = vmatpush3.bf16.msra.mxu1 %v4127_v7  ;;  %v4125_v8 = vmax.f32 %v4117_v5, 0.0  ;;  %v6269_v58 = vld [vmem:[%s8035_s11 + $0x8] sm:$0xff]  }
 0x71c   :  { %v4116_v63 = vadd.f32 %v5350_v50, %v4084_v20  ;;  %5722 = vmatprep.subr.bf16.mxu1 %v4128_v3  ;;  %v4123_v19 = vmax.f32 %v4115_v39, 0.0  ;;  %v6268_v50 = vld [vmem:[%s8035_s11 + $0x20] sm:$0xff]   ;;  %v6273_v20 = vld [vmem:[%s8035_s11 + $0x18] sm:$0xff]  }
 0x71d   :  { %v4126_v2 = vmax.f32 %v4118_v29, 0.0  ;;  %v6267_v39 = vld [vmem:[%s8035_s11] sm:$0xff]   ;;  %v6271_v29 = vld [vmem:[%s8035_s11 + $0x10] sm:$0xff]  }
 0x71e   :  { %v4124_v61 = vmax.f32 %v4116_v63, 0.0  ;;  %v6274_v63 = vld [vmem:[%s8035_s11 + $0x38] sm:$0xff]  }
 0x71f   :  { %v4130_v21 = vpack.c.bf16 %v4126_v2, %v4125_v8  ;;  %5723 = vmatpush3.bf16.msra.mxu1 %v4128_v3 }
 0x720   :  { %v4129_v35 = vpack.c.bf16 %v4124_v61, %v4123_v19  ;;  %v6275_v19 = vld [vmem:[%s8035_s11 + $0x60] sm:$0xff]  }
 0x722   :  { %5724 = vmatprep.subr.bf16.mxu1 %v4129_v35 }
 0x723   :  { %5725 = vmatpush3.bf16.msra.mxu1 %v4129_v35 }
 0x724   :  { %5726 = vmatprep.subr.bf16.mxu1 %v4130_v21 }
 0x727   :  { %5727 = vmatpush3.bf16.msra.mxu1 %v4130_v21 }
 0x728   :  { %5736 = vmatprep.subr.bf16.mxu1 %v6249_v36 }
 0x72a   :  { %5729 = vmatmul.mubr.msk.bf16.vlgmr.msra.gmra.mrb[140].mxu1 %vm2510_vm14, %v6246_v52 }
 0x72b   :  { %5732 = vmatprep.mubr.msk.bf16.mxu1 %vm2510_vm14, %v6247_v60  ;;  %5737 = vmatpush3.bf16.msra.mxu1 %v6249_v36  ;;  %v6276_v36 = vld [vmem:[%s8035_s11 + $0x40] sm:$0xff]   ;;  %v6277_v60 = vld [vmem:[%s8035_s11 + $0x68] sm:$0xff]  }
 0x72c   :  { %5738 = vmatprep.subr.bf16.mxu1 %v6250_v22 }
 0x72f   :  { %5739 = vmatpush3.bf16.msra.mxu1 %v6250_v22  ;;  %v6278_v22 = vld [vmem:[%s8035_s11 + $0x48] sm:$0xff]  }
 0x730   :  { %5740 = vmatprep.subr.bf16.mxu1 %v6251_v62 }
 0x732   :  { %5733 = vmatmul.mubr.msk.bf16.gmra.mrb[144].mxu1 %vm2510_vm14, %v6248_v16  ;;  %v6280_v16 = vld [vmem:[%s8035_s11 + $0x50] sm:$0xff]  }
 0x733   :  { %5741 = vmatpush3.bf16.msra.mxu1 %v6251_v62  ;;  %v6279_v62 = vld [vmem:[%s8035_s11 + $0x70] sm:$0xff]  }
 0x734   :  { %5742 = vmatprep.subr.bf16.mxu1 %v6252_v4 }
 0x737   :  { %5743 = vmatpush3.bf16.msra.mxu1 %v6252_v4  ;;  %v6281_v4 = vld [vmem:[%s8035_s11 + $0x78] sm:$0xff]  }
 0x738   :  { %5744 = vmatprep.subr.bf16.mxu1 %v6253_v15 }
 0x73b   :  { %5745 = vmatpush3.bf16.msra.mxu1 %v6253_v15  ;;  %v6282_v15 = vld [vmem:[%s8035_s11 + $0x58] sm:$0xff]  }
 0x73c   :  { %5746 = vmatprep.subr.bf16.mxu1 %v6254_v49 }
 0x73f   :  { %5747 = vmatpush3.bf16.msra.mxu1 %v6254_v49 }
 0x740   :  { %5748 = vmatprep.subr.bf16.mxu1 %v6255_v13 }
 0x743   :  { %5749 = vmatpush3.bf16.msra.mxu1 %v6255_v13 }
 0x744   :  { %5750 = vmatprep.subr.bf16.mxu1 %v6256_v9 }
 0x747   :  { %5751 = vmatpush3.bf16.msra.mxu1 %v6256_v9  ;;  %v6283_v9 = vld [vmem:[%s8036_s13] sm:$0xff]  }
 0x748   :  { %5756 = vmatprep.subr.bf16.mxu1 %v6257_v10 }
 0x7fd   :  { %v5730_v26 = vpop.f32.mrb[140].mxu1 }
 0x7fe   :  { %v4205_v11 = vpop.f32.mrb[141].mxu1 }
 0x7ff   :  { %v5731_v23 = vpop.f32.mrb[142].mxu1 }
 0x800   :  { %v4208_v28 = vpop.f32.mrb[143].mxu1 }
 0x805   :  { %v5734_v47 = vpop.f32.mrb[144].mxu1 }
 0x806   :  { %v4238_v53 = vmax.f32 %v5730_v26, %v5734_v47  ;;  %v4221_v33 = vpop.f32.mrb[145].mxu1  ;;  %v6285_v26 = vld [vmem:[%s8036_s13 + $0x10] sm:$0xff]  }
 0x807   :  { %v4236_v48 = vmax.f32 %v4205_v11, %v4221_v33  ;;  %v5735_v31 = vpop.f32.mrb[146].mxu1  ;;  %v6286_v11 = vld [vmem:[%s8036_s13 + $0x18] sm:$0xff]  }
 0x808   :  { %v4239_v42 = vmax.f32 %v5731_v23, %v5735_v31  ;;  %v4224_v44 = vpop.f32.mrb[147].mxu1  ;;  %v6287_v23 = vld [vmem:[%s8036_s13 + $0x20] sm:$0xff]  }
 0x809   :  { %v4237_v14 = vmax.f32 %v4208_v28, %v4224_v44  ;;  %v6288_v28 = vld [vmem:[%s8036_s13 + $0x28] ss:$0 sps:$4 sm:$0x33]  }
 0x80a   :  { %v4241_v25 = vpack.c.bf16 %v4239_v42, %v4238_v53  ;;  %v4921_v47 = vsel %vm1861_vm11, %v6288_v28, 0 }
 0x80b   :  { %v4240_v17 = vpack.c.bf16 %v4237_v14, %v4236_v48 }
 0x80d   :  { %5752 = vmatprep.mubr.bf16.mxu1 %v4240_v17 }
 0x80e   :  { %5753 = vmatmul.mubr.bf16.vlgmr.msra.gmra.mrb[148].mxu1 %v4241_v25 }
 0x80f   :  { %5757 = vmatpush3.bf16.msra.mxu1 %v6257_v10  ;;  %5772 = vmatprep.mubr.bf16.mxu1 %v4240_v17  ;;  %v6284_v10 = vld [vmem:[%s8036_s13 + $0x8] sm:$0xff]  }
 0x810   :  { %5758 = vmatprep.subr.bf16.mxu1 %v6258_v18 }
 0x813   :  { %5759 = vmatpush3.bf16.msra.mxu1 %v6258_v18 }
 0x814   :  { %5760 = vmatprep.subr.bf16.mxu1 %v6259_v12 }
 0x817   :  { %5761 = vmatpush3.bf16.msra.mxu1 %v6259_v12 }
 0x818   :  { %5762 = vmatprep.subr.bf16.mxu1 %v6260_v59 }
 0x81b   :  { %5763 = vmatpush3.bf16.msra.mxu1 %v6260_v59 }
 0x81c   :  { %5764 = vmatprep.subr.bf16.mxu1 %v6261_v41 }
 0x81f   :  { %5765 = vmatpush3.bf16.msra.mxu1 %v6261_v41 }
 0x820   :  { %5766 = vmatprep.subr.bf16.mxu1 %v6262_v0 }
 0x823   :  { %5767 = vmatpush3.bf16.msra.mxu1 %v6262_v0 }
 0x824   :  { %5768 = vmatprep.subr.bf16.mxu1 %v6263_v57 }
 0x827   :  { %5769 = vmatpush3.bf16.msra.mxu1 %v6263_v57 }
 0x828   :  { %5770 = vmatprep.subr.bf16.mxu1 %v6264_v24 }
 0x82b   :  { %5771 = vmatpush3.bf16.msra.mxu1 %v6264_v24 }
 0x82c   :  { %5784 = vmatprep.subr.bf16.mxu1 %v6306_v55 }
 0x82e   :  { %5773 = vmatmul.mubr.bf16.vlgmr.msra.gmra.mrb[152].mxu1 %v4241_v25 }
 0x82f   :  { %5785 = vmatpush3.bf16.msra.mxu1 %v6268_v50  ;;  %5792 = vmatprep.mubr.msk.bf16.mxu1 %vm6307_vm4, %v6306_v55 }
 0x830   :  { %5786 = vmatprep.subr.bf16.mxu1 %v6306_v55 }
 0x833   :  { %5787 = vmatpush3.bf16.msra.mxu1 %v6270_v51 }
 0x834   :  { %5788 = vmatprep.subr.bf16.mxu1 %v6306_v55 }
 0x837   :  { %5789 = vmatpush3.bf16.msra.mxu1 %v6272_v54 }
 0x838   :  { %5790 = vmatprep.subr.bf16.mxu1 %v6306_v55 }
 0x83b   :  { %5791 = vmatpush3.bf16.msra.mxu1 %v6274_v63 }
 0x83c   :  { %5808 = vmatprep.subr.bf16.mxu1 %v6306_v55 }
 0x8e1   :  { %v5754_v27 = vpop.f32.mrb[148].mxu1 }
 0x8e2   :  { %v4340_v38 = vpop.f32.mrb[149].mxu1 }
 0x8e3   :  { %v5755_v56 = vpop.f32.mrb[150].mxu1 }
 0x8e4   :  { %v4343_v40 = vpop.f32.mrb[151].mxu1 }
 0x901   :  { %v5774_v46 = vpop.f32.mrb[152].mxu1 }
 0x902   :  { %v4471_v6 = vmax.f32 %v5754_v27, %v5774_v46  ;;  %v4454_v32 = vpop.f32.mrb[153].mxu1 }
 0x903   :  { %v4469_v30 = vmax.f32 %v4340_v38, %v4454_v32  ;;  %v5775_v43 = vpop.f32.mrb[154].mxu1 }
 0x904   :  { %v4472_v37 = vmax.f32 %v5755_v56, %v5775_v43  ;;  %v4457_v3 = vpop.f32.mrb[155].mxu1  ;;  %v5440_v56 = vld [vmem:[%s8038_s14] ss:$0 sm:$0xff] }
 0x905   :  { %v4470_v7 = vmax.f32 %v4343_v40, %v4457_v3 }
 0x906   :  { %v4474_v1 = vpack.c.bf16 %v4472_v37, %v4471_v6 }
 0x907   :  { %v4473_v5 = vpack.c.bf16 %v4470_v7, %v4469_v30 }
 0x909   :  { %5776 = vmatprep.subr.bf16.mxu0 %v4473_v5 }
 0x90a   :  { %5777 = vmatpush3.bf16.msra.mxu0 %v4473_v5 }
 0x90b   :  { %5778 = vmatprep.subr.bf16.mxu0 %v4474_v1 }
 0x90e   :  { %5779 = vmatpush3.bf16.msra.mxu0 %v4474_v1 }
 0x90f   :  { %5796 = vmatprep.subr.bf16.mxu0 %v6306_v55 }
 0x911   :  { %5781 = vmatmul.mubr.msk.bf16.vlgmr.msra.gmra.mrb[52].mxu0 %vm4489_vm3, %v6266_v45 }
 0x912   :  { %5797 = vmatpush3.bf16.msra.mxu0 %v6267_v39  ;;  %5804 = vmatprep.mubr.msk.bf16.mxu0 %vm6307_vm4, %v6306_v55 }
 0x913   :  { %5798 = vmatprep.subr.bf16.mxu0 %v6306_v55 }
 0x916   :  { %5799 = vmatpush3.bf16.msra.mxu0 %v6269_v58 }
 0x917   :  { %5800 = vmatprep.subr.bf16.mxu0 %v6306_v55 }
 0x91a   :  { %5801 = vmatpush3.bf16.msra.mxu0 %v6271_v29 }
 0x91b   :  { %5802 = vmatprep.subr.bf16.mxu0 %v6306_v55 }
 0x91e   :  { %5803 = vmatpush3.bf16.msra.mxu0 %v6273_v20 }
 0x91f   :  { %5820 = vmatprep.subr.bf16.mxu0 %v6306_v55 }
 0x9e4   :  { %v5782_v8 = vpop.f32.mrb[52].mxu0 }
 0x9e5   :  { %v4530_v2 = vpop.f32.mrb[53].mxu0  ;;  %v4698_v13 = vpack.c.bf16 %v5782_v8, %v5782_v8 }
 0x9e6   :  { %v4545_v61 = vpack.c.bf16 %v4530_v2, %v4530_v2  ;;  %v5783_v21 = vpop.f32.mrb[54].mxu0 }
 0x9e7   :  { %v4533_v35 = vpop.f32.mrb[55].mxu0  ;;  %v4776_v49 = vpack.c.bf16 %v5783_v21, %v5783_v21 }
 0x9e8   :  { %v4554_v52 = vpack.c.bf16 %v4533_v35, %v4533_v35  ;;  %5805 = vmatmul.mubr.msk.bf16.vlgmr.msra.gmra.mrb[56].mxu0 %vm2510_vm14, %v4545_v61 }
 0x9e9   :  { %5821 = vmatpush3.bf16.msra.mxu0 %v6275_v19  ;;  %5828 = vmatprep.mubr.msk.bf16.mxu0 %vm6307_vm4, %v6306_v55 }
 0x9ea   :  { %5793 = vmatmul.mubr.msk.bf16.vlgmr.msra.gmra.mrb[156].mxu1 %vm2510_vm14, %v4554_v52  ;;  %5822 = vmatprep.subr.bf16.mxu0 %v6306_v55 }
 0x9eb   :  { %5809 = vmatpush3.bf16.msra.mxu1 %v6276_v36  ;;  %5816 = vmatprep.mubr.msk.bf16.mxu1 %vm6307_vm4, %v6306_v55 }
 0x9ec   :  { %5810 = vmatprep.subr.bf16.mxu1 %v6306_v55 }
 0x9ed   :  { %5823 = vmatpush3.bf16.msra.mxu0 %v6277_v60 }
 0x9ee   :  { %5824 = vmatprep.subr.bf16.mxu0 %v6306_v55 }
 0x9ef   :  { %5811 = vmatpush3.bf16.msra.mxu1 %v6278_v22 }
 0x9f0   :  { %5812 = vmatprep.subr.bf16.mxu1 %v6306_v55 }
 0x9f1   :  { %5825 = vmatpush3.bf16.msra.mxu0 %v6279_v62 }
 0x9f2   :  { %5826 = vmatprep.subr.bf16.mxu0 %v6306_v55 }
 0x9f3   :  { %5813 = vmatpush3.bf16.msra.mxu1 %v6280_v16 }
 0x9f4   :  { %5814 = vmatprep.subr.bf16.mxu1 %v6306_v55 }
 0x9f5   :  { %5827 = vmatpush3.bf16.msra.mxu0 %v6281_v4 }
 0x9f7   :  { %5815 = vmatpush3.bf16.msra.mxu1 %v6282_v15 }
 0x9f8   :  { %5829 = vmatmul.mubr.msk.bf16.vlgmr.msra.gmra.mrb[60].mxu0 %vm2510_vm14, %v4776_v49  ;;  %5832 = vmatprep.subr.bf16.mxu1 %v6306_v55 }
 0x9fa   :  { %5817 = vmatmul.mubr.msk.bf16.vlgmr.msra.gmra.mrb[160].mxu1 %vm2510_vm14, %v4698_v13 }
 0x9fb   :  { %5844 = vmatprep.mubr.msk.bf16.mxu1 %vm6307_vm4, %v6306_v55  ;;  %5833 = vmatpush3.bf16.msra.mxu1 %v6283_v9 }
 0x9fc   :  { %5834 = vmatprep.subr.bf16.mxu1 %v6306_v55 }
 0x9ff   :  { %5835 = vmatpush3.bf16.msra.mxu1 %v6284_v10 }
 0xa00   :  { %5836 = vmatprep.subr.bf16.mxu1 %v6306_v55 }
 0xa03   :  { %5837 = vmatpush3.bf16.msra.mxu1 %v6285_v26 }
 0xa04   :  { %5838 = vmatprep.subr.bf16.mxu1 %v6306_v55 }
 0xa07   :  { %5839 = vmatpush3.bf16.msra.mxu1 %v6286_v11 }
 0xa08   :  { %5840 = vmatprep.subr.bf16.mxu1 %v6306_v55 }
 0xa0b   :  { %5841 = vmatpush3.bf16.msra.mxu1 %v6287_v23 }
 0xa0c   :  { %5842 = vmatprep.subr.bf16.mxu1 %v6306_v55 }
 0xa0f   :  { %5843 = vmatpush3.bf16.msra.mxu1 %v4921_v47 }
 0xabb   :  { %v4692_v53 = vpop.f32.mrb[56].mxu0 }
 0xabc   :  { %v5806_v33 = vpop.f32.mrb[57].mxu0 }
 0xabd   :  { %v4625_v48 = vpop.f32.mrb[156].mxu1  ;;  %v4695_v31 = vpop.f32.mrb[58].mxu0 }
 0xabe   :  { %v4693_v42 = vadd.f32 %v4692_v53, %v4625_v48  ;;  %v5794_v44 = vpop.f32.mrb[157].mxu1  ;;  %v5807_v14 = vpop.f32.mrb[59].mxu0 }
 0xabf   :  { %v4628_v25 = vpop.f32.mrb[158].mxu1 }
 0xac0   :  { %v5795_v17 = vpop.f32.mrb[159].mxu1 }
 0xacb   :  { %v4847_v18 = vpop.f32.mrb[60].mxu0 }
 0xacc   :  { %v5830_v12 = vpop.f32.mrb[61].mxu0 }
 0xacd   :  { %v4769_v59 = vpop.f32.mrb[160].mxu1  ;;  %v4850_v41 = vpop.f32.mrb[62].mxu0 }
 0xace   :  { %v4775_v0 = vadd.f32 %v4769_v59, %v4693_v42  ;;  %v5818_v57 = vpop.f32.mrb[161].mxu1  ;;  %v5831_v24 = vpop.f32.mrb[63].mxu0 }
 0xacf   :  { %v4772_v55 = vpop.f32.mrb[162].mxu1 }
 0xad0   :  { %v4853_v50 = vadd.f32 %v4847_v18, %v4775_v0  ;;  %v5819_v51 = vpop.f32.mrb[163].mxu1 }
 0xad2   :  { %v4861_v54 = vadd.f32 %v5439_v34, %v4853_v50 }
 0xad4   :  { %v4862_v27 = vmax.f32 %v4861_v54, 0.0 }
 0xad6   :  { %v4863_v38 = vpack.c.bf16 %v4862_v27, %v4862_v27 }
 0xad8   :  { %5845 = vmatmul.mubr.msk.bf16.vlgmr.msra.gmra.mrb[164].mxu1 %vm4915_vm5, %v4863_v38 }
 0xbab   :  { %v4957_v40 = vpop.f32.mrb[164].mxu1 }
 0xbac   :  { %v4958_v46 = vadd.f32 %v5440_v56, %v4957_v40  ;;  %v5846_v6 = vpop.f32.mrb[165].mxu1 }
 0xbad   :  { %v4960_v32 = vpop.f32.mrb[166].mxu1 }
 0xbae   :  { %4963 = vst [vmem:[%s8039_s15] sm:$0xff] %v4958_v46  ;;  %v5847_v30 = vpop.f32.mrb[167].mxu1 }

</bundles_post_ra>
